<compile_context>
chip_gen: v7x
topology: tpu7x:2x2x1
jax: 0.10.0
libtpu: 0.0.40
codegen_flags: <defaults>
</compile_context>

<pallas_src>
import functools

import jax
import jax.numpy as jnp
import numpy as np
from jax.experimental import pallas as pl
from jax.experimental.pallas import tpu as pltpu


def _fnn_kernel(scale_ref,   # (1, 1) f32 in SMEM:  a1 / a1_init
                x_ref,       # (tm, D_in)           row tile of the batch
                w14_ref,     # (D_in + D_out, H):   rows [0:D_in] = w1^T,
                             #                      rows [D_in:]  = w4 (D_out, H)
                w23_ref,     # (2, H, H):           w2, w3 (torch (out, in) layout)
                b_ref,       # (4, H):              b1, b2, b3, b4 (b4 zero-padded)
                o_ref):      # (tm, D_out)
    s = scale_ref[0, 0]
    x = x_ref[...].astype(jnp.float32)          # (tm, D_in)
    d_in = x_ref.shape[1]
    d_out = w14_ref.shape[0] - d_in

    # ---- layer 1:  tanh(s * (x @ w1^T + b1)) ----
    if d_in <= 8:
        # VPU path: D_in broadcast FMAs, no MXU round trip for a K=2 matmul.
        pre = x[:, 0:1] * w14_ref[0:1, :]                       # (tm,1)*(1,H)
        for d in range(1, d_in):
            pre = pre + x[:, d:d + 1] * w14_ref[d:d + 1, :]
        pre = pre + b_ref[0:1, :]
    else:
        pre = jnp.dot(x, w14_ref[0:d_in, :],
                      preferred_element_type=jnp.float32) + b_ref[0:1, :]
    y = jnp.tanh(s * pre)                                       # (tm, H)

    # ---- layers 2, 3:  tanh(s * (y @ wL^T + bL)) ----
    for l in range(2):
        pre = jax.lax.dot_general(
            y, w23_ref[l],
            dimension_numbers=(((1,), (1,)), ((), ())),         # y·wL^T on MXU
            preferred_element_type=jnp.float32) + b_ref[l + 1:l + 2, :]
        y = jnp.tanh(s * pre)

    # ---- layer 4:  s * (y @ w4^T + b4) ----
    pre = jax.lax.dot_general(
        y, w14_ref[d_in:d_in + d_out, :],
        dimension_numbers=(((1,), (1,)), ((), ())),
        preferred_element_type=jnp.float32) + b_ref[3:4, 0:d_out]
    o_ref[...] = (s * pre).astype(o_ref.dtype)


def prepare_params(params):
    """One-time packing of the PyTorch-layout parameters (call OUTSIDE the hot path)."""
    w1, b1, w2, b2, w3, b3, w4, b4, a1, a1_init = params
    H, D_in = w1.shape
    D_out = w4.shape[0]
    w14 = jnp.concatenate([w1.T, w4], axis=0).astype(jnp.float32)      # (D_in+D_out, H)
    w23 = jnp.stack([w2, w3], axis=0).astype(jnp.float32)              # (2, H, H)
    b4p = jnp.zeros((H,), jnp.float32).at[:D_out].set(b4.astype(jnp.float32))
    b_pack = jnp.stack([b1.astype(jnp.float32),
                        b2.astype(jnp.float32),
                        b3.astype(jnp.float32),
                        b4p], axis=0)                                  # (4, H)
    return (w14, w23, b_pack,
            jnp.asarray(a1, jnp.float32), jnp.asarray(a1_init, jnp.float32))


@functools.partial(jax.jit, static_argnames=("tm",))
def fnn_forward(x, prepped, tm=None):
    """Forward pass. x: (N, D_in) f32; prepped: output of prepare_params."""
    w14, w23, b_pack, a1, a1_init = prepped
    N, D_in = x.shape
    H = w23.shape[-1]
    D_out = w14.shape[0] - D_in

    # n = 1 / a1_init is frozen at construction; a1 is trainable.
    scale = (a1 / a1_init).astype(jnp.float32).reshape(1, 1)

    # Grid sizing: one step for small N (single TensorCore on v5e/v6e);
    # 512-row tiles otherwise.  Partial last block is handled by Pallas
    # (garbage tail rows stay row-local and are never written past N).
    if tm is None:
        tm = N if N <= 1024 else 512
    if tm >= N:
        tm = N                                  # block == full dim -> always legal
    else:
        tm = max(8, (tm // 8) * 8)              # keep sublane divisibility
    grid_n = pl.cdiv(N, tm)

    out = pl.pallas_call(
        _fnn_kernel,
        out_shape=jax.ShapeDtypeStruct((N, D_out), jnp.float32),
        grid_spec=pl.GridSpec(
            grid=(grid_n,),
            in_specs=[
                pl.BlockSpec(memory_space=pltpu.MemorySpace.SMEM),     # scale (1,1)
                pl.BlockSpec((tm, D_in), lambda i: (i, 0)),            # x row tile
                pl.BlockSpec((D_in + D_out, H), lambda i: (0, 0)),     # w1^T | w4
                pl.BlockSpec((2, H, H), lambda i: (0, 0, 0)),          # w2, w3
                pl.BlockSpec((4, H), lambda i: (0, 0)),                # biases
            ],
            out_specs=pl.BlockSpec((tm, D_out), lambda i: (i, 0)),
        ),
        compiler_params=pltpu.CompilerParams(
            dimension_semantics=("parallel",)),
    )(scale, x, w14, w23, b_pack)
    return out


def init_params(key, D_in, H, D_out):
    """Deterministic init mirroring the PyTorch __init__ (normal weights/biases).

    Weights are (out_features, in_features), biases are (out_features,)."""
    ks = jax.random.split(key, 8)
    std = lambda fan_in, fan_out: np.sqrt(2.0 / (fan_in + fan_out))
    w1 = jax.random.normal(ks[0], (H, D_in), jnp.float32) * std(D_in, H)
    w2 = jax.random.normal(ks[1], (H, H), jnp.float32) * std(H, H)
    w3 = jax.random.normal(ks[2], (H, H), jnp.float32) * std(H, H)
    w4 = jax.random.normal(ks[3], (D_out, H), jnp.float32) * std(H, D_out)
    b1 = jax.random.normal(ks[4], (H,), jnp.float32)
    b2 = jax.random.normal(ks[5], (H,), jnp.float32)
    b3 = jax.random.normal(ks[6], (H,), jnp.float32)
    b4 = jax.random.normal(ks[7], (D_out,), jnp.float32)
    a1 = jnp.array(0.1, jnp.float32)        # trainable parameter
    a1_init = jnp.array(0.1, jnp.float32)   # frozen: n = 1 / a1_init
    return (w1, b1, w2, b2, w3, b3, w4, b4, a1, a1_init)


def fnn_reference(x, params):
    """Pure-JAX reference matching the PyTorch forward."""
    w1, b1, w2, b2, w3, b3, w4, b4, a1, a1_init = params
    s = a1 / a1_init
    y1 = jnp.tanh(s * (x @ w1.T + b1))
    y2 = jnp.tanh(s * (y1 @ w2.T + b2))
    y3 = jnp.tanh(s * (y2 @ w3.T + b3))
    return s * (y3 @ w4.T + b4)


if __name__ == "__main__":
    key = jax.random.PRNGKey(0)
    k_par, k_x = jax.random.split(key)

    # Shapes consistent with the module: D_in=2 coords, H=32 hidden, D_out=2.
    # N=500 is not a multiple of 8/128 -> exercises the full-block (grid=1) path.
    N, D_in, H, D_out = 500, 2, 32, 2
    params = init_params(k_par, D_in, H, D_out)
    prepped = prepare_params(params)          # one-time packing, outside hot path
    x = jax.random.normal(k_x, (N, D_in), jnp.float32)

    out = fnn_forward(x, prepped)
    out = jax.block_until_ready(out)

    ref = fnn_reference(x, params)
    np.testing.assert_allclose(np.asarray(out), np.asarray(ref),
                               rtol=1e-5, atol=1e-5)
    print("KERNEL_OK")
</pallas_src>

<mosaic_0001>
module attributes {stable_mosaic.version = 11 : i64} {
  func.func @_fnn_kernel(%arg0: i32, %arg1: memref<1x1xf32, #tpu.memory_space<smem>>, %arg2: memref<500x2xf32, #tpu.memory_space<vmem>>, %arg3: memref<4x32xf32, #tpu.memory_space<vmem>>, %arg4: memref<2x32x32xf32, #tpu.memory_space<vmem>>, %arg5: memref<4x32xf32, #tpu.memory_space<vmem>>, %arg6: memref<500x2xf32, #tpu.memory_space<vmem>>) attributes {dimension_semantics = [#tpu.dimension_semantics<parallel>], iteration_bounds = array<i64: 1>, scalar_prefetch = 0 : i64, scratch_operands = 0 : i64, tpu.core_type = #tpu.core_type<tc>, window_params = [{transform_indices = @transform_0, window_bounds = array<i64: 1, 1>}, {transform_indices = @transform_1, window_bounds = array<i64: 500, 2>}, {pipeline_mode = #tpu.pipeline_mode<synchronous>, transform_indices = @transform_2, window_bounds = array<i64: 4, 32>}, {pipeline_mode = #tpu.pipeline_mode<synchronous>, transform_indices = @transform_3, window_bounds = array<i64: 2, 32, 32>}, {pipeline_mode = #tpu.pipeline_mode<synchronous>, transform_indices = @transform_4, window_bounds = array<i64: 4, 32>}, {transform_indices = @transform_5, window_bounds = array<i64: 500, 2>}]} {
    %c0 = arith.constant 0 : index
    %c0_0 = arith.constant 0 : index
    %0 = memref.load %arg1[%c0, %c0_0] : memref<1x1xf32, #tpu.memory_space<smem>>
    %c0_1 = arith.constant 0 : index
    %c0_2 = arith.constant 0 : index
    %1 = vector.load %arg2[%c0_1, %c0_2] : memref<500x2xf32, #tpu.memory_space<vmem>>, vector<500x2xf32>
    %2 = vector.extract_strided_slice %1 {offsets = [0, 0], sizes = [500, 1], strides = [1, 1]} : vector<500x2xf32> to vector<500x1xf32>
    %c0_3 = arith.constant 0 : index
    %c0_4 = arith.constant 0 : index
    %3 = vector.load %arg3[%c0_3, %c0_4] : memref<4x32xf32, #tpu.memory_space<vmem>>, vector<1x32xf32>
    %4 = vector.broadcast %2 : vector<500x1xf32> to vector<500x32xf32>
    %5 = vector.broadcast %3 : vector<1x32xf32> to vector<500x32xf32>
    %6 = arith.mulf %4, %5 : vector<500x32xf32>
    %7 = vector.extract_strided_slice %1 {offsets = [0, 1], sizes = [500, 1], strides = [1, 1]} : vector<500x2xf32> to vector<500x1xf32>
    %c1 = arith.constant 1 : index
    %c0_5 = arith.constant 0 : index
    %8 = vector.load %arg3[%c1, %c0_5] : memref<4x32xf32, #tpu.memory_space<vmem>>, vector<1x32xf32>
    %9 = vector.broadcast %7 : vector<500x1xf32> to vector<500x32xf32>
    %10 = vector.broadcast %8 : vector<1x32xf32> to vector<500x32xf32>
    %11 = arith.mulf %9, %10 : vector<500x32xf32>
    %12 = arith.addf %6, %11 : vector<500x32xf32>
    %c0_6 = arith.constant 0 : index
    %c0_7 = arith.constant 0 : index
    %13 = vector.load %arg5[%c0_6, %c0_7] : memref<4x32xf32, #tpu.memory_space<vmem>>, vector<1x32xf32>
    %14 = vector.broadcast %13 : vector<1x32xf32> to vector<500x32xf32>
    %15 = arith.addf %12, %14 : vector<500x32xf32>
    %16 = vector.broadcast %0 : f32 to vector<500x32xf32>
    %17 = arith.mulf %16, %15 : vector<500x32xf32>
    %18 = math.tanh %17 : vector<500x32xf32>
    %c0_8 = arith.constant 0 : index
    %c0_9 = arith.constant 0 : index
    %c0_10 = arith.constant 0 : index
    %19 = vector.load %arg4[%c0_8, %c0_9, %c0_10] : memref<2x32x32xf32, #tpu.memory_space<vmem>>, vector<1x32x32xf32>
    %20 = vector.shape_cast %19 : vector<1x32x32xf32> to vector<32x32xf32>
    %cst = arith.constant dense<0.000000e+00> : vector<500x32xf32>
    %21 = tpu.matmul %18, %20, %cst {dimension_numbers = #tpu.dot_dimension_numbers<[1], [1], [0], [0], [0, 0, 1, 0], [], []>} : vector<500x32xf32>, vector<32x32xf32>, vector<500x32xf32> -> vector<500x32xf32>
    %c1_11 = arith.constant 1 : index
    %c0_12 = arith.constant 0 : index
    %22 = vector.load %arg5[%c1_11, %c0_12] : memref<4x32xf32, #tpu.memory_space<vmem>>, vector<1x32xf32>
    %23 = vector.broadcast %22 : vector<1x32xf32> to vector<500x32xf32>
    %24 = arith.addf %21, %23 : vector<500x32xf32>
    %25 = vector.broadcast %0 : f32 to vector<500x32xf32>
    %26 = arith.mulf %25, %24 : vector<500x32xf32>
    %27 = math.tanh %26 : vector<500x32xf32>
    %c1_13 = arith.constant 1 : index
    %c0_14 = arith.constant 0 : index
    %c0_15 = arith.constant 0 : index
    %28 = vector.load %arg4[%c1_13, %c0_14, %c0_15] : memref<2x32x32xf32, #tpu.memory_space<vmem>>, vector<1x32x32xf32>
    %29 = vector.shape_cast %28 : vector<1x32x32xf32> to vector<32x32xf32>
    %cst_16 = arith.constant dense<0.000000e+00> : vector<500x32xf32>
    %30 = tpu.matmul %27, %29, %cst_16 {dimension_numbers = #tpu.dot_dimension_numbers<[1], [1], [0], [0], [0, 0, 1, 0], [], []>} : vector<500x32xf32>, vector<32x32xf32>, vector<500x32xf32> -> vector<500x32xf32>
    %c2 = arith.constant 2 : index
    %c0_17 = arith.constant 0 : index
    %31 = vector.load %arg5[%c2, %c0_17] : memref<4x32xf32, #tpu.memory_space<vmem>>, vector<1x32xf32>
    %32 = vector.broadcast %31 : vector<1x32xf32> to vector<500x32xf32>
    %33 = arith.addf %30, %32 : vector<500x32xf32>
    %34 = vector.broadcast %0 : f32 to vector<500x32xf32>
    %35 = arith.mulf %34, %33 : vector<500x32xf32>
    %36 = math.tanh %35 : vector<500x32xf32>
    %c2_18 = arith.constant 2 : index
    %c0_19 = arith.constant 0 : index
    %37 = vector.load %arg3[%c2_18, %c0_19] : memref<4x32xf32, #tpu.memory_space<vmem>>, vector<2x32xf32>
    %cst_20 = arith.constant dense<0.000000e+00> : vector<500x2xf32>
    %38 = tpu.matmul %36, %37, %cst_20 {dimension_numbers = #tpu.dot_dimension_numbers<[1], [1], [0], [0], [0, 0, 1, 0], [], []>} : vector<500x32xf32>, vector<2x32xf32>, vector<500x2xf32> -> vector<500x2xf32>
    %c3 = arith.constant 3 : index
    %c0_21 = arith.constant 0 : index
    %39 = vector.load %arg5[%c3, %c0_21] : memref<4x32xf32, #tpu.memory_space<vmem>>, vector<1x2xf32>
    %40 = vector.broadcast %39 : vector<1x2xf32> to vector<500x2xf32>
    %41 = arith.addf %38, %40 : vector<500x2xf32>
    %42 = vector.broadcast %0 : f32 to vector<500x2xf32>
    %43 = arith.mulf %42, %41 : vector<500x2xf32>
    %c0_22 = arith.constant 0 : index
    %c0_23 = arith.constant 0 : index
    %44 = vector.load %arg6[%c0_22, %c0_23] : memref<500x2xf32, #tpu.memory_space<vmem>>, vector<500x2xf32>
    tpu.vector_store %arg6[%c0_22, %c0_23], %43 {strides = array<i32>} : memref<500x2xf32, #tpu.memory_space<vmem>>, vector<500x2xf32>,
    return
  }
  func.func @transform_0(%arg0: i32) -> (i32, i32) {
    %c0_i32 = arith.constant 0 : i32
    %c0_i32_0 = arith.constant 0 : i32
    %c0_i32_1 = arith.constant 0 : i32
    return %c0_i32, %c0_i32_0 : i32, i32
  }
  func.func @transform_1(%arg0: i32) -> (i32, i32) {
    %c0_i32 = arith.constant 0 : i32
    %c0_i32_0 = arith.constant 0 : i32
    return %arg0, %c0_i32 : i32, i32
  }
  func.func @transform_2(%arg0: i32) -> (i32, i32) {
    %c0_i32 = arith.constant 0 : i32
    %c0_i32_0 = arith.constant 0 : i32
    %c0_i32_1 = arith.constant 0 : i32
    return %c0_i32, %c0_i32_0 : i32, i32
  }
  func.func @transform_3(%arg0: i32) -> (i32, i32, i32) {
    %c0_i32 = arith.constant 0 : i32
    %c0_i32_0 = arith.constant 0 : i32
    %c0_i32_1 = arith.constant 0 : i32
    %c0_i32_2 = arith.constant 0 : i32
    return %c0_i32, %c0_i32_0, %c0_i32_1 : i32, i32, i32
  }
  func.func @transform_4(%arg0: i32) -> (i32, i32) {
    %c0_i32 = arith.constant 0 : i32
    %c0_i32_0 = arith.constant 0 : i32
    %c0_i32_1 = arith.constant 0 : i32
    return %c0_i32, %c0_i32_0 : i32, i32
  }
  func.func @transform_5(%arg0: i32) -> (i32, i32) {
    %c0_i32 = arith.constant 0 : i32
    %c0_i32_0 = arith.constant 0 : i32
    return %arg0, %c0_i32 : i32, i32
  }
}

</mosaic_0001>

<bundles_post_ra>
// kernel: fnn_forward.1
= control target key start
LH: loop header
LB: loop body
LE: loop exit
PB: predicated region body
PF: predicated region fallthrough
CT: control target
= control target key end

     0   :  { %v4594_v0 = vmov 0   ;;  %v4595_v3 = vmov 1   ;;  %vm1055_vm0 = vcmask 261120   ;;  %v4596_v6 = vmov 0.0|0.0   ;;  %s6384_s1 = inlined_call_operand.vmem [shape: f32[500,2], index: 1, kind: input, shape index: {}]   ;;  %s6385_s3 = inlined_call_operand.vmem [shape: f32[2,32,32], index: 3, kind: input, shape index: {}]   ;;  %s6386_s2 = inlined_call_operand.vmem [shape: f32[4,32], index: 2, kind: input, shape index: {}]   ;;  %s6387_s4 = inlined_call_operand.vmem [shape: f32[4,32], index: 4, kind: input, shape index: {}]   ;;  %s6388_s0 = inlined_call_operand.<no memory space> [shape: f32[1,1], index: 0, kind: input, shape index: {}]   ;;  %s6389_s5 = inlined_call_operand.vmem [shape: f32[500,2], index: 5, kind: output, shape index: {}]  }
   0x1   :  { %4208 = vset.pattern.permute.xlu1 %v4594_v0  ;;  %4206 = vset.pattern.permute.xlu0 %v4594_v0  ;;  %v23_v1 = vld [vmem:[%s6384_s1 + $0x8] sm:$0xff]  ;;  %v22_v2 = vld [vmem:[%s6384_s1] sm:$0xff]  ;;  %v24_v4 = vld [vmem:[%s6384_s1 + $0x10] sm:$0xff]  ;;  %vm4597_vm2 = vmmov 0   ;;  %v4598_v17 = vmov 0.0   ;;  %v4792_v59 = vstv %s6388_s0  ;;  %vm3121_vm3 = vcmask 15360  }
   0x2   :  { %93 = vperm.xlu1 %4208, %v23_v1   ;;  %88 = vperm.xlu0 %4206, %v22_v2   ;;  %v25_v5 = vld [vmem:[%s6384_s1 + $0x18] sm:$0xff]  ;;  %v1046_v7 = vld [vmem:[%s6385_s3] sm:$0xff]  ;;  %v1047_v8 = vld [vmem:[%s6385_s3 + $0x8] sm:$0xff]  ;;  %vm3184_vm4 = vcmask 11264  }
   0x3   :  { %4181 = vmatprep.subr.bf16.mxu0 %v4596_v6  ;;  %4197 = vmatprep.subr.bf16.mxu1 %v4596_v6  ;;  %v4182_v9 = vpack.c.bf16 %v1047_v8, %v1046_v7  ;;  %vm4651_vm1 = vmpackc.low %vm1055_vm0, %vm1055_vm0  ;;  %v26_v11 = vld [vmem:[%s6384_s1 + $0x20] sm:$0xff]  ;;  %v1048_v12 = vld [vmem:[%s6385_s3 + $0x10] sm:$0xff] }
   0x4   :  { %v1049_v13 = vld [vmem:[%s6385_s3 + $0x18] sm:$0xff]  ;;  %v27_v14 = vld [vmem:[%s6384_s1 + $0x28] sm:$0xff]  ;;  %v28_v16 = vld [vmem:[%s6384_s1 + $0x30] sm:$0xff]  ;;  %3604 = vmatprep.mubr.msk.f32.mxu0 %vm4597_vm2, %v4598_v17  ;;  %3700 = vmatprep.mubr.msk.f32.mxu1 %vm4597_vm2, %v4598_v17 }
   0x5   :  { %4184 = vmatpush3.bf16.xpose.msk.msra.mxu0 %vm4651_vm1, %v4182_v9  ;;  %4199 = vmatpush3.bf16.xpose.msk.msra.mxu1 %vm4651_vm1, %v4182_v9  ;;  %v4186_v15 = vpack.c.bf16 %v1049_v13, %v1048_v12  ;;  %v29_v18 = vld [vmem:[%s6384_s1 + $0x38] sm:$0xff]  ;;  %v30_v19 = vld [vmem:[%s6384_s1 + $0x40] sm:$0xff]  ;;  %v31_v20 = vld [vmem:[%s6384_s1 + $0x48] sm:$0xff] }
   0x6   :  { %4209 = vset.pattern.permute.xlu1 %v4595_v3  ;;  %4207 = vset.pattern.permute.xlu0 %v4595_v3  ;;  %v32_v21 = vld [vmem:[%s6384_s1 + $0x50] sm:$0xff]  ;;  %v33_v22 = vld [vmem:[%s6384_s1 + $0x58] sm:$0xff]  ;;  %v34_v23 = vld [vmem:[%s6384_s1 + $0x60] sm:$0xff] }
   0x7   :  { %474 = vperm.xlu1 %4209, %v23_v1   ;;  %470 = vperm.xlu0 %4207, %v22_v2   ;;  %v35_v24 = vld [vmem:[%s6384_s1 + $0x68] sm:$0xff]  ;;  %v36_v25 = vld [vmem:[%s6384_s1 + $0x70] sm:$0xff]  ;;  %v37_v26 = vld [vmem:[%s6384_s1 + $0x78] sm:$0xff] }
   0x8   :  { %4185 = vmatprep.subr.bf16.mxu0 %v4596_v6  ;;  %4198 = vmatprep.subr.bf16.mxu1 %v4596_v6  ;;  %v38_v27 = vld [vmem:[%s6384_s1 + $0x80] sm:$0xff]  ;;  %v39_v28 = vld [vmem:[%s6384_s1 + $0x88] sm:$0xff]  ;;  %v40_v29 = vld [vmem:[%s6384_s1 + $0x90] sm:$0xff] }
   0x9   :  { %v41_v30 = vld [vmem:[%s6384_s1 + $0x98] sm:$0xff]  ;;  %v42_v31 = vld [vmem:[%s6384_s1 + $0xa0] sm:$0xff]  ;;  %v43_v32 = vld [vmem:[%s6384_s1 + $0xa8] sm:$0xff] }
   0xa   :  { %v44_v33 = vld [vmem:[%s6384_s1 + $0xb0] sm:$0xff]  ;;  %v45_v34 = vld [vmem:[%s6384_s1 + $0xb8] sm:$0xff]  ;;  %v46_v35 = vld [vmem:[%s6384_s1 + $0xc0] sm:$0xff] }
   0xb   :  { %4210 = vset.pattern.permute.xlu1 %v4594_v0  ;;  %478 = vperm.xlu0 %4207, %v24_v4   ;;  %v47_v36 = vld [vmem:[%s6384_s1 + $0xc8] sm:$0xff]  ;;  %v54_v37 = vld [vmem:[%s6384_s1 + $0x100] sm:$0xff]  ;;  %v48_v38 = vld [vmem:[%s6384_s1 + $0xd0] sm:$0xff] }
   0xc   :  { %98 = vperm.xlu1 %4210, %v24_v4   ;;  %v55_v39 = vld [vmem:[%s6384_s1 + $0x108] sm:$0xff]  ;;  %v49_v40 = vld [vmem:[%s6384_s1 + $0xd8] sm:$0xff]  ;;  %v56_v41 = vld [vmem:[%s6384_s1 + $0x110] sm:$0xff] }
   0xd   :  { %4188 = vmatpush3.bf16.xpose.msk.msra.mxu0 %vm4651_vm1, %v4186_v15  ;;  %4200 = vmatpush3.bf16.xpose.msk.msra.mxu1 %vm4651_vm1, %v4186_v15  ;;  %v50_v42 = vld [vmem:[%s6384_s1 + $0xe0] sm:$0xff]  ;;  %v57_v43 = vld [vmem:[%s6384_s1 + $0x118] sm:$0xff]  ;;  %v51_v48 = vld [vmem:[%s6384_s1 + $0xe8] sm:$0xff] }
   0xe   :  { %4189 = vmatprep.subr.bf16.mxu1 %v4596_v6  ;;  %3990 = vmatprep.subr.mxu0 %v4598_v17  ;;  %v4767_v46 = vld [vmem:[%s6386_s2] ss:$0 sm:$0xff]  ;;  %v4772_v47 = vld [vmem:[%s6386_s2 + $0x1] ss:$0 sm:$0xff]  ;;  %v52_v2 = vld [vmem:[%s6384_s1 + $0xf0] sm:$0xff] }
   0xf   :  { %482 = vperm.xlu0 %4207, %v25_v5   ;;  %v4784_v55 = vld [vmem:[%s6387_s4] ss:$0 sm:$0xff]  ;;  %v59_v13 = vld [vmem:[%s6384_s1 + $0x128] sm:$0xff] }
  0x10   :  { %103 = vperm.xlu1 %4210, %v25_v5   ;;  %v58_v56 = vld [vmem:[%s6384_s1 + $0x120] sm:$0xff] }
  0x13   :  { %486 = vperm.xlu0 %4207, %v26_v11  }
  0x14   :  { %108 = vperm.xlu1 %4210, %v26_v11  }
  0x17   :  { %490 = vperm.xlu0 %4207, %v27_v14  }
  0x18   :  { %113 = vperm.xlu1 %4210, %v27_v14  }
  0x1b   :  { %494 = vperm.xlu0 %4207, %v28_v16  }
  0x1c   :  { %118 = vperm.xlu1 %4210, %v28_v16  }
  0x1f   :  { %498 = vperm.xlu0 %4207, %v29_v18  }
  0x20   :  { %123 = vperm.xlu1 %4210, %v29_v18  }
  0x23   :  { %502 = vperm.xlu0 %4207, %v30_v19  }
  0x24   :  { %128 = vperm.xlu1 %4210, %v30_v19  }
  0x27   :  { %506 = vperm.xlu0 %4207, %v31_v20  }
  0x28   :  { %133 = vperm.xlu1 %4210, %v31_v20  }
  0x2b   :  { %510 = vperm.xlu0 %4207, %v32_v21  }
  0x2c   :  { %138 = vperm.xlu1 %4210, %v32_v21  }
  0x2f   :  { %514 = vperm.xlu0 %4207, %v33_v22  }
  0x30   :  { %143 = vperm.xlu1 %4210, %v33_v22   ;;  %v53_v22 = vld [vmem:[%s6384_s1 + $0xf8] sm:$0xff] }
  0x33   :  { %518 = vperm.xlu0 %4207, %v34_v23  }
  0x34   :  { %148 = vperm.xlu1 %4210, %v34_v23  }
  0x37   :  { %522 = vperm.xlu0 %4207, %v35_v24  }
  0x38   :  { %153 = vperm.xlu1 %4210, %v35_v24  }
  0x3b   :  { %526 = vperm.xlu0 %4207, %v36_v25  }
  0x3c   :  { %158 = vperm.xlu1 %4210, %v36_v25  }
  0x3f   :  { %530 = vperm.xlu0 %4207, %v37_v26  }
  0x40   :  { %163 = vperm.xlu1 %4210, %v37_v26  }
  0x43   :  { %534 = vperm.xlu0 %4207, %v38_v27  }
  0x44   :  { %168 = vperm.xlu1 %4210, %v38_v27  }
  0x47   :  { %538 = vperm.xlu0 %4207, %v39_v28  }
  0x48   :  { %173 = vperm.xlu1 %4210, %v39_v28  }
  0x4b   :  { %542 = vperm.xlu0 %4207, %v40_v29  }
  0x4c   :  { %178 = vperm.xlu1 %4210, %v40_v29  }
  0x4f   :  { %546 = vperm.xlu0 %4207, %v41_v30  }
  0x50   :  { %183 = vperm.xlu1 %4210, %v41_v30   ;;  %v60_v30 = vld [vmem:[%s6384_s1 + $0x130] sm:$0xff] }
  0x53   :  { %550 = vperm.xlu0 %4207, %v42_v31  }
  0x54   :  { %188 = vperm.xlu1 %4210, %v42_v31  }
  0x57   :  { %554 = vperm.xlu0 %4207, %v43_v32  }
  0x58   :  { %193 = vperm.xlu1 %4210, %v43_v32  }
  0x5b   :  { %558 = vperm.xlu0 %4207, %v44_v33  }
  0x5c   :  { %198 = vperm.xlu1 %4210, %v44_v33  }
  0x5f   :  { %562 = vperm.xlu0 %4207, %v45_v34  }
  0x60   :  { %203 = vperm.xlu1 %4210, %v45_v34  }
  0x63   :  { %566 = vperm.xlu0 %4207, %v46_v35  }
  0x64   :  { %208 = vperm.xlu1 %4210, %v46_v35  }
  0x67   :  { %570 = vperm.xlu0 %4207, %v47_v36  }
  0x68   :  { %213 = vperm.xlu1 %4210, %v47_v36  }
  0x6b   :  { %598 = vperm.xlu0 %4207, %v54_v37  }
  0x6c   :  { %248 = vperm.xlu1 %4210, %v54_v37  }
  0x6f   :  { %574 = vperm.xlu0 %4207, %v48_v38  }
  0x70   :  { %218 = vperm.xlu1 %4210, %v48_v38  }
  0x73   :  { %602 = vperm.xlu0 %4207, %v55_v39  }
  0x74   :  { %253 = vperm.xlu1 %4210, %v55_v39   ;;  %v61_v39 = vld [vmem:[%s6384_s1 + $0x138] sm:$0xff] }
  0x77   :  { %578 = vperm.xlu0 %4207, %v49_v40  }
  0x78   :  { %223 = vperm.xlu1 %4210, %v49_v40  }
  0x7b   :  { %606 = vperm.xlu0 %4207, %v56_v41  }
  0x7c   :  { %258 = vperm.xlu1 %4210, %v56_v41  }
  0x7f   :  { %582 = vperm.xlu0 %4207, %v50_v42  }
  0x80   :  { %228 = vperm.xlu1 %4210, %v50_v42  }
  0x81   :  { %v94_v44 = vpop.permute.xlu1 %93  ;;  %v89_v45 = vpop.permute.xlu0 %88 }
  0x82   :  { %v406_v51 = vmul.f32 %v4767_v46, %v94_v44  ;;  %v405_v52 = vmul.f32 %v4767_v46, %v89_v45 }
  0x83   :  { %610 = vperm.xlu0 %4207, %v57_v43  }
  0x84   :  { %263 = vperm.xlu1 %4210, %v57_v43  }
  0x86   :  { %v475_v49 = vpop.permute.xlu1 %474  ;;  %v471_v50 = vpop.permute.xlu0 %470 }
  0x87   :  { %v726_v53 = vmul.f32 %v4772_v47, %v475_v49  ;;  %v725_v54 = vmul.f32 %v4772_v47, %v471_v50  ;;  %586 = vperm.xlu0 %4207, %v51_v48   ;;  %v62_v50 = vld [vmem:[%s6384_s1 + $0x140] sm:$0xff] }
  0x88   :  { %233 = vperm.xlu1 %4210, %v51_v48  }
  0x89   :  { %v789_v57 = vadd.f32 %v726_v53, %v406_v51  ;;  %v788_v58 = vadd.f32 %v725_v54, %v405_v52 }
  0x8a   :  { %v479_v60 = vpop.permute.xlu0 %478 }
  0x8b   :  { %v856_v61 = vadd.f32 %v4784_v55, %v788_v58  ;;  %v727_v62 = vmul.f32 %v4772_v47, %v479_v60  ;;  %v99_v63 = vpop.permute.xlu1 %98  ;;  %614 = vperm.xlu0 %4207, %v58_v56   ;;  %v857_v0 = vadd.f32 %v4784_v55, %v789_v57 }
  0x8c   :  { %v407_v1 = vmul.f32 %v4767_v46, %v99_v63  ;;  %268 = vperm.xlu1 %4210, %v58_v56  }
  0x8d   :  { %v920_v3 = vmul.f32 %v4792_v59, %v856_v61  ;;  %v921_v9 = vmul.f32 %v4792_v59, %v857_v0  ;;  %v63_v61 = vld [vmem:[%s6384_s1 + $0x148] sm:$0xff] }
  0x8e   :  { %v790_v4 = vadd.f32 %v727_v62, %v407_v1  ;;  %v483_v5 = vpop.permute.xlu0 %482 }
  0x8f   :  { %v728_v7 = vmul.f32 %v4772_v47, %v483_v5  ;;  %v104_v8 = vpop.permute.xlu1 %103  ;;  %590 = vperm.xlu0 %4207, %v52_v2   ;;  %4211 = vtanh.f32 %v920_v3 }
  0x90   :  { %v858_v11 = vadd.f32 %v4784_v55, %v790_v4  ;;  %v408_v12 = vmul.f32 %v4767_v46, %v104_v8  ;;  %238 = vperm.xlu1 %4210, %v52_v2   ;;  %4213 = vtanh.f32 %v921_v9 }
  0x92   :  { %v791_v14 = vadd.f32 %v728_v7, %v408_v12  ;;  %v487_v15 = vpop.permute.xlu0 %486  ;;  %v922_v19 = vmul.f32 %v4792_v59, %v858_v11  ;;  %v64_v7 = vld [vmem:[%s6384_s1 + $0x150] sm:$0xff] }
  0x93   :  { %v729_v16 = vmul.f32 %v4772_v47, %v487_v15  ;;  %v109_v18 = vpop.permute.xlu1 %108  ;;  %618 = vperm.xlu0 %4207, %v59_v13  }
  0x94   :  { %v859_v20 = vadd.f32 %v4784_v55, %v791_v14  ;;  %v409_v21 = vmul.f32 %v4767_v46, %v109_v18  ;;  %273 = vperm.xlu1 %4210, %v59_v13   ;;  %4215 = vtanh.f32 %v922_v19  ;;  %v65_v18 = vld [vmem:[%s6384_s1 + $0x158] sm:$0xff] }
  0x96   :  { %v792_v23 = vadd.f32 %v729_v16, %v409_v21  ;;  %v491_v24 = vpop.permute.xlu0 %490  ;;  %v923_v27 = vmul.f32 %v4792_v59, %v859_v20 }
  0x97   :  { %v730_v25 = vmul.f32 %v4772_v47, %v491_v24  ;;  %v114_v26 = vpop.permute.xlu1 %113  ;;  %594 = vperm.xlu0 %4207, %v53_v22  }
  0x98   :  { %v860_v28 = vadd.f32 %v4784_v55, %v792_v23  ;;  %v410_v29 = vmul.f32 %v4767_v46, %v114_v26  ;;  %243 = vperm.xlu1 %4210, %v53_v22   ;;  %4217 = vtanh.f32 %v923_v27  ;;  %v66_v27 = vld [vmem:[%s6384_s1 + $0x160] sm:$0xff] }
  0x99   :  { %v4212_v31 = vpop.eup %4211 }
  0x9a   :  { %v793_v32 = vadd.f32 %v730_v25, %v410_v29  ;;  %v495_v33 = vpop.permute.xlu0 %494  ;;  %3605 = vmatmul.mubr.msk.f32.vlgmr.msra.gmra.mrb[0].mxu0 %vm1055_vm0, %v4212_v31  ;;  %v924_v36 = vmul.f32 %v4792_v59, %v860_v28  ;;  %v4214_v40 = vpop.eup %4213 }
  0x9b   :  { %v731_v34 = vmul.f32 %v4772_v47, %v495_v33  ;;  %v119_v35 = vpop.permute.xlu1 %118  ;;  %622 = vperm.xlu0 %4207, %v60_v30   ;;  %3607 = vmatprep.mubr.msk.f32.mxu0 %vm4597_vm2, %v4598_v17 }
  0x9c   :  { %v861_v37 = vadd.f32 %v4784_v55, %v793_v32  ;;  %v411_v38 = vmul.f32 %v4767_v46, %v119_v35  ;;  %278 = vperm.xlu1 %4210, %v60_v30   ;;  %4219 = vtanh.f32 %v924_v36  ;;  %v67_v36 = vld [vmem:[%s6384_s1 + $0x168] sm:$0xff] }
  0x9e   :  { %v794_v41 = vadd.f32 %v731_v34, %v411_v38  ;;  %v499_v42 = vpop.permute.xlu0 %498  ;;  %3608 = vmatmul.mubr.msk.f32.gmra.mrb[2].mxu0 %vm1055_vm0, %v4214_v40  ;;  %v925_v45 = vmul.f32 %v4792_v59, %v861_v37  ;;  %v4216_v51 = vpop.eup %4215 }
  0x9f   :  { %v732_v43 = vmul.f32 %v4772_v47, %v499_v42  ;;  %v124_v44 = vpop.permute.xlu1 %123  ;;  %626 = vperm.xlu0 %4207, %v61_v39   ;;  %3610 = vmatprep.mubr.msk.f32.mxu0 %vm4597_vm2, %v4598_v17 }
  0xa0   :  { %v862_v48 = vadd.f32 %v4784_v55, %v794_v41  ;;  %v412_v49 = vmul.f32 %v4767_v46, %v124_v44  ;;  %283 = vperm.xlu1 %4210, %v61_v39   ;;  %4221 = vtanh.f32 %v925_v45  ;;  %v68_v45 = vld [vmem:[%s6384_s1 + $0x170] sm:$0xff] }
  0xa2   :  { %v795_v52 = vadd.f32 %v732_v43, %v412_v49  ;;  %v503_v53 = vpop.permute.xlu0 %502  ;;  %3611 = vmatmul.mubr.msk.f32.gmra.mrb[4].mxu0 %vm1055_vm0, %v4216_v51  ;;  %v926_v57 = vmul.f32 %v4792_v59, %v862_v48  ;;  %v4218_v62 = vpop.eup %4217 }
  0xa3   :  { %v733_v54 = vmul.f32 %v4772_v47, %v503_v53  ;;  %v129_v56 = vpop.permute.xlu1 %128  ;;  %630 = vperm.xlu0 %4207, %v62_v50   ;;  %3613 = vmatprep.mubr.msk.f32.mxu0 %vm4597_vm2, %v4598_v17 }
  0xa4   :  { %v863_v58 = vadd.f32 %v4784_v55, %v795_v52  ;;  %v413_v60 = vmul.f32 %v4767_v46, %v129_v56  ;;  %288 = vperm.xlu1 %4210, %v62_v50   ;;  %4223 = vtanh.f32 %v926_v57  ;;  %v69_v57 = vld [vmem:[%s6384_s1 + $0x178] sm:$0xff] }
  0xa6   :  { %v796_v63 = vadd.f32 %v733_v54, %v413_v60  ;;  %v507_v0 = vpop.permute.xlu0 %506  ;;  %3614 = vmatmul.mubr.msk.f32.gmra.mrb[6].mxu0 %vm1055_vm0, %v4218_v62  ;;  %v927_v3 = vmul.f32 %v4792_v59, %v863_v58  ;;  %v4220_v8 = vpop.eup %4219 }
  0xa7   :  { %v734_v1 = vmul.f32 %v4772_v47, %v507_v0  ;;  %v134_v2 = vpop.permute.xlu1 %133  ;;  %634 = vperm.xlu0 %4207, %v63_v61   ;;  %3616 = vmatprep.mubr.msk.f32.mxu0 %vm4597_vm2, %v4598_v17 }
  0xa8   :  { %v864_v4 = vadd.f32 %v4784_v55, %v796_v63  ;;  %v414_v5 = vmul.f32 %v4767_v46, %v134_v2  ;;  %293 = vperm.xlu1 %4210, %v63_v61   ;;  %4225 = vtanh.f32 %v927_v3  ;;  %v70_v3 = vld [vmem:[%s6384_s1 + $0x180] sm:$0xff] }
  0xaa   :  { %v797_v9 = vadd.f32 %v734_v1, %v414_v5  ;;  %v511_v11 = vpop.permute.xlu0 %510  ;;  %3617 = vmatmul.mubr.msk.f32.gmra.mrb[8].mxu0 %vm1055_vm0, %v4220_v8  ;;  %v928_v14 = vmul.f32 %v4792_v59, %v864_v4  ;;  %v4222_v19 = vpop.eup %4221 }
  0xab   :  { %v735_v12 = vmul.f32 %v4772_v47, %v511_v11  ;;  %v139_v13 = vpop.permute.xlu1 %138  ;;  %638 = vperm.xlu0 %4207, %v64_v7   ;;  %3619 = vmatprep.mubr.msk.f32.mxu0 %vm4597_vm2, %v4598_v17 }
  0xac   :  { %v865_v15 = vadd.f32 %v4784_v55, %v797_v9  ;;  %v415_v16 = vmul.f32 %v4767_v46, %v139_v13  ;;  %298 = vperm.xlu1 %4210, %v64_v7   ;;  %4227 = vtanh.f32 %v928_v14  ;;  %v71_v14 = vld [vmem:[%s6384_s1 + $0x188] sm:$0xff] }
  0xae   :  { %v798_v20 = vadd.f32 %v735_v12, %v415_v16  ;;  %v515_v21 = vpop.permute.xlu0 %514  ;;  %3620 = vmatmul.mubr.msk.f32.gmra.mrb[10].mxu0 %vm1055_vm0, %v4222_v19  ;;  %v929_v24 = vmul.f32 %v4792_v59, %v865_v15  ;;  %v4224_v28 = vpop.eup %4223 }
  0xaf   :  { %v736_v22 = vmul.f32 %v4772_v47, %v515_v21  ;;  %v144_v23 = vpop.permute.xlu1 %143  ;;  %642 = vperm.xlu0 %4207, %v65_v18   ;;  %3622 = vmatprep.mubr.msk.f32.mxu0 %vm4597_vm2, %v4598_v17 }
  0xb0   :  { %v866_v25 = vadd.f32 %v4784_v55, %v798_v20  ;;  %v416_v26 = vmul.f32 %v4767_v46, %v144_v23  ;;  %303 = vperm.xlu1 %4210, %v65_v18   ;;  %4229 = vtanh.f32 %v929_v24  ;;  %v72_v24 = vld [vmem:[%s6384_s1 + $0x190] sm:$0xff] }
  0xb2   :  { %v799_v29 = vadd.f32 %v736_v22, %v416_v26  ;;  %v519_v30 = vpop.permute.xlu0 %518  ;;  %3623 = vmatmul.mubr.msk.f32.gmra.mrb[12].mxu0 %vm1055_vm0, %v4224_v28  ;;  %v930_v33 = vmul.f32 %v4792_v59, %v866_v25  ;;  %v4226_v37 = vpop.eup %4225 }
  0xb3   :  { %v737_v31 = vmul.f32 %v4772_v47, %v519_v30  ;;  %v149_v32 = vpop.permute.xlu1 %148  ;;  %646 = vperm.xlu0 %4207, %v66_v27   ;;  %3625 = vmatprep.mubr.msk.f32.mxu0 %vm4597_vm2, %v4598_v17 }
  0xb4   :  { %v867_v34 = vadd.f32 %v4784_v55, %v799_v29  ;;  %v417_v35 = vmul.f32 %v4767_v46, %v149_v32  ;;  %308 = vperm.xlu1 %4210, %v66_v27   ;;  %4231 = vtanh.f32 %v930_v33  ;;  %v73_v33 = vld [vmem:[%s6384_s1 + $0x198] sm:$0xff] }
  0xb6   :  { %v800_v38 = vadd.f32 %v737_v31, %v417_v35  ;;  %v523_v39 = vpop.permute.xlu0 %522  ;;  %3626 = vmatmul.mubr.msk.f32.gmra.mrb[14].mxu0 %vm1055_vm0, %v4226_v37  ;;  %v931_v42 = vmul.f32 %v4792_v59, %v867_v34  ;;  %v4228_v48 = vpop.eup %4227 }
  0xb7   :  { %v738_v40 = vmul.f32 %v4772_v47, %v523_v39  ;;  %v154_v41 = vpop.permute.xlu1 %153  ;;  %650 = vperm.xlu0 %4207, %v67_v36   ;;  %3628 = vmatprep.mubr.msk.f32.mxu0 %vm4597_vm2, %v4598_v17 }
  0xb8   :  { %v868_v43 = vadd.f32 %v4784_v55, %v800_v38  ;;  %v418_v44 = vmul.f32 %v4767_v46, %v154_v41  ;;  %313 = vperm.xlu1 %4210, %v67_v36   ;;  %4233 = vtanh.f32 %v931_v42  ;;  %v74_v42 = vld [vmem:[%s6384_s1 + $0x1a0] sm:$0xff] }
  0xba   :  { %v801_v49 = vadd.f32 %v738_v40, %v418_v44  ;;  %v527_v50 = vpop.permute.xlu0 %526  ;;  %3629 = vmatmul.mubr.msk.f32.gmra.mrb[16].mxu0 %vm1055_vm0, %v4228_v48  ;;  %v932_v53 = vmul.f32 %v4792_v59, %v868_v43  ;;  %v4230_v58 = vpop.eup %4229 }
  0xbb   :  { %v739_v51 = vmul.f32 %v4772_v47, %v527_v50  ;;  %v159_v52 = vpop.permute.xlu1 %158  ;;  %654 = vperm.xlu0 %4207, %v68_v45   ;;  %3631 = vmatprep.mubr.msk.f32.mxu0 %vm4597_vm2, %v4598_v17 }
  0xbc   :  { %v869_v54 = vadd.f32 %v4784_v55, %v801_v49  ;;  %v419_v56 = vmul.f32 %v4767_v46, %v159_v52  ;;  %318 = vperm.xlu1 %4210, %v68_v45   ;;  %4235 = vtanh.f32 %v932_v53  ;;  %v75_v53 = vld [vmem:[%s6384_s1 + $0x1a8] sm:$0xff] }
  0xbe   :  { %v802_v60 = vadd.f32 %v739_v51, %v419_v56  ;;  %v531_v61 = vpop.permute.xlu0 %530  ;;  %3632 = vmatmul.mubr.msk.f32.gmra.mrb[18].mxu0 %vm1055_vm0, %v4230_v58  ;;  %v933_v0 = vmul.f32 %v4792_v59, %v869_v54  ;;  %v4232_v4 = vpop.eup %4231 }
  0xbf   :  { %v740_v62 = vmul.f32 %v4772_v47, %v531_v61  ;;  %v164_v63 = vpop.permute.xlu1 %163  ;;  %658 = vperm.xlu0 %4207, %v69_v57   ;;  %3634 = vmatprep.mubr.msk.f32.mxu0 %vm4597_vm2, %v4598_v17 }
  0xc0   :  { %v870_v1 = vadd.f32 %v4784_v55, %v802_v60  ;;  %v420_v2 = vmul.f32 %v4767_v46, %v164_v63  ;;  %323 = vperm.xlu1 %4210, %v69_v57   ;;  %4237 = vtanh.f32 %v933_v0  ;;  %v76_v0 = vld [vmem:[%s6384_s1 + $0x1b0] sm:$0xff] }
  0xc2   :  { %v803_v5 = vadd.f32 %v740_v62, %v420_v2  ;;  %v535_v7 = vpop.permute.xlu0 %534  ;;  %3635 = vmatmul.mubr.msk.f32.gmra.mrb[20].mxu0 %vm1055_vm0, %v4232_v4  ;;  %v934_v11 = vmul.f32 %v4792_v59, %v870_v1  ;;  %v4234_v15 = vpop.eup %4233 }
  0xc3   :  { %v741_v8 = vmul.f32 %v4772_v47, %v535_v7  ;;  %v169_v9 = vpop.permute.xlu1 %168  ;;  %662 = vperm.xlu0 %4207, %v70_v3   ;;  %3637 = vmatprep.mubr.msk.f32.mxu0 %vm4597_vm2, %v4598_v17 }
  0xc4   :  { %v871_v12 = vadd.f32 %v4784_v55, %v803_v5  ;;  %v421_v13 = vmul.f32 %v4767_v46, %v169_v9  ;;  %328 = vperm.xlu1 %4210, %v70_v3   ;;  %4239 = vtanh.f32 %v934_v11  ;;  %v77_v11 = vld [vmem:[%s6384_s1 + $0x1b8] sm:$0xff] }
  0xc6   :  { %v804_v16 = vadd.f32 %v741_v8, %v421_v13  ;;  %v539_v18 = vpop.permute.xlu0 %538  ;;  %3638 = vmatmul.mubr.msk.f32.gmra.mrb[22].mxu0 %vm1055_vm0, %v4234_v15  ;;  %v935_v21 = vmul.f32 %v4792_v59, %v871_v12  ;;  %v4236_v25 = vpop.eup %4235 }
  0xc7   :  { %v742_v19 = vmul.f32 %v4772_v47, %v539_v18  ;;  %v174_v20 = vpop.permute.xlu1 %173  ;;  %666 = vperm.xlu0 %4207, %v71_v14   ;;  %3640 = vmatprep.mubr.msk.f32.mxu0 %vm4597_vm2, %v4598_v17 }
  0xc8   :  { %v872_v22 = vadd.f32 %v4784_v55, %v804_v16  ;;  %v422_v23 = vmul.f32 %v4767_v46, %v174_v20  ;;  %333 = vperm.xlu1 %4210, %v71_v14   ;;  %4241 = vtanh.f32 %v935_v21  ;;  %v78_v21 = vld [vmem:[%s6384_s1 + $0x1c0] sm:$0xff] }
  0xca   :  { %v805_v26 = vadd.f32 %v742_v19, %v422_v23  ;;  %v543_v27 = vpop.permute.xlu0 %542  ;;  %3641 = vmatmul.mubr.msk.f32.gmra.mrb[24].mxu0 %vm1055_vm0, %v4236_v25  ;;  %v936_v30 = vmul.f32 %v4792_v59, %v872_v22  ;;  %v4238_v34 = vpop.eup %4237 }
  0xcb   :  { %v743_v28 = vmul.f32 %v4772_v47, %v543_v27  ;;  %v179_v29 = vpop.permute.xlu1 %178  ;;  %670 = vperm.xlu0 %4207, %v72_v24   ;;  %3643 = vmatprep.mubr.msk.f32.mxu0 %vm4597_vm2, %v4598_v17 }
  0xcc   :  { %v873_v31 = vadd.f32 %v4784_v55, %v805_v26  ;;  %v423_v32 = vmul.f32 %v4767_v46, %v179_v29  ;;  %338 = vperm.xlu1 %4210, %v72_v24   ;;  %4243 = vtanh.f32 %v936_v30  ;;  %v79_v30 = vld [vmem:[%s6384_s1 + $0x1c8] sm:$0xff] }
  0xce   :  { %v806_v35 = vadd.f32 %v743_v28, %v423_v32  ;;  %v547_v36 = vpop.permute.xlu0 %546  ;;  %3644 = vmatmul.mubr.msk.f32.gmra.mrb[26].mxu0 %vm1055_vm0, %v4238_v34  ;;  %v937_v39 = vmul.f32 %v4792_v59, %v873_v31  ;;  %v4240_v43 = vpop.eup %4239 }
  0xcf   :  { %v744_v37 = vmul.f32 %v4772_v47, %v547_v36  ;;  %v184_v38 = vpop.permute.xlu1 %183  ;;  %674 = vperm.xlu0 %4207, %v73_v33   ;;  %3646 = vmatprep.mubr.msk.f32.mxu0 %vm4597_vm2, %v4598_v17 }
  0xd0   :  { %v874_v40 = vadd.f32 %v4784_v55, %v806_v35  ;;  %v424_v41 = vmul.f32 %v4767_v46, %v184_v38  ;;  %343 = vperm.xlu1 %4210, %v73_v33   ;;  %4245 = vtanh.f32 %v937_v39  ;;  %v80_v39 = vld [vmem:[%s6384_s1 + $0x1d0] sm:$0xff] }
  0xd2   :  { %v807_v44 = vadd.f32 %v744_v37, %v424_v41  ;;  %v551_v45 = vpop.permute.xlu0 %550  ;;  %3647 = vmatmul.mubr.msk.f32.gmra.mrb[28].mxu0 %vm1055_vm0, %v4240_v43  ;;  %v938_v50 = vmul.f32 %v4792_v59, %v874_v40  ;;  %v4242_v54 = vpop.eup %4241 }
  0xd3   :  { %v745_v48 = vmul.f32 %v4772_v47, %v551_v45  ;;  %v189_v49 = vpop.permute.xlu1 %188  ;;  %678 = vperm.xlu0 %4207, %v74_v42   ;;  %3649 = vmatprep.mubr.msk.f32.mxu0 %vm4597_vm2, %v4598_v17 }
  0xd4   :  { %v875_v51 = vadd.f32 %v4784_v55, %v807_v44  ;;  %v425_v52 = vmul.f32 %v4767_v46, %v189_v49  ;;  %348 = vperm.xlu1 %4210, %v74_v42   ;;  %4247 = vtanh.f32 %v938_v50  ;;  %v81_v50 = vld [vmem:[%s6384_s1 + $0x1d8] sm:$0xff] }
  0xd6   :  { %v808_v56 = vadd.f32 %v745_v48, %v425_v52  ;;  %v555_v57 = vpop.permute.xlu0 %554  ;;  %3650 = vmatmul.mubr.msk.f32.gmra.mrb[30].mxu0 %vm1055_vm0, %v4242_v54  ;;  %v939_v61 = vmul.f32 %v4792_v59, %v875_v51  ;;  %v4244_v1 = vpop.eup %4243 }
  0xd7   :  { %v746_v58 = vmul.f32 %v4772_v47, %v555_v57  ;;  %v194_v60 = vpop.permute.xlu1 %193  ;;  %682 = vperm.xlu0 %4207, %v75_v53   ;;  %3652 = vmatprep.mubr.msk.f32.mxu0 %vm4597_vm2, %v4598_v17 }
  0xd8   :  { %v876_v62 = vadd.f32 %v4784_v55, %v808_v56  ;;  %v426_v63 = vmul.f32 %v4767_v46, %v194_v60  ;;  %353 = vperm.xlu1 %4210, %v75_v53   ;;  %4249 = vtanh.f32 %v939_v61  ;;  %v82_v61 = vld [vmem:[%s6384_s1 + $0x1e0] sm:$0xff] }
  0xda   :  { %v809_v2 = vadd.f32 %v746_v58, %v426_v63  ;;  %v559_v3 = vpop.permute.xlu0 %558  ;;  %3653 = vmatmul.mubr.msk.f32.gmra.mrb[32].mxu0 %vm1055_vm0, %v4244_v1  ;;  %v940_v7 = vmul.f32 %v4792_v59, %v876_v62  ;;  %v4246_v12 = vpop.eup %4245 }
  0xdb   :  { %v747_v4 = vmul.f32 %v4772_v47, %v559_v3  ;;  %v199_v5 = vpop.permute.xlu1 %198  ;;  %686 = vperm.xlu0 %4207, %v76_v0   ;;  %3655 = vmatprep.mubr.msk.f32.mxu0 %vm4597_vm2, %v4598_v17 }
  0xdc   :  { %v877_v8 = vadd.f32 %v4784_v55, %v809_v2  ;;  %v427_v9 = vmul.f32 %v4767_v46, %v199_v5  ;;  %358 = vperm.xlu1 %4210, %v76_v0   ;;  %4251 = vtanh.f32 %v940_v7  ;;  %v83_v7 = vld [vmem:[%s6384_s1 + $0x1e8] sm:$0xff] }
  0xde   :  { %v810_v13 = vadd.f32 %v747_v4, %v427_v9  ;;  %v563_v14 = vpop.permute.xlu0 %562  ;;  %3656 = vmatmul.mubr.msk.f32.gmra.mrb[34].mxu0 %vm1055_vm0, %v4246_v12  ;;  %v941_v18 = vmul.f32 %v4792_v59, %v877_v8  ;;  %v4248_v22 = vpop.eup %4247 }
  0xdf   :  { %v748_v15 = vmul.f32 %v4772_v47, %v563_v14  ;;  %v204_v16 = vpop.permute.xlu1 %203  ;;  %690 = vperm.xlu0 %4207, %v77_v11   ;;  %3658 = vmatprep.mubr.msk.f32.mxu0 %vm4597_vm2, %v4598_v17 }
  0xe0   :  { %v878_v19 = vadd.f32 %v4784_v55, %v810_v13  ;;  %v428_v20 = vmul.f32 %v4767_v46, %v204_v16  ;;  %363 = vperm.xlu1 %4210, %v77_v11   ;;  %4253 = vtanh.f32 %v941_v18  ;;  %v84_v18 = vld [vmem:[%s6384_s1 + $0x1f0] sm:$0xf] }
  0xe2   :  { %v811_v23 = vadd.f32 %v748_v15, %v428_v20  ;;  %v567_v24 = vpop.permute.xlu0 %566  ;;  %3659 = vmatmul.mubr.msk.f32.gmra.mrb[36].mxu0 %vm1055_vm0, %v4248_v22  ;;  %v942_v27 = vmul.f32 %v4792_v59, %v878_v19  ;;  %v4250_v31 = vpop.eup %4249 }
  0xe3   :  { %v749_v25 = vmul.f32 %v4772_v47, %v567_v24  ;;  %v209_v26 = vpop.permute.xlu1 %208  ;;  %694 = vperm.xlu0 %4207, %v78_v21   ;;  %3661 = vmatprep.mubr.msk.f32.mxu0 %vm4597_vm2, %v4598_v17  ;;  %v3262_v24 = vld [vmem:[%s6385_s3 + $0x28] sm:$0xff] }
  0xe4   :  { %v879_v28 = vadd.f32 %v4784_v55, %v811_v23  ;;  %v429_v29 = vmul.f32 %v4767_v46, %v209_v26  ;;  %368 = vperm.xlu1 %4210, %v78_v21   ;;  %4255 = vtanh.f32 %v942_v27  ;;  %v3261_v23 = vld [vmem:[%s6385_s3 + $0x20] sm:$0xff] }
  0xe6   :  { %v812_v32 = vadd.f32 %v749_v25, %v429_v29  ;;  %v571_v33 = vpop.permute.xlu0 %570  ;;  %3662 = vmatmul.mubr.msk.f32.gmra.mrb[38].mxu0 %vm1055_vm0, %v4250_v31  ;;  %v943_v36 = vmul.f32 %v4792_v59, %v879_v28  ;;  %v4252_v40 = vpop.eup %4251 }
  0xe7   :  { %v750_v34 = vmul.f32 %v4772_v47, %v571_v33  ;;  %v214_v35 = vpop.permute.xlu1 %213  ;;  %698 = vperm.xlu0 %4207, %v79_v30   ;;  %3664 = vmatprep.mubr.msk.f32.mxu0 %vm4597_vm2, %v4598_v17 }
  0xe8   :  { %v880_v37 = vadd.f32 %v4784_v55, %v812_v32  ;;  %v430_v38 = vmul.f32 %v4767_v46, %v214_v35  ;;  %373 = vperm.xlu1 %4210, %v79_v30   ;;  %4257 = vtanh.f32 %v943_v36  ;;  %v4190_v30 = vpack.c.bf16 %v3262_v24, %v3261_v23 }
  0xea   :  { %v813_v41 = vadd.f32 %v750_v34, %v430_v38  ;;  %v599_v42 = vpop.permute.xlu0 %598  ;;  %3665 = vmatmul.mubr.msk.f32.gmra.mrb[40].mxu0 %vm1055_vm0, %v4252_v40  ;;  %v944_v45 = vmul.f32 %v4792_v59, %v880_v37  ;;  %v4254_v51 = vpop.eup %4253 }
  0xeb   :  { %v757_v43 = vmul.f32 %v4772_v47, %v599_v42  ;;  %v249_v44 = vpop.permute.xlu1 %248  ;;  %702 = vperm.xlu0 %4207, %v80_v39   ;;  %3667 = vmatprep.mubr.msk.f32.mxu0 %vm4597_vm2, %v4598_v17 }
  0xec   :  { %v881_v48 = vadd.f32 %v4784_v55, %v813_v41  ;;  %v437_v49 = vmul.f32 %v4767_v46, %v249_v44  ;;  %378 = vperm.xlu1 %4210, %v80_v39   ;;  %4259 = vtanh.f32 %v944_v45  ;;  %v3264_v44 = vld [vmem:[%s6385_s3 + $0x38] sm:$0xff] }
  0xee   :  { %v820_v52 = vadd.f32 %v757_v43, %v437_v49  ;;  %v575_v53 = vpop.permute.xlu0 %574  ;;  %v945_v54 = vmul.f32 %v4792_v59, %v881_v48  ;;  %3668 = vmatmul.mubr.msk.f32.gmra.mrb[42].mxu0 %vm1055_vm0, %v4254_v51  ;;  %v4256_v62 = vpop.eup %4255  ;;  %v3263_v43 = vld [vmem:[%s6385_s3 + $0x30] sm:$0xff] }
  0xef   :  { %v751_v56 = vmul.f32 %v4772_v47, %v575_v53  ;;  %v219_v57 = vpop.permute.xlu1 %218  ;;  %706 = vperm.xlu0 %4207, %v81_v50   ;;  %3670 = vmatprep.mubr.msk.f32.mxu0 %vm4597_vm2, %v4598_v17 }
  0xf0   :  { %v888_v58 = vadd.f32 %v4784_v55, %v820_v52  ;;  %v431_v60 = vmul.f32 %v4767_v46, %v219_v57  ;;  %383 = vperm.xlu1 %4210, %v81_v50   ;;  %4261 = vtanh.f32 %v945_v54 }
  0xf2   :  { %v952_v63 = vmul.f32 %v4792_v59, %v888_v58  ;;  %v814_v0 = vadd.f32 %v751_v56, %v431_v60  ;;  %v603_v1 = vpop.permute.xlu0 %602  ;;  %3671 = vmatmul.mubr.msk.f32.gmra.mrb[44].mxu0 %vm1055_vm0, %v4256_v62  ;;  %v4258_v8 = vpop.eup %4257 }
  0xf3   :  { %v758_v2 = vmul.f32 %v4772_v47, %v603_v1  ;;  %v254_v3 = vpop.permute.xlu1 %253  ;;  %710 = vperm.xlu0 %4207, %v82_v61   ;;  %3673 = vmatprep.mubr.msk.f32.mxu0 %vm4597_vm2, %v4598_v17 }
  0xf4   :  { %4263 = vtanh.f32 %v952_v63  ;;  %v882_v4 = vadd.f32 %v4784_v55, %v814_v0  ;;  %v438_v5 = vmul.f32 %v4767_v46, %v254_v3  ;;  %388 = vperm.xlu1 %4210, %v82_v61  }
  0xf6   :  { %v946_v9 = vmul.f32 %v4792_v59, %v882_v4  ;;  %v821_v11 = vadd.f32 %v758_v2, %v438_v5  ;;  %v579_v12 = vpop.permute.xlu0 %578  ;;  %3674 = vmatmul.mubr.msk.f32.gmra.mrb[46].mxu0 %vm1055_vm0, %v4258_v8  ;;  %v4260_v19 = vpop.eup %4259 }
  0xf7   :  { %v752_v13 = vmul.f32 %v4772_v47, %v579_v12  ;;  %v224_v14 = vpop.permute.xlu1 %223  ;;  %714 = vperm.xlu0 %4207, %v83_v7   ;;  %3676 = vmatprep.mubr.msk.f32.mxu0 %vm4597_vm2, %v4598_v17 }
  0xf8   :  { %4265 = vtanh.f32 %v946_v9  ;;  %v889_v15 = vadd.f32 %v4784_v55, %v821_v11  ;;  %v432_v16 = vmul.f32 %v4767_v46, %v224_v14  ;;  %393 = vperm.xlu1 %4210, %v83_v7  }
  0xfa   :  { %v953_v20 = vmul.f32 %v4792_v59, %v889_v15  ;;  %v815_v21 = vadd.f32 %v752_v13, %v432_v16  ;;  %v607_v22 = vpop.permute.xlu0 %606  ;;  %3677 = vmatmul.mubr.msk.f32.gmra.mrb[48].mxu0 %vm1055_vm0, %v4260_v19  ;;  %v4262_v29 = vpop.eup %4261 }
  0xfb   :  { %v759_v25 = vmul.f32 %v4772_v47, %v607_v22  ;;  %v259_v26 = vpop.permute.xlu1 %258  ;;  %718 = vperm.xlu0 %4207, %v84_v18   ;;  %3679 = vmatprep.mubr.msk.f32.mxu0 %vm4597_vm2, %v4598_v17 }
  0xfc   :  { %4267 = vtanh.f32 %v953_v20  ;;  %v883_v27 = vadd.f32 %v4784_v55, %v815_v21  ;;  %v439_v28 = vmul.f32 %v4767_v46, %v259_v26  ;;  %398 = vperm.xlu1 %4210, %v84_v18  }
  0xfe   :  { %v4264_v31 = vpop.eup %4263  ;;  %v947_v32 = vmul.f32 %v4792_v59, %v883_v27  ;;  %v822_v33 = vadd.f32 %v759_v25, %v439_v28  ;;  %v583_v34 = vpop.permute.xlu0 %582  ;;  %3680 = vmatmul.mubr.msk.f32.gmra.mrb[50].mxu0 %vm1055_vm0, %v4262_v29 }
  0xff   :  { %v753_v35 = vmul.f32 %v4772_v47, %v583_v34  ;;  %v229_v36 = vpop.permute.xlu1 %228  ;;  %3701 = vmatmul.mubr.msk.f32.vlgmr.msra.gmra.mrb[0].mxu1 %vm1055_vm0, %v4264_v31  ;;  %3682 = vmatprep.mubr.msk.f32.mxu0 %vm4597_vm2, %v4598_v17 }
 0x100   :  { %4269 = vtanh.f32 %v947_v32  ;;  %v890_v37 = vadd.f32 %v4784_v55, %v822_v33  ;;  %v433_v38 = vmul.f32 %v4767_v46, %v229_v36  ;;  %3703 = vmatprep.mubr.msk.f32.mxu1 %vm4597_vm2, %v4598_v17  ;;  %4192 = vmatpush3.bf16.xpose.msk.msra.mxu1 %vm4651_vm1, %v4190_v30 }
 0x101   :  { %4193 = vmatprep.subr.bf16.mxu1 %v4596_v6  ;;  %v4194_v6 = vpack.c.bf16 %v3264_v44, %v3263_v43 }
 0x102   :  { %v4266_v39 = vpop.eup %4265  ;;  %v954_v40 = vmul.f32 %v4792_v59, %v890_v37  ;;  %v816_v41 = vadd.f32 %v753_v35, %v433_v38  ;;  %v611_v42 = vpop.permute.xlu0 %610 }
 0x103   :  { %v760_v45 = vmul.f32 %v4772_v47, %v611_v42  ;;  %v264_v48 = vpop.permute.xlu1 %263  ;;  %3683 = vmatmul.mubr.msk.f32.gmra.mrb[52].mxu0 %vm1055_vm0, %v4266_v39 }
 0x104   :  { %4271 = vtanh.f32 %v954_v40  ;;  %v884_v49 = vadd.f32 %v4784_v55, %v816_v41  ;;  %v440_v50 = vmul.f32 %v4767_v46, %v264_v48  ;;  %3685 = vmatprep.mubr.msk.f32.mxu0 %vm4597_vm2, %v4598_v17 }
 0x106   :  { %v4268_v51 = vpop.eup %4267  ;;  %v948_v52 = vmul.f32 %v4792_v59, %v884_v49  ;;  %v823_v53 = vadd.f32 %v760_v45, %v440_v50  ;;  %v587_v54 = vpop.permute.xlu0 %586  ;;  %v5158_v45 = vld [vmem:[%s6386_s2] ss:$0 sm:$0xff] }
 0x107   :  { %v754_v56 = vmul.f32 %v4772_v47, %v587_v54  ;;  %v234_v57 = vpop.permute.xlu1 %233  ;;  %3704 = vmatmul.mubr.msk.f32.gmra.mrb[2].mxu1 %vm1055_vm0, %v4268_v51 }
 0x108   :  { %4273 = vtanh.f32 %v948_v52  ;;  %v891_v58 = vadd.f32 %v4784_v55, %v823_v53  ;;  %v434_v60 = vmul.f32 %v4767_v46, %v234_v57  ;;  %3706 = vmatprep.mubr.msk.f32.mxu1 %vm4597_vm2, %v4598_v17  ;;  %4196 = vmatpush3.bf16.xpose.msk.msra.mxu1 %vm4651_vm1, %v4194_v6 }
 0x10a   :  { %v4270_v61 = vpop.eup %4269  ;;  %v955_v62 = vmul.f32 %v4792_v59, %v891_v58  ;;  %v817_v63 = vadd.f32 %v754_v56, %v434_v60  ;;  %v615_v0 = vpop.permute.xlu0 %614 }
 0x10b   :  { %v761_v1 = vmul.f32 %v4772_v47, %v615_v0  ;;  %v269_v2 = vpop.permute.xlu1 %268  ;;  %3686 = vmatmul.mubr.msk.f32.gmra.mrb[54].mxu0 %vm1055_vm0, %v4270_v61 }
 0x10c   :  { %4275 = vtanh.f32 %v955_v62  ;;  %v885_v3 = vadd.f32 %v4784_v55, %v817_v63  ;;  %v441_v4 = vmul.f32 %v4767_v46, %v269_v2  ;;  %3688 = vmatprep.mubr.msk.f32.mxu0 %vm4597_vm2, %v4598_v17 }
 0x10e   :  { %v4272_v10 = vpop.eup %4271  ;;  %v949_v5 = vmul.f32 %v4792_v59, %v885_v3  ;;  %v824_v7 = vadd.f32 %v761_v1, %v441_v4  ;;  %v591_v8 = vpop.permute.xlu0 %590 }
 0x10f   :  { %v755_v9 = vmul.f32 %v4772_v47, %v591_v8  ;;  %v239_v11 = vpop.permute.xlu1 %238  ;;  %3707 = vmatmul.mubr.msk.f32.gmra.mrb[4].mxu1 %vm1055_vm0, %v4272_v10 }
 0x110   :  { %4277 = vtanh.f32 %v949_v5  ;;  %v892_v12 = vadd.f32 %v4784_v55, %v824_v7  ;;  %v435_v13 = vmul.f32 %v4767_v46, %v239_v11  ;;  %3709 = vmatprep.mubr.msk.f32.mxu1 %vm4597_vm2, %v4598_v17 }
 0x112   :  { %v4274_v14 = vpop.eup %4273  ;;  %v956_v15 = vmul.f32 %v4792_v59, %v892_v12  ;;  %v818_v16 = vadd.f32 %v755_v9, %v435_v13  ;;  %v619_v18 = vpop.permute.xlu0 %618 }
 0x113   :  { %v762_v19 = vmul.f32 %v4772_v47, %v619_v18  ;;  %v274_v20 = vpop.permute.xlu1 %273  ;;  %3689 = vmatmul.mubr.msk.f32.gmra.mrb[56].mxu0 %vm1055_vm0, %v4274_v14 }
 0x114   :  { %4279 = vtanh.f32 %v956_v15  ;;  %v886_v21 = vadd.f32 %v4784_v55, %v818_v16  ;;  %v442_v22 = vmul.f32 %v4767_v46, %v274_v20  ;;  %3691 = vmatprep.mubr.msk.f32.mxu0 %vm4597_vm2, %v4598_v17 }
 0x116   :  { %v4276_v23 = vpop.eup %4275  ;;  %v950_v24 = vmul.f32 %v4792_v59, %v886_v21  ;;  %v825_v25 = vadd.f32 %v762_v19, %v442_v22  ;;  %v595_v26 = vpop.permute.xlu0 %594 }
 0x117   :  { %v756_v27 = vmul.f32 %v4772_v47, %v595_v26  ;;  %v244_v28 = vpop.permute.xlu1 %243  ;;  %3710 = vmatmul.mubr.msk.f32.gmra.mrb[6].mxu1 %vm1055_vm0, %v4276_v23 }
 0x118   :  { %4281 = vtanh.f32 %v950_v24  ;;  %v893_v29 = vadd.f32 %v4784_v55, %v825_v25  ;;  %v436_v30 = vmul.f32 %v4767_v46, %v244_v28  ;;  %3712 = vmatprep.mubr.msk.f32.mxu1 %vm4597_vm2, %v4598_v17 }
 0x11a   :  { %v4278_v31 = vpop.eup %4277  ;;  %v957_v32 = vmul.f32 %v4792_v59, %v893_v29  ;;  %v819_v33 = vadd.f32 %v756_v27, %v436_v30  ;;  %v623_v34 = vpop.permute.xlu0 %622 }
 0x11b   :  { %v763_v35 = vmul.f32 %v4772_v47, %v623_v34  ;;  %v279_v36 = vpop.permute.xlu1 %278  ;;  %3692 = vmatmul.mubr.msk.f32.gmra.mrb[58].mxu0 %vm1055_vm0, %v4278_v31  ;;  %v5150_v47 = vld [vmem:[%s6386_s2 + $0x1] ss:$0 sm:$0xff] }
 0x11c   :  { %4283 = vtanh.f32 %v957_v32  ;;  %v887_v37 = vadd.f32 %v4784_v55, %v819_v33  ;;  %v443_v38 = vmul.f32 %v4767_v46, %v279_v36  ;;  %3694 = vmatprep.mubr.msk.f32.mxu0 %vm4597_vm2, %v4598_v17 }
 0x11e   :  { %v4280_v39 = vpop.eup %4279  ;;  %v951_v40 = vmul.f32 %v4792_v59, %v887_v37  ;;  %v826_v41 = vadd.f32 %v763_v35, %v443_v38  ;;  %v627_v42 = vpop.permute.xlu0 %626 }
 0x11f   :  { %v764_v43 = vmul.f32 %v5150_v47, %v627_v42  ;;  %v284_v44 = vpop.permute.xlu1 %283  ;;  %3713 = vmatmul.mubr.msk.f32.gmra.mrb[8].mxu1 %vm1055_vm0, %v4280_v39 }
 0x120   :  { %4285 = vtanh.f32 %v951_v40  ;;  %v894_v46 = vadd.f32 %v4784_v55, %v826_v41  ;;  %v444_v48 = vmul.f32 %v5158_v45, %v284_v44  ;;  %3715 = vmatprep.mubr.msk.f32.mxu1 %vm4597_vm2, %v4598_v17  ;;  %v5169_v55 = vld [vmem:[%s6387_s4] ss:$0 sm:$0xff] }
 0x122   :  { %v4282_v49 = vpop.eup %4281  ;;  %v958_v50 = vmul.f32 %v4792_v59, %v894_v46  ;;  %v827_v6 = vadd.f32 %v764_v43, %v444_v48  ;;  %v631_v51 = vpop.permute.xlu0 %630 }
 0x123   :  { %v765_v52 = vmul.f32 %v5150_v47, %v631_v51  ;;  %v289_v53 = vpop.permute.xlu1 %288  ;;  %3695 = vmatmul.mubr.msk.f32.gmra.mrb[60].mxu0 %vm1055_vm0, %v4282_v49 }
 0x124   :  { %4287 = vtanh.f32 %v958_v50  ;;  %v895_v54 = vadd.f32 %v5169_v55, %v827_v6  ;;  %v445_v56 = vmul.f32 %v5158_v45, %v289_v53  ;;  %3697 = vmatprep.mubr.msk.f32.mxu0 %vm4597_vm2, %v4598_v17 }
 0x126   :  { %v4284_v57 = vpop.eup %4283  ;;  %v959_v58 = vmul.f32 %v4792_v59, %v895_v54  ;;  %v828_v60 = vadd.f32 %v765_v52, %v445_v56  ;;  %v635_v61 = vpop.permute.xlu0 %634 }
 0x127   :  { %v766_v62 = vmul.f32 %v5150_v47, %v635_v61  ;;  %v294_v63 = vpop.permute.xlu1 %293  ;;  %3716 = vmatmul.mubr.msk.f32.gmra.mrb[10].mxu1 %vm1055_vm0, %v4284_v57 }
 0x128   :  { %4289 = vtanh.f32 %v959_v58  ;;  %v896_v0 = vadd.f32 %v5169_v55, %v828_v60  ;;  %v446_v1 = vmul.f32 %v5158_v45, %v294_v63  ;;  %3718 = vmatprep.mubr.msk.f32.mxu1 %vm4597_vm2, %v4598_v17 }
 0x12a   :  { %v4286_v2 = vpop.eup %4285  ;;  %v960_v3 = vmul.f32 %v4792_v59, %v896_v0  ;;  %v829_v4 = vadd.f32 %v766_v62, %v446_v1  ;;  %v639_v10 = vpop.permute.xlu0 %638 }
 0x12b   :  { %v767_v5 = vmul.f32 %v5150_v47, %v639_v10  ;;  %v299_v7 = vpop.permute.xlu1 %298  ;;  %3698 = vmatmul.mubr.msk.f32.gmra.mrb[62].mxu0 %vm1055_vm0, %v4286_v2 }
 0x12c   :  { %4291 = vtanh.f32 %v960_v3  ;;  %v897_v8 = vadd.f32 %v5169_v55, %v829_v4  ;;  %v447_v9 = vmul.f32 %v5158_v45, %v299_v7  ;;  %3992 = vmatprep.mubr.msk.f32.mxu0 %vm4597_vm2, %v4598_v17 }
 0x12e   :  { %v4288_v11 = vpop.eup %4287  ;;  %v961_v12 = vmul.f32 %v4792_v59, %v897_v8  ;;  %v830_v13 = vadd.f32 %v767_v5, %v447_v9  ;;  %v643_v14 = vpop.permute.xlu0 %642 }
 0x12f   :  { %v768_v15 = vmul.f32 %v5150_v47, %v643_v14  ;;  %v304_v16 = vpop.permute.xlu1 %303  ;;  %3719 = vmatmul.mubr.msk.f32.gmra.mrb[12].mxu1 %vm1055_vm0, %v4288_v11 }
 0x130   :  { %4293 = vtanh.f32 %v961_v12  ;;  %v898_v18 = vadd.f32 %v5169_v55, %v830_v13  ;;  %v448_v19 = vmul.f32 %v5158_v45, %v304_v16  ;;  %3721 = vmatprep.mubr.msk.f32.mxu1 %vm4597_vm2, %v4598_v17 }
 0x132   :  { %v4290_v20 = vpop.eup %4289  ;;  %v962_v21 = vmul.f32 %v4792_v59, %v898_v18  ;;  %v831_v22 = vadd.f32 %v768_v15, %v448_v19  ;;  %v647_v23 = vpop.permute.xlu0 %646 }
 0x133   :  { %v769_v24 = vmul.f32 %v5150_v47, %v647_v23  ;;  %v309_v25 = vpop.permute.xlu1 %308  ;;  %3722 = vmatmul.mubr.msk.f32.gmra.mrb[14].mxu1 %vm1055_vm0, %v4290_v20 }
 0x134   :  { %4295 = vtanh.f32 %v962_v21  ;;  %v899_v26 = vadd.f32 %v5169_v55, %v831_v22  ;;  %v449_v27 = vmul.f32 %v5158_v45, %v309_v25  ;;  %3724 = vmatprep.mubr.msk.f32.mxu1 %vm4597_vm2, %v4598_v17 }
 0x136   :  { %v4292_v28 = vpop.eup %4291  ;;  %v963_v29 = vmul.f32 %v4792_v59, %v899_v26  ;;  %v832_v30 = vadd.f32 %v769_v24, %v449_v27  ;;  %v651_v31 = vpop.permute.xlu0 %650 }
 0x137   :  { %v770_v32 = vmul.f32 %v5150_v47, %v651_v31  ;;  %v314_v33 = vpop.permute.xlu1 %313  ;;  %3725 = vmatmul.mubr.msk.f32.gmra.mrb[16].mxu1 %vm1055_vm0, %v4292_v28 }
 0x138   :  { %4297 = vtanh.f32 %v963_v29  ;;  %v900_v34 = vadd.f32 %v5169_v55, %v832_v30  ;;  %v450_v35 = vmul.f32 %v5158_v45, %v314_v33  ;;  %3727 = vmatprep.mubr.msk.f32.mxu1 %vm4597_vm2, %v4598_v17 }
 0x13a   :  { %v4294_v36 = vpop.eup %4293  ;;  %v964_v37 = vmul.f32 %v4792_v59, %v900_v34  ;;  %v833_v38 = vadd.f32 %v770_v32, %v450_v35  ;;  %v655_v39 = vpop.permute.xlu0 %654 }
 0x13b   :  { %v771_v40 = vmul.f32 %v5150_v47, %v655_v39  ;;  %v319_v41 = vpop.permute.xlu1 %318  ;;  %3728 = vmatmul.mubr.msk.f32.gmra.mrb[18].mxu1 %vm1055_vm0, %v4294_v36 }
 0x13c   :  { %4299 = vtanh.f32 %v964_v37  ;;  %v901_v42 = vadd.f32 %v5169_v55, %v833_v38  ;;  %v451_v43 = vmul.f32 %v5158_v45, %v319_v41  ;;  %3730 = vmatprep.mubr.msk.f32.mxu1 %vm4597_vm2, %v4598_v17 }
 0x13e   :  { %v4296_v44 = vpop.eup %4295  ;;  %v965_v46 = vmul.f32 %v4792_v59, %v901_v42  ;;  %v834_v48 = vadd.f32 %v771_v40, %v451_v43  ;;  %v659_v49 = vpop.permute.xlu0 %658 }
 0x13f   :  { %v772_v50 = vmul.f32 %v5150_v47, %v659_v49  ;;  %v324_v6 = vpop.permute.xlu1 %323  ;;  %3731 = vmatmul.mubr.msk.f32.gmra.mrb[20].mxu1 %vm1055_vm0, %v4296_v44 }
 0x140   :  { %4301 = vtanh.f32 %v965_v46  ;;  %v902_v51 = vadd.f32 %v5169_v55, %v834_v48  ;;  %v452_v52 = vmul.f32 %v5158_v45, %v324_v6  ;;  %3733 = vmatprep.mubr.msk.f32.mxu1 %vm4597_vm2, %v4598_v17 }
 0x142   :  { %v4298_v53 = vpop.eup %4297  ;;  %v966_v54 = vmul.f32 %v4792_v59, %v902_v51  ;;  %v835_v56 = vadd.f32 %v772_v50, %v452_v52  ;;  %v663_v57 = vpop.permute.xlu0 %662 }
 0x143   :  { %v773_v58 = vmul.f32 %v5150_v47, %v663_v57  ;;  %v329_v60 = vpop.permute.xlu1 %328  ;;  %3734 = vmatmul.mubr.msk.f32.gmra.mrb[22].mxu1 %vm1055_vm0, %v4298_v53 }
 0x144   :  { %4303 = vtanh.f32 %v966_v54  ;;  %v903_v61 = vadd.f32 %v5169_v55, %v835_v56  ;;  %v453_v62 = vmul.f32 %v5158_v45, %v329_v60  ;;  %3736 = vmatprep.mubr.msk.f32.mxu1 %vm4597_vm2, %v4598_v17 }
 0x146   :  { %v4300_v63 = vpop.eup %4299  ;;  %v967_v0 = vmul.f32 %v4792_v59, %v903_v61  ;;  %v836_v1 = vadd.f32 %v773_v58, %v453_v62  ;;  %v667_v2 = vpop.permute.xlu0 %666 }
 0x147   :  { %v774_v3 = vmul.f32 %v5150_v47, %v667_v2  ;;  %v334_v4 = vpop.permute.xlu1 %333  ;;  %3737 = vmatmul.mubr.msk.f32.gmra.mrb[24].mxu1 %vm1055_vm0, %v4300_v63 }
 0x148   :  { %4305 = vtanh.f32 %v967_v0  ;;  %v904_v10 = vadd.f32 %v5169_v55, %v836_v1  ;;  %v454_v5 = vmul.f32 %v5158_v45, %v334_v4  ;;  %3739 = vmatprep.mubr.msk.f32.mxu1 %vm4597_vm2, %v4598_v17 }
 0x14a   :  { %v4302_v7 = vpop.eup %4301  ;;  %v968_v8 = vmul.f32 %v4792_v59, %v904_v10  ;;  %v837_v9 = vadd.f32 %v774_v3, %v454_v5  ;;  %v671_v11 = vpop.permute.xlu0 %670 }
 0x14b   :  { %v775_v12 = vmul.f32 %v5150_v47, %v671_v11  ;;  %v339_v13 = vpop.permute.xlu1 %338  ;;  %3740 = vmatmul.mubr.msk.f32.gmra.mrb[26].mxu1 %vm1055_vm0, %v4302_v7 }
 0x14c   :  { %4307 = vtanh.f32 %v968_v8  ;;  %v905_v14 = vadd.f32 %v5169_v55, %v837_v9  ;;  %v455_v15 = vmul.f32 %v5158_v45, %v339_v13  ;;  %3742 = vmatprep.mubr.msk.f32.mxu1 %vm4597_vm2, %v4598_v17 }
 0x14e   :  { %v4304_v16 = vpop.eup %4303  ;;  %v969_v18 = vmul.f32 %v4792_v59, %v905_v14  ;;  %v838_v19 = vadd.f32 %v775_v12, %v455_v15  ;;  %v675_v20 = vpop.permute.xlu0 %674 }
 0x14f   :  { %v776_v21 = vmul.f32 %v5150_v47, %v675_v20  ;;  %v344_v22 = vpop.permute.xlu1 %343  ;;  %3743 = vmatmul.mubr.msk.f32.gmra.mrb[28].mxu1 %vm1055_vm0, %v4304_v16 }
 0x150   :  { %4309 = vtanh.f32 %v969_v18  ;;  %v906_v23 = vadd.f32 %v5169_v55, %v838_v19  ;;  %v456_v24 = vmul.f32 %v5158_v45, %v344_v22  ;;  %3745 = vmatprep.mubr.msk.f32.mxu1 %vm4597_vm2, %v4598_v17 }
 0x152   :  { %v4306_v25 = vpop.eup %4305  ;;  %v970_v26 = vmul.f32 %v4792_v59, %v906_v23  ;;  %v839_v27 = vadd.f32 %v776_v21, %v456_v24  ;;  %v679_v28 = vpop.permute.xlu0 %678 }
 0x153   :  { %v777_v29 = vmul.f32 %v5150_v47, %v679_v28  ;;  %v349_v30 = vpop.permute.xlu1 %348  ;;  %3746 = vmatmul.mubr.msk.f32.gmra.mrb[30].mxu1 %vm1055_vm0, %v4306_v25 }
 0x154   :  { %4311 = vtanh.f32 %v970_v26  ;;  %v907_v31 = vadd.f32 %v5169_v55, %v839_v27  ;;  %v457_v32 = vmul.f32 %v5158_v45, %v349_v30  ;;  %3748 = vmatprep.mubr.msk.f32.mxu1 %vm4597_vm2, %v4598_v17 }
 0x156   :  { %v4308_v33 = vpop.eup %4307  ;;  %v971_v34 = vmul.f32 %v4792_v59, %v907_v31  ;;  %v840_v35 = vadd.f32 %v777_v29, %v457_v32  ;;  %v683_v36 = vpop.permute.xlu0 %682 }
 0x157   :  { %v778_v37 = vmul.f32 %v5150_v47, %v683_v36  ;;  %v354_v38 = vpop.permute.xlu1 %353  ;;  %3749 = vmatmul.mubr.msk.f32.gmra.mrb[32].mxu1 %vm1055_vm0, %v4308_v33 }
 0x158   :  { %4313 = vtanh.f32 %v971_v34  ;;  %v908_v39 = vadd.f32 %v5169_v55, %v840_v35  ;;  %v458_v40 = vmul.f32 %v5158_v45, %v354_v38  ;;  %3751 = vmatprep.mubr.msk.f32.mxu1 %vm4597_vm2, %v4598_v17 }
 0x15a   :  { %v4310_v41 = vpop.eup %4309  ;;  %v972_v42 = vmul.f32 %v4792_v59, %v908_v39  ;;  %v841_v43 = vadd.f32 %v778_v37, %v458_v40  ;;  %v687_v44 = vpop.permute.xlu0 %686 }
 0x15b   :  { %v779_v46 = vmul.f32 %v5150_v47, %v687_v44  ;;  %v359_v48 = vpop.permute.xlu1 %358  ;;  %3752 = vmatmul.mubr.msk.f32.gmra.mrb[34].mxu1 %vm1055_vm0, %v4310_v41 }
 0x15c   :  { %4315 = vtanh.f32 %v972_v42  ;;  %v909_v49 = vadd.f32 %v5169_v55, %v841_v43  ;;  %v459_v50 = vmul.f32 %v5158_v45, %v359_v48  ;;  %3754 = vmatprep.mubr.msk.f32.mxu1 %vm4597_vm2, %v4598_v17 }
 0x15e   :  { %v4312_v6 = vpop.eup %4311  ;;  %v973_v51 = vmul.f32 %v4792_v59, %v909_v49  ;;  %v842_v52 = vadd.f32 %v779_v46, %v459_v50  ;;  %v691_v53 = vpop.permute.xlu0 %690 }
 0x15f   :  { %v780_v54 = vmul.f32 %v5150_v47, %v691_v53  ;;  %v364_v56 = vpop.permute.xlu1 %363  ;;  %3755 = vmatmul.mubr.msk.f32.gmra.mrb[36].mxu1 %vm1055_vm0, %v4312_v6 }
 0x160   :  { %4317 = vtanh.f32 %v973_v51  ;;  %v910_v57 = vadd.f32 %v5169_v55, %v842_v52  ;;  %v460_v58 = vmul.f32 %v5158_v45, %v364_v56  ;;  %3757 = vmatprep.mubr.msk.f32.mxu1 %vm4597_vm2, %v4598_v17 }
 0x162   :  { %v4314_v60 = vpop.eup %4313  ;;  %v974_v61 = vmul.f32 %v4792_v59, %v910_v57  ;;  %v843_v62 = vadd.f32 %v780_v54, %v460_v58  ;;  %v695_v63 = vpop.permute.xlu0 %694 }
 0x163   :  { %v781_v0 = vmul.f32 %v5150_v47, %v695_v63  ;;  %v369_v1 = vpop.permute.xlu1 %368  ;;  %3758 = vmatmul.mubr.msk.f32.gmra.mrb[38].mxu1 %vm1055_vm0, %v4314_v60  ;;  %v2480_v63 = vld [vmem:[%s6386_s2 + $0x2] sm:$0x3] }
 0x164   :  { %4319 = vtanh.f32 %v974_v61  ;;  %v911_v2 = vadd.f32 %v5169_v55, %v843_v62  ;;  %v461_v3 = vmul.f32 %v5158_v45, %v369_v1  ;;  %3760 = vmatprep.mubr.msk.f32.mxu1 %vm4597_vm2, %v4598_v17  ;;  %3991 = vmatpush3.xpose.msk.msra.mxu0 %vm1055_vm0, %v2480_v63 }
 0x166   :  { %v4316_v4 = vpop.eup %4315  ;;  %v975_v10 = vmul.f32 %v4792_v59, %v911_v2  ;;  %v844_v5 = vadd.f32 %v781_v0, %v461_v3  ;;  %v699_v7 = vpop.permute.xlu0 %698 }
 0x167   :  { %v782_v8 = vmul.f32 %v5150_v47, %v699_v7  ;;  %v374_v9 = vpop.permute.xlu1 %373  ;;  %3761 = vmatmul.mubr.msk.f32.gmra.mrb[40].mxu1 %vm1055_vm0, %v4316_v4 }
 0x168   :  { %4321 = vtanh.f32 %v975_v10  ;;  %v912_v11 = vadd.f32 %v5169_v55, %v844_v5  ;;  %v462_v12 = vmul.f32 %v5158_v45, %v374_v9  ;;  %3763 = vmatprep.mubr.msk.f32.mxu1 %vm4597_vm2, %v4598_v17 }
 0x16a   :  { %v4318_v13 = vpop.eup %4317  ;;  %v976_v14 = vmul.f32 %v4792_v59, %v912_v11  ;;  %v845_v15 = vadd.f32 %v782_v8, %v462_v12  ;;  %v703_v16 = vpop.permute.xlu0 %702 }
 0x16b   :  { %v783_v18 = vmul.f32 %v5150_v47, %v703_v16  ;;  %v379_v19 = vpop.permute.xlu1 %378  ;;  %3764 = vmatmul.mubr.msk.f32.gmra.mrb[42].mxu1 %vm1055_vm0, %v4318_v13 }
 0x16c   :  { %4323 = vtanh.f32 %v976_v14  ;;  %v913_v20 = vadd.f32 %v5169_v55, %v845_v15  ;;  %v463_v21 = vmul.f32 %v5158_v45, %v379_v19  ;;  %3766 = vmatprep.mubr.msk.f32.mxu1 %vm4597_vm2, %v4598_v17 }
 0x16d   :  { %v1323_v25 = vpop.f32.mrb[0].mxu0 }
 0x16e   :  { %v4320_v22 = vpop.eup %4319  ;;  %v977_v23 = vmul.f32 %v4792_v59, %v913_v20  ;;  %v846_v24 = vadd.f32 %v783_v18, %v463_v21  ;;  %v707_v26 = vpop.permute.xlu0 %706 }
 0x16f   :  { %v784_v27 = vmul.f32 %v5150_v47, %v707_v26  ;;  %v3606_v28 = vpop.f32.mrb[1].mxu0  ;;  %v384_v29 = vpop.permute.xlu1 %383  ;;  %3767 = vmatmul.mubr.msk.f32.gmra.mrb[44].mxu1 %vm1055_vm0, %v4320_v22 }
 0x170   :  { %4325 = vtanh.f32 %v977_v23  ;;  %v914_v30 = vadd.f32 %v5169_v55, %v846_v24  ;;  %v464_v31 = vmul.f32 %v5158_v45, %v384_v29  ;;  %3769 = vmatprep.mubr.msk.f32.mxu1 %vm4597_vm2, %v4598_v17 }
 0x171   :  { %v1328_v35 = vpop.f32.mrb[2].mxu0 }
 0x172   :  { %v4322_v32 = vpop.eup %4321  ;;  %v978_v33 = vmul.f32 %v4792_v59, %v914_v30  ;;  %v847_v34 = vadd.f32 %v784_v27, %v464_v31  ;;  %v711_v36 = vpop.permute.xlu0 %710 }
 0x173   :  { %v785_v37 = vmul.f32 %v5150_v47, %v711_v36  ;;  %v3609_v38 = vpop.f32.mrb[3].mxu0  ;;  %v389_v39 = vpop.permute.xlu1 %388  ;;  %3770 = vmatmul.mubr.msk.f32.gmra.mrb[46].mxu1 %vm1055_vm0, %v4322_v32 }
 0x174   :  { %4327 = vtanh.f32 %v978_v33  ;;  %v915_v40 = vadd.f32 %v5169_v55, %v847_v34  ;;  %v465_v41 = vmul.f32 %v5158_v45, %v389_v39  ;;  %3772 = vmatprep.mubr.msk.f32.mxu1 %vm4597_vm2, %v4598_v17 }
 0x175   :  { %v1333_v46 = vpop.f32.mrb[4].mxu0 }
 0x176   :  { %v4324_v42 = vpop.eup %4323  ;;  %v979_v43 = vmul.f32 %v4792_v59, %v915_v40  ;;  %v848_v44 = vadd.f32 %v785_v37, %v465_v41  ;;  %v715_v48 = vpop.permute.xlu0 %714 }
 0x177   :  { %v786_v49 = vmul.f32 %v5150_v47, %v715_v48  ;;  %v3612_v50 = vpop.f32.mrb[5].mxu0  ;;  %v394_v6 = vpop.permute.xlu1 %393  ;;  %3773 = vmatmul.mubr.msk.f32.gmra.mrb[48].mxu1 %vm1055_vm0, %v4324_v42 }
 0x178   :  { %4329 = vtanh.f32 %v979_v43  ;;  %v916_v51 = vadd.f32 %v5169_v55, %v848_v44  ;;  %v466_v52 = vmul.f32 %v5158_v45, %v394_v6  ;;  %3775 = vmatprep.mubr.msk.f32.mxu1 %vm4597_vm2, %v4598_v17 }
 0x179   :  { %v1338_v57 = vpop.f32.mrb[6].mxu0 }
 0x17a   :  { %v4326_v53 = vpop.eup %4325  ;;  %v980_v54 = vmul.f32 %v4792_v59, %v916_v51  ;;  %v849_v56 = vadd.f32 %v786_v49, %v466_v52  ;;  %v719_v58 = vpop.permute.xlu0 %718 }
 0x17b   :  { %v787_v60 = vmul.f32 %v5150_v47, %v719_v58  ;;  %v3615_v61 = vpop.f32.mrb[7].mxu0  ;;  %v399_v62 = vpop.permute.xlu1 %398  ;;  %3776 = vmatmul.mubr.msk.f32.gmra.mrb[50].mxu1 %vm1055_vm0, %v4326_v53  ;;  %v5336_v47 = vld [vmem:[%s6387_s4 + $0x1] ss:$0 sm:$0xff] }
 0x17c   :  { %4331 = vtanh.f32 %v980_v54  ;;  %v917_v0 = vadd.f32 %v5169_v55, %v849_v56  ;;  %v467_v1 = vmul.f32 %v5158_v45, %v399_v62  ;;  %3778 = vmatprep.mubr.msk.f32.mxu1 %vm4597_vm2, %v4598_v17  ;;  %v1324_v45 = vadd.f32 %v5336_v47, %v1323_v25 }
 0x17d   :  { %v1343_v10 = vpop.f32.mrb[8].mxu0  ;;  %v1329_v14 = vadd.f32 %v5336_v47, %v1328_v35  ;;  %v1334_v19 = vadd.f32 %v5336_v47, %v1333_v46  ;;  %v1339_v24 = vadd.f32 %v5336_v47, %v1338_v57 }
 0x17e   :  { %v4328_v2 = vpop.eup %4327  ;;  %v981_v3 = vmul.f32 %v4792_v59, %v917_v0  ;;  %v850_v4 = vadd.f32 %v787_v60, %v467_v1  ;;  %v3618_v5 = vpop.f32.mrb[9].mxu0  ;;  %v1637_v13 = vmul.f32 %v1324_v45, %v4792_v59  ;;  %v1344_v29 = vadd.f32 %v5336_v47, %v1343_v10 }
 0x17f   :  { %3779 = vmatmul.mubr.msk.f32.gmra.mrb[52].mxu1 %vm1055_vm0, %v4328_v2  ;;  %v1638_v18 = vmul.f32 %v1329_v14, %v4792_v59  ;;  %v1639_v23 = vmul.f32 %v1334_v19, %v4792_v59  ;;  %v1640_v28 = vmul.f32 %v1339_v24, %v4792_v59 }
 0x180   :  { %4333 = vtanh.f32 %v981_v3  ;;  %v918_v7 = vadd.f32 %v5169_v55, %v850_v4  ;;  %3781 = vmatprep.mubr.msk.f32.mxu1 %vm4597_vm2, %v4598_v17  ;;  %v1641_v33 = vmul.f32 %v1344_v29, %v4792_v59 }
 0x181   :  { %v1348_v11 = vpop.f32.mrb[10].mxu0 }
 0x182   :  { %v4330_v8 = vpop.eup %4329  ;;  %v982_v9 = vmul.f32 %v4792_v59, %v918_v7  ;;  %v3621_v12 = vpop.f32.mrb[11].mxu0  ;;  %v1349_v34 = vadd.f32 %v5336_v47, %v1348_v11 }
 0x183   :  { %3782 = vmatmul.mubr.msk.f32.gmra.mrb[54].mxu1 %vm1055_vm0, %v4330_v8 }
 0x184   :  { %4335 = vtanh.f32 %v982_v9  ;;  %3784 = vmatprep.mubr.msk.f32.mxu1 %vm4597_vm2, %v4598_v17  ;;  %v1642_v38 = vmul.f32 %v1349_v34, %v4792_v59 }
 0x185   :  { %v1353_v55 = vpop.f32.mrb[12].mxu0  ;;  %4337 = vtanh.f32 %v1637_v13 }
 0x186   :  { %v4332_v15 = vpop.eup %4331  ;;  %v3624_v16 = vpop.f32.mrb[13].mxu0  ;;  %4339 = vtanh.f32 %v1638_v18  ;;  %v1354_v39 = vadd.f32 %v5336_v47, %v1353_v55 }
 0x187   :  { %3785 = vmatmul.mubr.msk.f32.gmra.mrb[56].mxu1 %vm1055_vm0, %v4332_v15  ;;  %4341 = vtanh.f32 %v1639_v23 }
 0x188   :  { %3787 = vmatprep.mubr.msk.f32.mxu1 %vm4597_vm2, %v4598_v17  ;;  %4343 = vtanh.f32 %v1640_v28  ;;  %v1643_v43 = vmul.f32 %v1354_v39, %v4792_v59 }
 0x189   :  { %v1358_v21 = vpop.f32.mrb[14].mxu0  ;;  %4345 = vtanh.f32 %v1641_v33 }
 0x18a   :  { %v4334_v20 = vpop.eup %4333  ;;  %v3627_v22 = vpop.f32.mrb[15].mxu0  ;;  %4347 = vtanh.f32 %v1642_v38  ;;  %v1359_v44 = vadd.f32 %v5336_v47, %v1358_v21 }
 0x18b   :  { %3788 = vmatmul.mubr.msk.f32.gmra.mrb[58].mxu1 %vm1055_vm0, %v4334_v20  ;;  %4349 = vtanh.f32 %v1643_v43 }
 0x18c   :  { %3790 = vmatprep.mubr.msk.f32.mxu1 %vm4597_vm2, %v4598_v17  ;;  %v1644_v50 = vmul.f32 %v1359_v44, %v4792_v59 }
 0x18d   :  { %v1363_v26 = vpop.f32.mrb[16].mxu0 }
 0x18e   :  { %v4336_v25 = vpop.eup %4335  ;;  %v3630_v27 = vpop.f32.mrb[17].mxu0  ;;  %v1364_v6 = vadd.f32 %v5336_v47, %v1363_v26  ;;  %4351 = vtanh.f32 %v1644_v50 }
 0x18f   :  { %3791 = vmatmul.mubr.msk.f32.gmra.mrb[60].mxu1 %vm1055_vm0, %v4336_v25  ;;  %v4338_v30 = vpop.eup %4337 }
 0x190   :  { %3801 = vmatprep.mubr.msk.f32.mxu1 %vm4597_vm2, %v4598_v17  ;;  %v4340_v35 = vpop.eup %4339  ;;  %v1645_v54 = vmul.f32 %v1364_v6, %v4792_v59 }
 0x191   :  { %v1368_v31 = vpop.f32.mrb[18].mxu0  ;;  %v4342_v40 = vpop.eup %4341 }
 0x192   :  { %v3633_v32 = vpop.f32.mrb[19].mxu0  ;;  %v4344_v46 = vpop.eup %4343  ;;  %v1369_v56 = vadd.f32 %v5336_v47, %v1368_v31  ;;  %4353 = vtanh.f32 %v1645_v54 }
 0x193   :  { %3802 = vmatmul.mubr.msk.f32.vlgmr.msra.gmra.mrb[62].mxu1 %vm1055_vm0, %v4338_v30  ;;  %v4346_v51 = vpop.eup %4345 }
 0x194   :  { %3804 = vmatprep.mubr.msk.f32.mxu1 %vm4597_vm2, %v4598_v17  ;;  %v4348_v57 = vpop.eup %4347  ;;  %v1646_v61 = vmul.f32 %v1369_v56, %v4792_v59 }
 0x195   :  { %v1373_v36 = vpop.f32.mrb[20].mxu0  ;;  %v4350_v63 = vpop.eup %4349 }
 0x196   :  { %v3636_v37 = vpop.f32.mrb[21].mxu0  ;;  %v1374_v62 = vadd.f32 %v5336_v47, %v1373_v36  ;;  %4355 = vtanh.f32 %v1646_v61 }
 0x197   :  { %3805 = vmatmul.mubr.msk.f32.gmra.mrb[64].mxu1 %vm1055_vm0, %v4340_v35 }
 0x198   :  { %3807 = vmatprep.mubr.msk.f32.mxu1 %vm4597_vm2, %v4598_v17  ;;  %v1647_v2 = vmul.f32 %v1374_v62, %v4792_v59  ;;  %v4352_v4 = vpop.eup %4351 }
 0x199   :  { %v1378_v41 = vpop.f32.mrb[22].mxu0 }
 0x19a   :  { %v3639_v42 = vpop.f32.mrb[23].mxu0  ;;  %v1379_v3 = vadd.f32 %v5336_v47, %v1378_v41  ;;  %4357 = vtanh.f32 %v1647_v2 }
 0x19b   :  { %3808 = vmatmul.mubr.msk.f32.gmra.mrb[66].mxu1 %vm1055_vm0, %v4342_v40 }
 0x19c   :  { %3810 = vmatprep.mubr.msk.f32.mxu1 %vm4597_vm2, %v4598_v17  ;;  %v1648_v45 = vmul.f32 %v1379_v3, %v4792_v59  ;;  %v4354_v8 = vpop.eup %4353 }
 0x19d   :  { %v1383_v48 = vpop.f32.mrb[24].mxu0 }
 0x19e   :  { %v3642_v49 = vpop.f32.mrb[25].mxu0  ;;  %v1384_v7 = vadd.f32 %v5336_v47, %v1383_v48  ;;  %4359 = vtanh.f32 %v1648_v45 }
 0x19f   :  { %3811 = vmatmul.mubr.msk.f32.gmra.mrb[68].mxu1 %vm1055_vm0, %v4344_v46 }
 0x1a0   :  { %3813 = vmatprep.mubr.msk.f32.mxu1 %vm4597_vm2, %v4598_v17  ;;  %v1649_v12 = vmul.f32 %v1384_v7, %v4792_v59  ;;  %v4356_v14 = vpop.eup %4355 }
 0x1a1   :  { %v1388_v52 = vpop.f32.mrb[26].mxu0 }
 0x1a2   :  { %v3645_v53 = vpop.f32.mrb[27].mxu0  ;;  %v1389_v13 = vadd.f32 %v5336_v47, %v1388_v52  ;;  %4361 = vtanh.f32 %v1649_v12 }
 0x1a3   :  { %3814 = vmatmul.mubr.msk.f32.gmra.mrb[70].mxu1 %vm1055_vm0, %v4346_v51 }
 0x1a4   :  { %3816 = vmatprep.mubr.msk.f32.mxu1 %vm4597_vm2, %v4598_v17  ;;  %v1650_v16 = vmul.f32 %v1389_v13, %v4792_v59  ;;  %v4358_v19 = vpop.eup %4357 }
 0x1a5   :  { %v1393_v58 = vpop.f32.mrb[28].mxu0 }
 0x1a6   :  { %v3648_v60 = vpop.f32.mrb[29].mxu0  ;;  %v1394_v18 = vadd.f32 %v5336_v47, %v1393_v58  ;;  %4363 = vtanh.f32 %v1650_v16 }
 0x1a7   :  { %3817 = vmatmul.mubr.msk.f32.gmra.mrb[72].mxu1 %vm1055_vm0, %v4348_v57 }
 0x1a8   :  { %3819 = vmatprep.mubr.msk.f32.mxu1 %vm4597_vm2, %v4598_v17  ;;  %v1651_v22 = vmul.f32 %v1394_v18, %v4792_v59  ;;  %v4360_v24 = vpop.eup %4359 }
 0x1a9   :  { %v1398_v0 = vpop.f32.mrb[30].mxu0 }
 0x1aa   :  { %v3651_v1 = vpop.f32.mrb[31].mxu0  ;;  %v1399_v23 = vadd.f32 %v5336_v47, %v1398_v0  ;;  %4365 = vtanh.f32 %v1651_v22 }
 0x1ab   :  { %3820 = vmatmul.mubr.msk.f32.gmra.mrb[74].mxu1 %vm1055_vm0, %v4350_v63 }
 0x1ac   :  { %3822 = vmatprep.mubr.msk.f32.mxu1 %vm4597_vm2, %v4598_v17  ;;  %v1652_v27 = vmul.f32 %v1399_v23, %v4792_v59  ;;  %v4362_v29 = vpop.eup %4361 }
 0x1ad   :  { %v1403_v10 = vpop.f32.mrb[32].mxu0 }
 0x1ae   :  { %v3654_v5 = vpop.f32.mrb[33].mxu0  ;;  %v1404_v28 = vadd.f32 %v5336_v47, %v1403_v10  ;;  %4367 = vtanh.f32 %v1652_v27 }
 0x1af   :  { %3823 = vmatmul.mubr.msk.f32.gmra.mrb[76].mxu1 %vm1055_vm0, %v4352_v4 }
 0x1b0   :  { %3825 = vmatprep.mubr.msk.f32.mxu1 %vm4597_vm2, %v4598_v17  ;;  %v1653_v32 = vmul.f32 %v1404_v28, %v4792_v59  ;;  %v4364_v34 = vpop.eup %4363 }
 0x1b1   :  { %v1408_v9 = vpop.f32.mrb[34].mxu0 }
 0x1b2   :  { %v3657_v11 = vpop.f32.mrb[35].mxu0  ;;  %v1409_v33 = vadd.f32 %v5336_v47, %v1408_v9  ;;  %4369 = vtanh.f32 %v1653_v32 }
 0x1b3   :  { %3826 = vmatmul.mubr.msk.f32.gmra.mrb[78].mxu1 %vm1055_vm0, %v4354_v8 }
 0x1b4   :  { %3828 = vmatprep.mubr.msk.f32.mxu1 %vm4597_vm2, %v4598_v17  ;;  %v1654_v37 = vmul.f32 %v1409_v33, %v4792_v59  ;;  %v4366_v39 = vpop.eup %4365 }
 0x1b5   :  { %v1413_v15 = vpop.f32.mrb[36].mxu0 }
 0x1b6   :  { %v3660_v55 = vpop.f32.mrb[37].mxu0  ;;  %v1414_v38 = vadd.f32 %v5336_v47, %v1413_v15  ;;  %4371 = vtanh.f32 %v1654_v37 }
 0x1b7   :  { %3829 = vmatmul.mubr.msk.f32.gmra.mrb[80].mxu1 %vm1055_vm0, %v4356_v14 }
 0x1b8   :  { %3831 = vmatprep.mubr.msk.f32.mxu1 %vm4597_vm2, %v4598_v17  ;;  %v1655_v42 = vmul.f32 %v1414_v38, %v4792_v59  ;;  %v4368_v44 = vpop.eup %4367 }
 0x1b9   :  { %v1418_v20 = vpop.f32.mrb[38].mxu0 }
 0x1ba   :  { %v3663_v21 = vpop.f32.mrb[39].mxu0  ;;  %v1419_v43 = vadd.f32 %v5336_v47, %v1418_v20  ;;  %4373 = vtanh.f32 %v1655_v42 }
 0x1bb   :  { %3832 = vmatmul.mubr.msk.f32.gmra.mrb[82].mxu1 %vm1055_vm0, %v4358_v19 }
 0x1bc   :  { %3834 = vmatprep.mubr.msk.f32.mxu1 %vm4597_vm2, %v4598_v17  ;;  %v1656_v49 = vmul.f32 %v1419_v43, %v4792_v59  ;;  %v4370_v6 = vpop.eup %4369 }
 0x1bd   :  { %v1423_v25 = vpop.f32.mrb[40].mxu0 }
 0x1be   :  { %v3666_v26 = vpop.f32.mrb[41].mxu0  ;;  %v1424_v50 = vadd.f32 %v5336_v47, %v1423_v25  ;;  %4375 = vtanh.f32 %v1656_v49 }
 0x1bf   :  { %3835 = vmatmul.mubr.msk.f32.gmra.mrb[84].mxu1 %vm1055_vm0, %v4360_v24 }
 0x1c0   :  { %3837 = vmatprep.mubr.msk.f32.mxu1 %vm4597_vm2, %v4598_v17  ;;  %v1657_v56 = vmul.f32 %v1424_v50, %v4792_v59  ;;  %v4372_v58 = vpop.eup %4371 }
 0x1c1   :  { %v1428_v30 = vpop.f32.mrb[42].mxu0 }
 0x1c2   :  { %v3669_v31 = vpop.f32.mrb[43].mxu0  ;;  %v1429_v57 = vadd.f32 %v5336_v47, %v1428_v30  ;;  %4377 = vtanh.f32 %v1657_v56 }
 0x1c3   :  { %3838 = vmatmul.mubr.msk.f32.gmra.mrb[86].mxu1 %vm1055_vm0, %v4362_v29 }
 0x1c4   :  { %3840 = vmatprep.mubr.msk.f32.mxu1 %vm4597_vm2, %v4598_v17  ;;  %v1658_v62 = vmul.f32 %v1429_v57, %v4792_v59  ;;  %v4374_v0 = vpop.eup %4373 }
 0x1c5   :  { %v1433_v35 = vpop.f32.mrb[44].mxu0 }
 0x1c6   :  { %v3672_v36 = vpop.f32.mrb[45].mxu0  ;;  %v1434_v63 = vadd.f32 %v5336_v47, %v1433_v35  ;;  %4379 = vtanh.f32 %v1658_v62 }
 0x1c7   :  { %3841 = vmatmul.mubr.msk.f32.gmra.mrb[88].mxu1 %vm1055_vm0, %v4364_v34 }
 0x1c8   :  { %3843 = vmatprep.mubr.msk.f32.mxu1 %vm4597_vm2, %v4598_v17  ;;  %v1659_v3 = vmul.f32 %v1434_v63, %v4792_v59  ;;  %v4376_v10 = vpop.eup %4375 }
 0x1c9   :  { %v1438_v40 = vpop.f32.mrb[46].mxu0 }
 0x1ca   :  { %v3675_v41 = vpop.f32.mrb[47].mxu0  ;;  %v1439_v4 = vadd.f32 %v5336_v47, %v1438_v40  ;;  %4381 = vtanh.f32 %v1659_v3 }
 0x1cb   :  { %3844 = vmatmul.mubr.msk.f32.gmra.mrb[90].mxu1 %vm1055_vm0, %v4366_v39 }
 0x1cc   :  { %3846 = vmatprep.mubr.msk.f32.mxu1 %vm4597_vm2, %v4598_v17  ;;  %v1660_v7 = vmul.f32 %v1439_v4, %v4792_v59  ;;  %v4378_v9 = vpop.eup %4377 }
 0x1cd   :  { %v1443_v46 = vpop.f32.mrb[48].mxu0 }
 0x1ce   :  { %v3678_v48 = vpop.f32.mrb[49].mxu0  ;;  %v1444_v8 = vadd.f32 %v5336_v47, %v1443_v46  ;;  %4383 = vtanh.f32 %v1660_v7 }
 0x1cf   :  { %3847 = vmatmul.mubr.msk.f32.gmra.mrb[92].mxu1 %vm1055_vm0, %v4368_v44 }
 0x1d0   :  { %3849 = vmatprep.mubr.msk.f32.mxu1 %vm4597_vm2, %v4598_v17  ;;  %v1661_v13 = vmul.f32 %v1444_v8, %v4792_v59  ;;  %v4380_v15 = vpop.eup %4379 }
 0x1d1   :  { %v1448_v51 = vpop.f32.mrb[50].mxu0 }
 0x1d2   :  { %v5445_v52 = vpop.f32.mrb[0].mxu1  ;;  %v3681_v53 = vpop.f32.mrb[51].mxu0  ;;  %v1449_v14 = vadd.f32 %v5336_v47, %v1448_v51  ;;  %4385 = vtanh.f32 %v1661_v13 }
 0x1d3   :  { %v3702_v54 = vpop.f32.mrb[1].mxu1  ;;  %3850 = vmatmul.mubr.msk.f32.gmra.mrb[94].mxu1 %vm1055_vm0, %v4370_v6  ;;  %v1484_v50 = vadd.f32 %v5336_v47, %v5445_v52 }
 0x1d4   :  { %3852 = vmatprep.mubr.msk.f32.mxu1 %vm4597_vm2, %v4598_v17  ;;  %v1662_v18 = vmul.f32 %v1449_v14, %v4792_v59  ;;  %v4382_v20 = vpop.eup %4381 }
 0x1d5   :  { %v1669_v56 = vmul.f32 %v1484_v50, %v4792_v59 }
 0x1d6   :  { %v1453_v60 = vpop.f32.mrb[52].mxu0  ;;  %4387 = vtanh.f32 %v1662_v18 }
 0x1d7   :  { %v3684_v61 = vpop.f32.mrb[53].mxu0  ;;  %3853 = vmatmul.mubr.msk.f32.gmra.mrb[96].mxu1 %vm1055_vm0, %v4372_v58  ;;  %v1454_v19 = vadd.f32 %v5336_v47, %v1453_v60 }
 0x1d8   :  { %3855 = vmatprep.mubr.msk.f32.mxu1 %vm4597_vm2, %v4598_v17  ;;  %v4384_v25 = vpop.eup %4383 }
 0x1d9   :  { %v1663_v23 = vmul.f32 %v1454_v19, %v4792_v59 }
 0x1da   :  { %v5457_v1 = vpop.f32.mrb[2].mxu1 }
 0x1db   :  { %v3705_v2 = vpop.f32.mrb[3].mxu1  ;;  %3856 = vmatmul.mubr.msk.f32.gmra.mrb[98].mxu1 %vm1055_vm0, %v4374_v0  ;;  %4389 = vtanh.f32 %v1663_v23  ;;  %v1489_v57 = vadd.f32 %v5336_v47, %v5457_v1 }
 0x1dc   :  { %3858 = vmatprep.mubr.msk.f32.mxu1 %vm4597_vm2, %v4598_v17  ;;  %v4386_v30 = vpop.eup %4385 }
 0x1dd   :  { %v1670_v61 = vmul.f32 %v1489_v57, %v4792_v59 }
 0x1de   :  { %v1458_v5 = vpop.f32.mrb[54].mxu0 }
 0x1df   :  { %v3687_v45 = vpop.f32.mrb[55].mxu0  ;;  %3859 = vmatmul.mubr.msk.f32.gmra.mrb[100].mxu1 %vm1055_vm0, %v4376_v10  ;;  %v1459_v24 = vadd.f32 %v5336_v47, %v1458_v5 }
 0x1e0   :  { %3861 = vmatprep.mubr.msk.f32.mxu1 %vm4597_vm2, %v4598_v17  ;;  %v4388_v35 = vpop.eup %4387 }
 0x1e1   :  { %v1664_v28 = vmul.f32 %v1459_v24, %v4792_v59 }
 0x1e2   :  { %v5469_v11 = vpop.f32.mrb[4].mxu1 }
 0x1e3   :  { %v3708_v12 = vpop.f32.mrb[5].mxu1  ;;  %3862 = vmatmul.mubr.msk.f32.gmra.mrb[102].mxu1 %vm1055_vm0, %v4378_v9  ;;  %4391 = vtanh.f32 %v1664_v28  ;;  %v1494_v62 = vadd.f32 %v5336_v47, %v5469_v11 }
 0x1e4   :  { %3864 = vmatprep.mubr.msk.f32.mxu1 %vm4597_vm2, %v4598_v17 }
 0x1e5   :  { %v4390_v40 = vpop.eup %4389  ;;  %v1671_v2 = vmul.f32 %v1494_v62, %v4792_v59 }
 0x1e6   :  { %v1463_v55 = vpop.f32.mrb[56].mxu0 }
 0x1e7   :  { %v3690_v16 = vpop.f32.mrb[57].mxu0  ;;  %3865 = vmatmul.mubr.msk.f32.gmra.mrb[104].mxu1 %vm1055_vm0, %v4380_v15  ;;  %v1464_v29 = vadd.f32 %v5336_v47, %v1463_v55 }
 0x1e8   :  { %3867 = vmatprep.mubr.msk.f32.mxu1 %vm4597_vm2, %v4598_v17 }
 0x1e9   :  { %v1665_v33 = vmul.f32 %v1464_v29, %v4792_v59 }
 0x1ea   :  { %v5481_v21 = vpop.f32.mrb[6].mxu1 }
 0x1eb   :  { %v3711_v22 = vpop.f32.mrb[7].mxu1  ;;  %3868 = vmatmul.mubr.msk.f32.gmra.mrb[106].mxu1 %vm1055_vm0, %v4382_v20  ;;  %4393 = vtanh.f32 %v1665_v33  ;;  %v1499_v3 = vadd.f32 %v5336_v47, %v5481_v21 }
 0x1ec   :  { %3870 = vmatprep.mubr.msk.f32.mxu1 %vm4597_vm2, %v4598_v17 }
 0x1ed   :  { %v4392_v44 = vpop.eup %4391  ;;  %v1672_v45 = vmul.f32 %v1499_v3, %v4792_v59 }
 0x1ee   :  { %v1468_v26 = vpop.f32.mrb[58].mxu0 }
 0x1ef   :  { %v3693_v27 = vpop.f32.mrb[59].mxu0  ;;  %3871 = vmatmul.mubr.msk.f32.gmra.mrb[108].mxu1 %vm1055_vm0, %v4384_v25  ;;  %v1469_v34 = vadd.f32 %v5336_v47, %v1468_v26 }
 0x1f0   :  { %3873 = vmatprep.mubr.msk.f32.mxu1 %vm4597_vm2, %v4598_v17 }
 0x1f1   :  { %v1666_v38 = vmul.f32 %v1469_v34, %v4792_v59 }
 0x1f2   :  { %v1503_v31 = vpop.f32.mrb[8].mxu1 }
 0x1f3   :  { %v3714_v32 = vpop.f32.mrb[9].mxu1  ;;  %3874 = vmatmul.mubr.msk.f32.gmra.mrb[110].mxu1 %vm1055_vm0, %v4386_v30  ;;  %4395 = vtanh.f32 %v1666_v38  ;;  %v1504_v7 = vadd.f32 %v5336_v47, %v1503_v31 }
 0x1f4   :  { %3876 = vmatprep.mubr.msk.f32.mxu1 %vm4597_vm2, %v4598_v17 }
 0x1f5   :  { %v4394_v51 = vpop.eup %4393  ;;  %v1673_v12 = vmul.f32 %v1504_v7, %v4792_v59 }
 0x1f6   :  { %v1473_v36 = vpop.f32.mrb[60].mxu0 }
 0x1f7   :  { %v3696_v37 = vpop.f32.mrb[61].mxu0  ;;  %3877 = vmatmul.mubr.msk.f32.gmra.mrb[112].mxu1 %vm1055_vm0, %v4388_v35  ;;  %v1474_v39 = vadd.f32 %v5336_v47, %v1473_v36 }
 0x1f8   :  { %3879 = vmatprep.mubr.msk.f32.mxu1 %vm4597_vm2, %v4598_v17 }
 0x1f9   :  { %v1667_v43 = vmul.f32 %v1474_v39, %v4792_v59 }
 0x1fa   :  { %v1508_v41 = vpop.f32.mrb[10].mxu1 }
 0x1fb   :  { %v3717_v42 = vpop.f32.mrb[11].mxu1  ;;  %3880 = vmatmul.mubr.msk.f32.gmra.mrb[114].mxu1 %vm1055_vm0, %v4390_v40  ;;  %4397 = vtanh.f32 %v1667_v43  ;;  %v1509_v13 = vadd.f32 %v5336_v47, %v1508_v41 }
 0x1fc   :  { %3882 = vmatprep.mubr.msk.f32.mxu1 %vm4597_vm2, %v4598_v17 }
 0x1fd   :  { %v4396_v52 = vpop.eup %4395  ;;  %v1674_v16 = vmul.f32 %v1509_v13, %v4792_v59 }
 0x1fe   :  { %v1478_v46 = vpop.f32.mrb[62].mxu0 }
 0x1ff   :  { %v1479_v48 = vadd.f32 %v5336_v47, %v1478_v46  ;;  %v3699_v49 = vpop.f32.mrb[63].mxu0  ;;  %3883 = vmatmul.mubr.msk.f32.gmra.mrb[116].mxu1 %vm1055_vm0, %v4392_v44 }
 0x200   :  { %3885 = vmatprep.mubr.msk.f32.mxu1 %vm4597_vm2, %v4598_v17 }
 0x201   :  { %v1668_v6 = vmul.f32 %v1479_v48, %v4792_v59 }
 0x202   :  { %v1513_v53 = vpop.f32.mrb[12].mxu1 }
 0x203   :  { %4399 = vtanh.f32 %v1668_v6  ;;  %v3720_v54 = vpop.f32.mrb[13].mxu1  ;;  %3886 = vmatmul.mubr.msk.f32.gmra.mrb[118].mxu1 %vm1055_vm0, %v4394_v51  ;;  %v1514_v18 = vadd.f32 %v5336_v47, %v1513_v53 }
 0x204   :  { %3888 = vmatprep.mubr.msk.f32.mxu1 %vm4597_vm2, %v4598_v17  ;;  %4401 = vtanh.f32 %v1669_v56 }
 0x205   :  { %v4398_v63 = vpop.eup %4397  ;;  %4403 = vtanh.f32 %v1670_v61  ;;  %v1675_v22 = vmul.f32 %v1514_v18, %v4792_v59 }
 0x206   :  { %v1518_v58 = vpop.f32.mrb[14].mxu1  ;;  %4405 = vtanh.f32 %v1671_v2 }
 0x207   :  { %v3723_v60 = vpop.f32.mrb[15].mxu1  ;;  %3889 = vmatmul.mubr.msk.f32.gmra.mrb[120].mxu1 %vm1055_vm0, %v4396_v52  ;;  %4407 = vtanh.f32 %v1672_v45  ;;  %v1519_v23 = vadd.f32 %v5336_v47, %v1518_v58 }
 0x208   :  { %3891 = vmatprep.mubr.msk.f32.mxu1 %vm4597_vm2, %v4598_v17  ;;  %4409 = vtanh.f32 %v1673_v12 }
 0x209   :  { %4411 = vtanh.f32 %v1674_v16  ;;  %v1676_v27 = vmul.f32 %v1519_v23, %v4792_v59 }
 0x20a   :  { %v1523_v0 = vpop.f32.mrb[16].mxu1  ;;  %4413 = vtanh.f32 %v1675_v22 }
 0x20b   :  { %v3726_v1 = vpop.f32.mrb[17].mxu1  ;;  %3892 = vmatmul.mubr.msk.f32.gmra.mrb[122].mxu1 %vm1055_vm0, %v4398_v63  ;;  %v1524_v28 = vadd.f32 %v5336_v47, %v1523_v0  ;;  %4415 = vtanh.f32 %v1676_v27 }
 0x20c   :  { %3894 = vmatprep.mubr.msk.f32.mxu1 %vm4597_vm2, %v4598_v17 }
 0x20d   :  { %v4400_v4 = vpop.eup %4399  ;;  %v1677_v32 = vmul.f32 %v1524_v28, %v4792_v59 }
 0x20e   :  { %v1528_v10 = vpop.f32.mrb[18].mxu1  ;;  %v4402_v8 = vpop.eup %4401 }
 0x20f   :  { %v3729_v5 = vpop.f32.mrb[19].mxu1  ;;  %3895 = vmatmul.mubr.msk.f32.gmra.mrb[124].mxu1 %vm1055_vm0, %v4400_v4  ;;  %v4404_v14 = vpop.eup %4403  ;;  %v1529_v33 = vadd.f32 %v5336_v47, %v1528_v10  ;;  %4417 = vtanh.f32 %v1677_v32 }
 0x210   :  { %3897 = vmatprep.mubr.msk.f32.mxu1 %vm4597_vm2, %v4598_v17  ;;  %v4406_v19 = vpop.eup %4405 }
 0x211   :  { %v4408_v24 = vpop.eup %4407  ;;  %v1678_v37 = vmul.f32 %v1529_v33, %v4792_v59 }
 0x212   :  { %v1533_v9 = vpop.f32.mrb[20].mxu1  ;;  %v4410_v29 = vpop.eup %4409 }
 0x213   :  { %v3732_v11 = vpop.f32.mrb[21].mxu1  ;;  %3898 = vmatmul.mubr.msk.f32.gmra.mrb[126].mxu1 %vm1055_vm0, %v4402_v8  ;;  %v4412_v34 = vpop.eup %4411  ;;  %v1534_v38 = vadd.f32 %v5336_v47, %v1533_v9  ;;  %4419 = vtanh.f32 %v1678_v37 }
 0x214   :  { %3900 = vmatprep.mubr.msk.f32.mxu1 %vm4597_vm2, %v4598_v17  ;;  %v4414_v39 = vpop.eup %4413 }
 0x215   :  { %v1679_v42 = vmul.f32 %v1534_v38, %v4792_v59  ;;  %v4416_v44 = vpop.eup %4415 }
 0x216   :  { %v1538_v15 = vpop.f32.mrb[22].mxu1 }
 0x217   :  { %v3735_v55 = vpop.f32.mrb[23].mxu1  ;;  %3901 = vmatmul.mubr.msk.f32.gmra.mrb[128].mxu1 %vm1055_vm0, %v4404_v14  ;;  %v1539_v43 = vadd.f32 %v5336_v47, %v1538_v15  ;;  %4421 = vtanh.f32 %v1679_v42 }
 0x218   :  { %3903 = vmatprep.mubr.msk.f32.mxu1 %vm4597_vm2, %v4598_v17 }
 0x219   :  { %v1680_v49 = vmul.f32 %v1539_v43, %v4792_v59  ;;  %v4418_v6 = vpop.eup %4417 }
 0x21a   :  { %v1543_v20 = vpop.f32.mrb[24].mxu1 }
 0x21b   :  { %v3738_v21 = vpop.f32.mrb[25].mxu1  ;;  %3904 = vmatmul.mubr.msk.f32.gmra.mrb[130].mxu1 %vm1055_vm0, %v4406_v19  ;;  %v1544_v50 = vadd.f32 %v5336_v47, %v1543_v20  ;;  %4423 = vtanh.f32 %v1680_v49 }
 0x21c   :  { %3906 = vmatprep.mubr.msk.f32.mxu1 %vm4597_vm2, %v4598_v17 }
 0x21d   :  { %v1681_v54 = vmul.f32 %v1544_v50, %v4792_v59  ;;  %v4420_v57 = vpop.eup %4419 }
 0x21e   :  { %v1548_v25 = vpop.f32.mrb[26].mxu1 }
 0x21f   :  { %v3741_v26 = vpop.f32.mrb[27].mxu1  ;;  %3907 = vmatmul.mubr.msk.f32.gmra.mrb[132].mxu1 %vm1055_vm0, %v4408_v24  ;;  %v1549_v56 = vadd.f32 %v5336_v47, %v1548_v25  ;;  %4425 = vtanh.f32 %v1681_v54 }
 0x220   :  { %3909 = vmatprep.mubr.msk.f32.mxu1 %vm4597_vm2, %v4598_v17 }
 0x221   :  { %v1682_v60 = vmul.f32 %v1549_v56, %v4792_v59  ;;  %v4422_v62 = vpop.eup %4421  ;;  %v5645_v56 = vld [vmem:[%s6387_s4 + $0x2] ss:$0 sm:$0xff] }
 0x222   :  { %v1553_v30 = vpop.f32.mrb[28].mxu1 }
 0x223   :  { %v3744_v31 = vpop.f32.mrb[29].mxu1  ;;  %3910 = vmatmul.mubr.msk.f32.gmra.mrb[134].mxu1 %vm1055_vm0, %v4410_v29  ;;  %v1554_v61 = vadd.f32 %v5336_v47, %v1553_v30  ;;  %4427 = vtanh.f32 %v1682_v60 }
 0x224   :  { %3912 = vmatprep.mubr.msk.f32.mxu1 %vm4597_vm2, %v4598_v17 }
 0x225   :  { %v1683_v1 = vmul.f32 %v1554_v61, %v4792_v59  ;;  %v4424_v3 = vpop.eup %4423 }
 0x226   :  { %v1558_v35 = vpop.f32.mrb[30].mxu1 }
 0x227   :  { %v3747_v36 = vpop.f32.mrb[31].mxu1  ;;  %3913 = vmatmul.mubr.msk.f32.gmra.mrb[136].mxu1 %vm1055_vm0, %v4412_v34  ;;  %v1559_v2 = vadd.f32 %v5336_v47, %v1558_v35  ;;  %4429 = vtanh.f32 %v1683_v1 }
 0x228   :  { %3915 = vmatprep.mubr.msk.f32.mxu1 %vm4597_vm2, %v4598_v17 }
 0x229   :  { %v1684_v5 = vmul.f32 %v1559_v2, %v4792_v59  ;;  %v4426_v7 = vpop.eup %4425 }
 0x22a   :  { %v1563_v40 = vpop.f32.mrb[32].mxu1 }
 0x22b   :  { %v3750_v41 = vpop.f32.mrb[33].mxu1  ;;  %3916 = vmatmul.mubr.msk.f32.gmra.mrb[138].mxu1 %vm1055_vm0, %v4414_v39  ;;  %v1564_v45 = vadd.f32 %v5336_v47, %v1563_v40  ;;  %4431 = vtanh.f32 %v1684_v5 }
 0x22c   :  { %3918 = vmatprep.mubr.msk.f32.mxu1 %vm4597_vm2, %v4598_v17 }
 0x22d   :  { %v1685_v11 = vmul.f32 %v1564_v45, %v4792_v59  ;;  %v4428_v13 = vpop.eup %4427 }
 0x22e   :  { %v1568_v46 = vpop.f32.mrb[34].mxu1 }
 0x22f   :  { %v3753_v48 = vpop.f32.mrb[35].mxu1  ;;  %3919 = vmatmul.mubr.msk.f32.gmra.mrb[140].mxu1 %vm1055_vm0, %v4416_v44  ;;  %v1569_v12 = vadd.f32 %v5336_v47, %v1568_v46  ;;  %4433 = vtanh.f32 %v1685_v11 }
 0x230   :  { %3921 = vmatprep.mubr.msk.f32.mxu1 %vm4597_vm2, %v4598_v17 }
 0x231   :  { %v1686_v55 = vmul.f32 %v1569_v12, %v4792_v59  ;;  %v4430_v18 = vpop.eup %4429 }
 0x232   :  { %v1573_v51 = vpop.f32.mrb[36].mxu1 }
 0x233   :  { %v3756_v53 = vpop.f32.mrb[37].mxu1  ;;  %3922 = vmatmul.mubr.msk.f32.gmra.mrb[142].mxu1 %vm1055_vm0, %v4418_v6  ;;  %v1574_v16 = vadd.f32 %v5336_v47, %v1573_v51  ;;  %4435 = vtanh.f32 %v1686_v55 }
 0x234   :  { %3924 = vmatprep.mubr.msk.f32.mxu1 %vm4597_vm2, %v4598_v17 }
 0x235   :  { %v1687_v21 = vmul.f32 %v1574_v16, %v4792_v59  ;;  %v4432_v23 = vpop.eup %4431 }
 0x236   :  { %v1578_v52 = vpop.f32.mrb[38].mxu1 }
 0x237   :  { %v3759_v58 = vpop.f32.mrb[39].mxu1  ;;  %3925 = vmatmul.mubr.msk.f32.gmra.mrb[144].mxu1 %vm1055_vm0, %v4420_v57  ;;  %v1579_v22 = vadd.f32 %v5336_v47, %v1578_v52  ;;  %4437 = vtanh.f32 %v1687_v21 }
 0x238   :  { %3927 = vmatprep.mubr.msk.f32.mxu1 %vm4597_vm2, %v4598_v17 }
 0x239   :  { %v1688_v26 = vmul.f32 %v1579_v22, %v4792_v59  ;;  %v4434_v28 = vpop.eup %4433 }
 0x23a   :  { %v1583_v63 = vpop.f32.mrb[40].mxu1 }
 0x23b   :  { %v3762_v0 = vpop.f32.mrb[41].mxu1  ;;  %3928 = vmatmul.mubr.msk.f32.gmra.mrb[146].mxu1 %vm1055_vm0, %v4422_v62  ;;  %v1584_v27 = vadd.f32 %v5336_v47, %v1583_v63  ;;  %4439 = vtanh.f32 %v1688_v26  ;;  %v4592_v26 = vld [vmem:[%s6387_s4 + $0x1] ss:$0 sm:$0xff] }
 0x23c   :  { %3930 = vmatprep.mubr.msk.f32.mxu1 %vm4597_vm2, %v4598_v17 }
 0x23d   :  { %v1689_v31 = vmul.f32 %v1584_v27, %v4792_v59  ;;  %v4436_v33 = vpop.eup %4435 }
 0x23e   :  { %v1588_v4 = vpop.f32.mrb[42].mxu1 }
 0x23f   :  { %v3765_v10 = vpop.f32.mrb[43].mxu1  ;;  %3931 = vmatmul.mubr.msk.f32.gmra.mrb[148].mxu1 %vm1055_vm0, %v4424_v3  ;;  %v1589_v32 = vadd.f32 %v5336_v47, %v1588_v4  ;;  %4441 = vtanh.f32 %v1689_v31 }
 0x240   :  { %3933 = vmatprep.mubr.msk.f32.mxu1 %vm4597_vm2, %v4598_v17 }
 0x241   :  { %v1690_v36 = vmul.f32 %v1589_v32, %v4792_v59  ;;  %v4438_v38 = vpop.eup %4437 }
 0x242   :  { %v1593_v8 = vpop.f32.mrb[44].mxu1 }
 0x243   :  { %v3768_v9 = vpop.f32.mrb[45].mxu1  ;;  %3934 = vmatmul.mubr.msk.f32.gmra.mrb[150].mxu1 %vm1055_vm0, %v4426_v7  ;;  %v1594_v37 = vadd.f32 %v5336_v47, %v1593_v8  ;;  %4443 = vtanh.f32 %v1690_v36 }
 0x244   :  { %3936 = vmatprep.mubr.msk.f32.mxu1 %vm4597_vm2, %v4598_v17 }
 0x245   :  { %v1691_v41 = vmul.f32 %v1594_v37, %v4792_v59  ;;  %v4440_v43 = vpop.eup %4439 }
 0x246   :  { %v1598_v14 = vpop.f32.mrb[46].mxu1 }
 0x247   :  { %v3771_v15 = vpop.f32.mrb[47].mxu1  ;;  %3937 = vmatmul.mubr.msk.f32.gmra.mrb[152].mxu1 %vm1055_vm0, %v4428_v13  ;;  %v1599_v42 = vadd.f32 %v5336_v47, %v1598_v14  ;;  %4445 = vtanh.f32 %v1691_v41 }
 0x248   :  { %3939 = vmatprep.mubr.msk.f32.mxu1 %vm4597_vm2, %v4598_v17 }
 0x249   :  { %v1692_v48 = vmul.f32 %v1599_v42, %v4792_v59  ;;  %v4442_v50 = vpop.eup %4441 }
 0x24a   :  { %v1603_v19 = vpop.f32.mrb[48].mxu1 }
 0x24b   :  { %v3774_v20 = vpop.f32.mrb[49].mxu1  ;;  %3940 = vmatmul.mubr.msk.f32.gmra.mrb[154].mxu1 %vm1055_vm0, %v4430_v18  ;;  %v1604_v49 = vadd.f32 %v5336_v47, %v1603_v19  ;;  %4447 = vtanh.f32 %v1692_v48 }
 0x24c   :  { %3942 = vmatprep.mubr.msk.f32.mxu1 %vm4597_vm2, %v4598_v17 }
 0x24d   :  { %v1693_v53 = vmul.f32 %v1604_v49, %v4792_v59  ;;  %v4444_v57 = vpop.eup %4443 }
 0x24e   :  { %v1608_v24 = vpop.f32.mrb[50].mxu1 }
 0x24f   :  { %v3777_v25 = vpop.f32.mrb[51].mxu1  ;;  %3943 = vmatmul.mubr.msk.f32.gmra.mrb[156].mxu1 %vm1055_vm0, %v4432_v23  ;;  %v1609_v54 = vadd.f32 %v5336_v47, %v1608_v24  ;;  %4449 = vtanh.f32 %v1693_v53 }
 0x250   :  { %3945 = vmatprep.mubr.msk.f32.mxu1 %vm4597_vm2, %v4598_v17 }
 0x251   :  { %v1694_v61 = vmul.f32 %v1609_v54, %v4792_v59  ;;  %v4446_v0 = vpop.eup %4445 }
 0x252   :  { %v1613_v29 = vpop.f32.mrb[52].mxu1 }
 0x253   :  { %v3780_v30 = vpop.f32.mrb[53].mxu1  ;;  %3946 = vmatmul.mubr.msk.f32.gmra.mrb[158].mxu1 %vm1055_vm0, %v4434_v28  ;;  %v1614_v62 = vadd.f32 %v5336_v47, %v1613_v29 }
 0x254   :  { %3948 = vmatprep.mubr.msk.f32.mxu1 %vm4597_vm2, %v4598_v17 }
 0x255   :  { %v1695_v4 = vmul.f32 %v1614_v62, %v4792_v59  ;;  %v4448_v45 = vpop.eup %4447 }
 0x256   :  { %v1618_v34 = vpop.f32.mrb[54].mxu1 }
 0x257   :  { %v3783_v35 = vpop.f32.mrb[55].mxu1  ;;  %3949 = vmatmul.mubr.msk.f32.gmra.mrb[160].mxu1 %vm1055_vm0, %v4436_v33  ;;  %v1619_v10 = vadd.f32 %v5336_v47, %v1618_v34 }
 0x258   :  { %3951 = vmatprep.mubr.msk.f32.mxu1 %vm4597_vm2, %v4598_v17 }
 0x259   :  { %v1696_v11 = vmul.f32 %v1619_v10, %v4792_v59  ;;  %v4450_v14 = vpop.eup %4449 }
 0x25a   :  { %v1623_v39 = vpop.f32.mrb[56].mxu1 }
 0x25b   :  { %v3786_v40 = vpop.f32.mrb[57].mxu1  ;;  %3952 = vmatmul.mubr.msk.f32.gmra.mrb[162].mxu1 %vm1055_vm0, %v4438_v38  ;;  %v1624_v12 = vadd.f32 %v5336_v47, %v1623_v39 }
 0x25c   :  { %3954 = vmatprep.mubr.msk.f32.mxu1 %vm4597_vm2, %v4598_v17 }
 0x25d   :  { %v1697_v18 = vmul.f32 %v1624_v12, %v4792_v59 }
 0x25e   :  { %v1628_v44 = vpop.f32.mrb[58].mxu1 }
 0x25f   :  { %v3789_v46 = vpop.f32.mrb[59].mxu1  ;;  %3955 = vmatmul.mubr.msk.f32.gmra.mrb[164].mxu1 %vm1055_vm0, %v4440_v43  ;;  %v1629_v19 = vadd.f32 %v5336_v47, %v1628_v44 }
 0x260   :  { %3957 = vmatprep.mubr.msk.f32.mxu1 %vm4597_vm2, %v4598_v17 }
 0x261   :  { %v1698_v47 = vmul.f32 %v1629_v19, %v4792_v59 }
 0x262   :  { %v5637_v6 = vpop.f32.mrb[60].mxu1 }
 0x263   :  { %v3792_v51 = vpop.f32.mrb[61].mxu1  ;;  %3958 = vmatmul.mubr.msk.f32.gmra.mrb[166].mxu1 %vm1055_vm0, %v4442_v50  ;;  %v1634_v27 = vadd.f32 %v4592_v26, %v5637_v6 }
 0x264   :  { %3960 = vmatprep.mubr.msk.f32.mxu1 %vm4597_vm2, %v4598_v17 }
 0x265   :  { %v1699_v34 = vmul.f32 %v1634_v27, %v4792_v59 }
 0x266   :  { %v2040_v52 = vpop.f32.mrb[62].mxu1 }
 0x267   :  { %v2041_v58 = vadd.f32 %v5645_v56, %v2040_v52  ;;  %v3803_v60 = vpop.f32.mrb[63].mxu1  ;;  %3961 = vmatmul.mubr.msk.f32.gmra.mrb[168].mxu1 %vm1055_vm0, %v4444_v57 }
 0x268   :  { %3963 = vmatprep.mubr.msk.f32.mxu1 %vm4597_vm2, %v4598_v17 }
 0x269   :  { %v2354_v63 = vmul.f32 %v2041_v58, %v4792_v59 }
 0x26a   :  { %v2045_v1 = vpop.f32.mrb[64].mxu1 }
 0x26b   :  { %4451 = vtanh.f32 %v2354_v63  ;;  %v2046_v2 = vadd.f32 %v5645_v56, %v2045_v1  ;;  %v3806_v3 = vpop.f32.mrb[65].mxu1  ;;  %3964 = vmatmul.mubr.msk.f32.gmra.mrb[170].mxu1 %vm1055_vm0, %v4446_v0 }
 0x26c   :  { %4453 = vtanh.f32 %v1694_v61  ;;  %3966 = vmatprep.mubr.msk.f32.mxu1 %vm4597_vm2, %v4598_v17 }
 0x26d   :  { %v2355_v5 = vmul.f32 %v2046_v2, %v4792_v59 }
 0x26e   :  { %v2050_v7 = vpop.f32.mrb[66].mxu1 }
 0x26f   :  { %4455 = vtanh.f32 %v2355_v5  ;;  %v2051_v8 = vadd.f32 %v5645_v56, %v2050_v7  ;;  %v3809_v9 = vpop.f32.mrb[67].mxu1  ;;  %3967 = vmatmul.mubr.msk.f32.gmra.mrb[172].mxu1 %vm1055_vm0, %v4448_v45 }
 0x270   :  { %4457 = vtanh.f32 %v1695_v4  ;;  %3969 = vmatprep.mubr.msk.f32.mxu1 %vm4597_vm2, %v4598_v17 }
 0x271   :  { %v2356_v13 = vmul.f32 %v2051_v8, %v4792_v59 }
 0x272   :  { %v2055_v15 = vpop.f32.mrb[68].mxu1 }
 0x273   :  { %4459 = vtanh.f32 %v2356_v13  ;;  %v2056_v55 = vadd.f32 %v5645_v56, %v2055_v15  ;;  %v3812_v16 = vpop.f32.mrb[69].mxu1  ;;  %3970 = vmatmul.mubr.msk.f32.gmra.mrb[174].mxu1 %vm1055_vm0, %v4450_v14 }
 0x274   :  { %4461 = vtanh.f32 %v1696_v11  ;;  %3972 = vmatprep.mubr.msk.f32.mxu1 %vm4597_vm2, %v4598_v17 }
 0x275   :  { %v4452_v20 = vpop.eup %4451  ;;  %v2357_v21 = vmul.f32 %v2056_v55, %v4792_v59 }
 0x276   :  { %v4454_v22 = vpop.eup %4453  ;;  %v2060_v23 = vpop.f32.mrb[70].mxu1  ;;  %3993 = vmatmul.mubr.msk.f32.vlgmr.msra.gmra.mrb[64].mxu0 %vm1055_vm0, %v4452_v20 }
 0x277   :  { %4463 = vtanh.f32 %v2357_v21  ;;  %v2061_v24 = vadd.f32 %v5645_v56, %v2060_v23  ;;  %v3815_v25 = vpop.f32.mrb[71].mxu1  ;;  %3973 = vmatmul.mubr.msk.f32.gmra.mrb[176].mxu1 %vm1055_vm0, %v4454_v22  ;;  %3995 = vmatprep.mubr.msk.f32.mxu0 %vm4597_vm2, %v4598_v17 }
 0x278   :  { %4465 = vtanh.f32 %v1697_v18  ;;  %3975 = vmatprep.mubr.msk.f32.mxu1 %vm4597_vm2, %v4598_v17 }
 0x279   :  { %v4456_v28 = vpop.eup %4455  ;;  %v2358_v29 = vmul.f32 %v2061_v24, %v4792_v59 }
 0x27a   :  { %v4458_v30 = vpop.eup %4457  ;;  %v2065_v31 = vpop.f32.mrb[72].mxu1  ;;  %3996 = vmatmul.mubr.msk.f32.gmra.mrb[66].mxu0 %vm1055_vm0, %v4456_v28 }
 0x27b   :  { %4467 = vtanh.f32 %v2358_v29  ;;  %v2066_v32 = vadd.f32 %v5645_v56, %v2065_v31  ;;  %v3818_v33 = vpop.f32.mrb[73].mxu1  ;;  %3976 = vmatmul.mubr.msk.f32.gmra.mrb[178].mxu1 %vm1055_vm0, %v4458_v30  ;;  %3998 = vmatprep.mubr.msk.f32.mxu0 %vm4597_vm2, %v4598_v17 }
 0x27c   :  { %4469 = vtanh.f32 %v1698_v47  ;;  %3978 = vmatprep.mubr.msk.f32.mxu1 %vm4597_vm2, %v4598_v17 }
 0x27d   :  { %v4460_v35 = vpop.eup %4459  ;;  %v2359_v36 = vmul.f32 %v2066_v32, %v4792_v59 }
 0x27e   :  { %v4462_v37 = vpop.eup %4461  ;;  %v2070_v38 = vpop.f32.mrb[74].mxu1  ;;  %3999 = vmatmul.mubr.msk.f32.gmra.mrb[68].mxu0 %vm1055_vm0, %v4460_v35 }
 0x27f   :  { %4471 = vtanh.f32 %v2359_v36  ;;  %v2071_v39 = vadd.f32 %v5645_v56, %v2070_v38  ;;  %v3821_v40 = vpop.f32.mrb[75].mxu1  ;;  %3979 = vmatmul.mubr.msk.f32.gmra.mrb[180].mxu1 %vm1055_vm0, %v4462_v37  ;;  %4001 = vmatprep.mubr.msk.f32.mxu0 %vm4597_vm2, %v4598_v17 }
 0x280   :  { %4473 = vtanh.f32 %v1699_v34  ;;  %3981 = vmatprep.mubr.msk.f32.mxu1 %vm4597_vm2, %v4598_v17 }
 0x281   :  { %v4464_v41 = vpop.eup %4463  ;;  %v2360_v42 = vmul.f32 %v2071_v39, %v4792_v59 }
 0x282   :  { %v4466_v43 = vpop.eup %4465  ;;  %v2075_v44 = vpop.f32.mrb[76].mxu1  ;;  %4002 = vmatmul.mubr.msk.f32.gmra.mrb[70].mxu0 %vm1055_vm0, %v4464_v41 }
 0x283   :  { %4475 = vtanh.f32 %v2360_v42  ;;  %v2076_v46 = vadd.f32 %v5645_v56, %v2075_v44  ;;  %v3824_v48 = vpop.f32.mrb[77].mxu1  ;;  %3982 = vmatmul.mubr.msk.f32.gmra.mrb[182].mxu1 %vm1055_vm0, %v4466_v43  ;;  %4004 = vmatprep.mubr.msk.f32.mxu0 %vm4597_vm2, %v4598_v17 }
 0x284   :  { %3984 = vmatprep.mubr.msk.f32.mxu1 %vm4597_vm2, %v4598_v17 }
 0x285   :  { %v4468_v49 = vpop.eup %4467  ;;  %v2361_v50 = vmul.f32 %v2076_v46, %v4792_v59 }
 0x286   :  { %v4470_v6 = vpop.eup %4469  ;;  %v2080_v51 = vpop.f32.mrb[78].mxu1  ;;  %4005 = vmatmul.mubr.msk.f32.gmra.mrb[72].mxu0 %vm1055_vm0, %v4468_v49 }
 0x287   :  { %4477 = vtanh.f32 %v2361_v50  ;;  %v2081_v53 = vadd.f32 %v5645_v56, %v2080_v51  ;;  %v3827_v54 = vpop.f32.mrb[79].mxu1  ;;  %3985 = vmatmul.mubr.msk.f32.gmra.mrb[184].mxu1 %vm1055_vm0, %v4470_v6  ;;  %4007 = vmatprep.mubr.msk.f32.mxu0 %vm4597_vm2, %v4598_v17 }
 0x288   :  { %3987 = vmatprep.mubr.msk.f32.mxu1 %vm4597_vm2, %v4598_v17 }
 0x289   :  { %v4472_v57 = vpop.eup %4471  ;;  %v2362_v52 = vmul.f32 %v2081_v53, %v4792_v59 }
 0x28a   :  { %v4474_v58 = vpop.eup %4473  ;;  %v2085_v60 = vpop.f32.mrb[80].mxu1  ;;  %4008 = vmatmul.mubr.msk.f32.gmra.mrb[74].mxu0 %vm1055_vm0, %v4472_v57 }
 0x28b   :  { %4479 = vtanh.f32 %v2362_v52  ;;  %v2086_v61 = vadd.f32 %v5645_v56, %v2085_v60  ;;  %v3830_v62 = vpop.f32.mrb[81].mxu1  ;;  %3988 = vmatmul.mubr.msk.f32.gmra.mrb[186].mxu1 %vm1055_vm0, %v4474_v58  ;;  %4010 = vmatprep.mubr.msk.f32.mxu0 %vm4597_vm2, %v4598_v17 }
 0x28d   :  { %v4476_v63 = vpop.eup %4475  ;;  %v2363_v0 = vmul.f32 %v2086_v61, %v4792_v59 }
 0x28e   :  { %v2090_v1 = vpop.f32.mrb[82].mxu1  ;;  %4011 = vmatmul.mubr.msk.f32.gmra.mrb[76].mxu0 %vm1055_vm0, %v4476_v63 }
 0x28f   :  { %4481 = vtanh.f32 %v2363_v0  ;;  %v2091_v2 = vadd.f32 %v5645_v56, %v2090_v1  ;;  %v3833_v3 = vpop.f32.mrb[83].mxu1  ;;  %4013 = vmatprep.mubr.msk.f32.mxu0 %vm4597_vm2, %v4598_v17 }
 0x291   :  { %v4478_v4 = vpop.eup %4477  ;;  %v2364_v10 = vmul.f32 %v2091_v2, %v4792_v59 }
 0x292   :  { %v2095_v5 = vpop.f32.mrb[84].mxu1  ;;  %4014 = vmatmul.mubr.msk.f32.gmra.mrb[78].mxu0 %vm1055_vm0, %v4478_v4 }
 0x293   :  { %4483 = vtanh.f32 %v2364_v10  ;;  %v2096_v45 = vadd.f32 %v5645_v56, %v2095_v5  ;;  %v3836_v7 = vpop.f32.mrb[85].mxu1  ;;  %4016 = vmatprep.mubr.msk.f32.mxu0 %vm4597_vm2, %v4598_v17 }
 0x295   :  { %v4480_v8 = vpop.eup %4479  ;;  %v2365_v9 = vmul.f32 %v2096_v45, %v4792_v59 }
 0x296   :  { %v2100_v11 = vpop.f32.mrb[86].mxu1  ;;  %4017 = vmatmul.mubr.msk.f32.gmra.mrb[80].mxu0 %vm1055_vm0, %v4480_v8 }
 0x297   :  { %4485 = vtanh.f32 %v2365_v9  ;;  %v2101_v12 = vadd.f32 %v5645_v56, %v2100_v11  ;;  %v3839_v13 = vpop.f32.mrb[87].mxu1  ;;  %4019 = vmatprep.mubr.msk.f32.mxu0 %vm4597_vm2, %v4598_v17 }
 0x299   :  { %v4482_v14 = vpop.eup %4481  ;;  %v2366_v15 = vmul.f32 %v2101_v12, %v4792_v59 }
 0x29a   :  { %v2105_v55 = vpop.f32.mrb[88].mxu1  ;;  %4020 = vmatmul.mubr.msk.f32.gmra.mrb[82].mxu0 %vm1055_vm0, %v4482_v14 }
 0x29b   :  { %4487 = vtanh.f32 %v2366_v15  ;;  %v2106_v16 = vadd.f32 %v5645_v56, %v2105_v55  ;;  %v3842_v18 = vpop.f32.mrb[89].mxu1  ;;  %4022 = vmatprep.mubr.msk.f32.mxu0 %vm4597_vm2, %v4598_v17 }
 0x29d   :  { %v4484_v19 = vpop.eup %4483  ;;  %v2367_v20 = vmul.f32 %v2106_v16, %v4792_v59 }
 0x29e   :  { %v2110_v21 = vpop.f32.mrb[90].mxu1  ;;  %4023 = vmatmul.mubr.msk.f32.gmra.mrb[84].mxu0 %vm1055_vm0, %v4484_v19 }
 0x29f   :  { %4489 = vtanh.f32 %v2367_v20  ;;  %v2111_v22 = vadd.f32 %v5645_v56, %v2110_v21  ;;  %v3845_v23 = vpop.f32.mrb[91].mxu1  ;;  %4025 = vmatprep.mubr.msk.f32.mxu0 %vm4597_vm2, %v4598_v17 }
 0x2a1   :  { %v4486_v24 = vpop.eup %4485  ;;  %v2368_v25 = vmul.f32 %v2111_v22, %v4792_v59 }
 0x2a2   :  { %v2115_v47 = vpop.f32.mrb[92].mxu1  ;;  %4026 = vmatmul.mubr.msk.f32.gmra.mrb[86].mxu0 %vm1055_vm0, %v4486_v24 }
 0x2a3   :  { %4491 = vtanh.f32 %v2368_v25  ;;  %v2116_v26 = vadd.f32 %v5645_v56, %v2115_v47  ;;  %v3848_v27 = vpop.f32.mrb[93].mxu1  ;;  %4028 = vmatprep.mubr.msk.f32.mxu0 %vm4597_vm2, %v4598_v17 }
 0x2a5   :  { %v4488_v28 = vpop.eup %4487  ;;  %v2369_v29 = vmul.f32 %v2116_v26, %v4792_v59 }
 0x2a6   :  { %v2120_v30 = vpop.f32.mrb[94].mxu1  ;;  %4029 = vmatmul.mubr.msk.f32.gmra.mrb[88].mxu0 %vm1055_vm0, %v4488_v28 }
 0x2a7   :  { %4493 = vtanh.f32 %v2369_v29  ;;  %v2121_v31 = vadd.f32 %v5645_v56, %v2120_v30  ;;  %v3851_v32 = vpop.f32.mrb[95].mxu1  ;;  %4031 = vmatprep.mubr.msk.f32.mxu0 %vm4597_vm2, %v4598_v17 }
 0x2a9   :  { %v4490_v33 = vpop.eup %4489  ;;  %v2370_v34 = vmul.f32 %v2121_v31, %v4792_v59 }
 0x2aa   :  { %v2125_v35 = vpop.f32.mrb[96].mxu1  ;;  %4032 = vmatmul.mubr.msk.f32.gmra.mrb[90].mxu0 %vm1055_vm0, %v4490_v33 }
 0x2ab   :  { %4495 = vtanh.f32 %v2370_v34  ;;  %v2126_v36 = vadd.f32 %v5645_v56, %v2125_v35  ;;  %v3854_v37 = vpop.f32.mrb[97].mxu1  ;;  %4034 = vmatprep.mubr.msk.f32.mxu0 %vm4597_vm2, %v4598_v17 }
 0x2ad   :  { %v4492_v38 = vpop.eup %4491  ;;  %v2371_v39 = vmul.f32 %v2126_v36, %v4792_v59 }
 0x2ae   :  { %v2130_v40 = vpop.f32.mrb[98].mxu1  ;;  %4035 = vmatmul.mubr.msk.f32.gmra.mrb[92].mxu0 %vm1055_vm0, %v4492_v38 }
 0x2af   :  { %4497 = vtanh.f32 %v2371_v39  ;;  %v2131_v41 = vadd.f32 %v5645_v56, %v2130_v40  ;;  %v3857_v42 = vpop.f32.mrb[99].mxu1  ;;  %4037 = vmatprep.mubr.msk.f32.mxu0 %vm4597_vm2, %v4598_v17 }
 0x2b1   :  { %v4494_v43 = vpop.eup %4493  ;;  %v2372_v44 = vmul.f32 %v2131_v41, %v4792_v59 }
 0x2b2   :  { %v2135_v46 = vpop.f32.mrb[100].mxu1  ;;  %4038 = vmatmul.mubr.msk.f32.gmra.mrb[94].mxu0 %vm1055_vm0, %v4494_v43 }
 0x2b3   :  { %4499 = vtanh.f32 %v2372_v44  ;;  %v2136_v48 = vadd.f32 %v5645_v56, %v2135_v46  ;;  %v3860_v49 = vpop.f32.mrb[101].mxu1  ;;  %4040 = vmatprep.mubr.msk.f32.mxu0 %vm4597_vm2, %v4598_v17 }
 0x2b5   :  { %v4496_v50 = vpop.eup %4495  ;;  %v2373_v6 = vmul.f32 %v2136_v48, %v4792_v59 }
 0x2b6   :  { %v2140_v51 = vpop.f32.mrb[102].mxu1  ;;  %4041 = vmatmul.mubr.msk.f32.gmra.mrb[96].mxu0 %vm1055_vm0, %v4496_v50 }
 0x2b7   :  { %4501 = vtanh.f32 %v2373_v6  ;;  %v2141_v53 = vadd.f32 %v5645_v56, %v2140_v51  ;;  %v3863_v54 = vpop.f32.mrb[103].mxu1  ;;  %4043 = vmatprep.mubr.msk.f32.mxu0 %vm4597_vm2, %v4598_v17 }
 0x2b9   :  { %v4498_v57 = vpop.eup %4497  ;;  %v2374_v52 = vmul.f32 %v2141_v53, %v4792_v59 }
 0x2ba   :  { %v2145_v58 = vpop.f32.mrb[104].mxu1  ;;  %4044 = vmatmul.mubr.msk.f32.gmra.mrb[98].mxu0 %vm1055_vm0, %v4498_v57 }
 0x2bb   :  { %4503 = vtanh.f32 %v2374_v52  ;;  %v2146_v60 = vadd.f32 %v5645_v56, %v2145_v58  ;;  %v3866_v61 = vpop.f32.mrb[105].mxu1  ;;  %4046 = vmatprep.mubr.msk.f32.mxu0 %vm4597_vm2, %v4598_v17 }
 0x2bd   :  { %v4500_v62 = vpop.eup %4499  ;;  %v2375_v63 = vmul.f32 %v2146_v60, %v4792_v59 }
 0x2be   :  { %v2150_v0 = vpop.f32.mrb[106].mxu1  ;;  %4047 = vmatmul.mubr.msk.f32.gmra.mrb[100].mxu0 %vm1055_vm0, %v4500_v62 }
 0x2bf   :  { %4505 = vtanh.f32 %v2375_v63  ;;  %v2151_v1 = vadd.f32 %v5645_v56, %v2150_v0  ;;  %v3869_v2 = vpop.f32.mrb[107].mxu1  ;;  %4049 = vmatprep.mubr.msk.f32.mxu0 %vm4597_vm2, %v4598_v17 }
 0x2c1   :  { %v4502_v3 = vpop.eup %4501  ;;  %v2376_v4 = vmul.f32 %v2151_v1, %v4792_v59 }
 0x2c2   :  { %v2155_v10 = vpop.f32.mrb[108].mxu1  ;;  %4050 = vmatmul.mubr.msk.f32.gmra.mrb[102].mxu0 %vm1055_vm0, %v4502_v3 }
 0x2c3   :  { %4507 = vtanh.f32 %v2376_v4  ;;  %v2156_v5 = vadd.f32 %v5645_v56, %v2155_v10  ;;  %v3872_v45 = vpop.f32.mrb[109].mxu1  ;;  %4052 = vmatprep.mubr.msk.f32.mxu0 %vm4597_vm2, %v4598_v17 }
 0x2c5   :  { %v4504_v7 = vpop.eup %4503  ;;  %v2377_v8 = vmul.f32 %v2156_v5, %v4792_v59 }
 0x2c6   :  { %v2160_v9 = vpop.f32.mrb[110].mxu1  ;;  %4053 = vmatmul.mubr.msk.f32.gmra.mrb[104].mxu0 %vm1055_vm0, %v4504_v7 }
 0x2c7   :  { %4509 = vtanh.f32 %v2377_v8  ;;  %v2161_v11 = vadd.f32 %v5645_v56, %v2160_v9  ;;  %v3875_v12 = vpop.f32.mrb[111].mxu1  ;;  %4055 = vmatprep.mubr.msk.f32.mxu0 %vm4597_vm2, %v4598_v17 }
 0x2c9   :  { %v4506_v13 = vpop.eup %4505  ;;  %v2378_v14 = vmul.f32 %v2161_v11, %v4792_v59 }
 0x2ca   :  { %v2165_v15 = vpop.f32.mrb[112].mxu1  ;;  %4056 = vmatmul.mubr.msk.f32.gmra.mrb[106].mxu0 %vm1055_vm0, %v4506_v13 }
 0x2cb   :  { %4511 = vtanh.f32 %v2378_v14  ;;  %v2166_v55 = vadd.f32 %v5645_v56, %v2165_v15  ;;  %v3878_v16 = vpop.f32.mrb[113].mxu1  ;;  %4058 = vmatprep.mubr.msk.f32.mxu0 %vm4597_vm2, %v4598_v17 }
 0x2cd   :  { %v4508_v18 = vpop.eup %4507  ;;  %v2379_v19 = vmul.f32 %v2166_v55, %v4792_v59 }
 0x2ce   :  { %v2170_v20 = vpop.f32.mrb[114].mxu1  ;;  %4059 = vmatmul.mubr.msk.f32.gmra.mrb[108].mxu0 %vm1055_vm0, %v4508_v18 }
 0x2cf   :  { %4513 = vtanh.f32 %v2379_v19  ;;  %v2171_v21 = vadd.f32 %v5645_v56, %v2170_v20  ;;  %v3881_v22 = vpop.f32.mrb[115].mxu1  ;;  %4061 = vmatprep.mubr.msk.f32.mxu0 %vm4597_vm2, %v4598_v17 }
 0x2d1   :  { %v4510_v23 = vpop.eup %4509  ;;  %v2380_v24 = vmul.f32 %v2171_v21, %v4792_v59 }
 0x2d2   :  { %v2175_v25 = vpop.f32.mrb[116].mxu1  ;;  %4062 = vmatmul.mubr.msk.f32.gmra.mrb[110].mxu0 %vm1055_vm0, %v4510_v23 }
 0x2d3   :  { %4515 = vtanh.f32 %v2380_v24  ;;  %v2176_v47 = vadd.f32 %v5645_v56, %v2175_v25  ;;  %v3884_v26 = vpop.f32.mrb[117].mxu1  ;;  %4064 = vmatprep.mubr.msk.f32.mxu0 %vm4597_vm2, %v4598_v17 }
 0x2d5   :  { %v4512_v27 = vpop.eup %4511  ;;  %v2381_v28 = vmul.f32 %v2176_v47, %v4792_v59 }
 0x2d6   :  { %v2180_v29 = vpop.f32.mrb[118].mxu1  ;;  %4065 = vmatmul.mubr.msk.f32.gmra.mrb[112].mxu0 %vm1055_vm0, %v4512_v27 }
 0x2d7   :  { %4517 = vtanh.f32 %v2381_v28  ;;  %v2181_v30 = vadd.f32 %v5645_v56, %v2180_v29  ;;  %v3887_v31 = vpop.f32.mrb[119].mxu1  ;;  %4067 = vmatprep.mubr.msk.f32.mxu0 %vm4597_vm2, %v4598_v17 }
 0x2d9   :  { %v4514_v32 = vpop.eup %4513  ;;  %v2382_v33 = vmul.f32 %v2181_v30, %v4792_v59 }
 0x2da   :  { %v2185_v34 = vpop.f32.mrb[120].mxu1  ;;  %4068 = vmatmul.mubr.msk.f32.gmra.mrb[114].mxu0 %vm1055_vm0, %v4514_v32 }
 0x2db   :  { %4519 = vtanh.f32 %v2382_v33  ;;  %v2186_v35 = vadd.f32 %v5645_v56, %v2185_v34  ;;  %v3890_v36 = vpop.f32.mrb[121].mxu1  ;;  %4070 = vmatprep.mubr.msk.f32.mxu0 %vm4597_vm2, %v4598_v17 }
 0x2dd   :  { %v4516_v37 = vpop.eup %4515  ;;  %v2383_v38 = vmul.f32 %v2186_v35, %v4792_v59 }
 0x2de   :  { %v2190_v39 = vpop.f32.mrb[122].mxu1  ;;  %4071 = vmatmul.mubr.msk.f32.gmra.mrb[116].mxu0 %vm1055_vm0, %v4516_v37 }
 0x2df   :  { %4521 = vtanh.f32 %v2383_v38  ;;  %v2191_v40 = vadd.f32 %v5645_v56, %v2190_v39  ;;  %v3893_v41 = vpop.f32.mrb[123].mxu1  ;;  %4073 = vmatprep.mubr.msk.f32.mxu0 %vm4597_vm2, %v4598_v17 }
 0x2e1   :  { %v4518_v42 = vpop.eup %4517  ;;  %v2384_v43 = vmul.f32 %v2191_v40, %v4792_v59 }
 0x2e2   :  { %v2195_v44 = vpop.f32.mrb[124].mxu1  ;;  %4074 = vmatmul.mubr.msk.f32.gmra.mrb[118].mxu0 %vm1055_vm0, %v4518_v42 }
 0x2e3   :  { %4523 = vtanh.f32 %v2384_v43  ;;  %v2196_v46 = vadd.f32 %v5645_v56, %v2195_v44  ;;  %v3896_v48 = vpop.f32.mrb[125].mxu1  ;;  %4076 = vmatprep.mubr.msk.f32.mxu0 %vm4597_vm2, %v4598_v17 }
 0x2e5   :  { %v4520_v49 = vpop.eup %4519  ;;  %v2385_v50 = vmul.f32 %v2196_v46, %v4792_v59 }
 0x2e6   :  { %v2200_v6 = vpop.f32.mrb[126].mxu1  ;;  %4077 = vmatmul.mubr.msk.f32.gmra.mrb[120].mxu0 %vm1055_vm0, %v4520_v49 }
 0x2e7   :  { %4525 = vtanh.f32 %v2385_v50  ;;  %v2201_v51 = vadd.f32 %v5645_v56, %v2200_v6  ;;  %v3899_v53 = vpop.f32.mrb[127].mxu1  ;;  %4079 = vmatprep.mubr.msk.f32.mxu0 %vm4597_vm2, %v4598_v17 }
 0x2e9   :  { %v4522_v54 = vpop.eup %4521  ;;  %v2386_v57 = vmul.f32 %v2201_v51, %v4792_v59 }
 0x2ea   :  { %v2205_v52 = vpop.f32.mrb[128].mxu1  ;;  %4080 = vmatmul.mubr.msk.f32.gmra.mrb[122].mxu0 %vm1055_vm0, %v4522_v54 }
 0x2eb   :  { %4527 = vtanh.f32 %v2386_v57  ;;  %v2206_v58 = vadd.f32 %v5645_v56, %v2205_v52  ;;  %v3902_v60 = vpop.f32.mrb[129].mxu1  ;;  %4082 = vmatprep.mubr.msk.f32.mxu0 %vm4597_vm2, %v4598_v17 }
 0x2ed   :  { %v4524_v61 = vpop.eup %4523  ;;  %v2387_v62 = vmul.f32 %v2206_v58, %v4792_v59 }
 0x2ee   :  { %v2210_v63 = vpop.f32.mrb[130].mxu1  ;;  %4083 = vmatmul.mubr.msk.f32.gmra.mrb[124].mxu0 %vm1055_vm0, %v4524_v61 }
 0x2ef   :  { %4529 = vtanh.f32 %v2387_v62  ;;  %v2211_v0 = vadd.f32 %v5645_v56, %v2210_v63  ;;  %v3905_v1 = vpop.f32.mrb[131].mxu1  ;;  %4085 = vmatprep.mubr.msk.f32.mxu0 %vm4597_vm2, %v4598_v17 }
 0x2f1   :  { %v4526_v2 = vpop.eup %4525  ;;  %v2388_v3 = vmul.f32 %v2211_v0, %v4792_v59 }
 0x2f2   :  { %v2215_v4 = vpop.f32.mrb[132].mxu1  ;;  %4086 = vmatmul.mubr.msk.f32.gmra.mrb[126].mxu0 %vm1055_vm0, %v4526_v2 }
 0x2f3   :  { %4531 = vtanh.f32 %v2388_v3  ;;  %v2216_v10 = vadd.f32 %v5645_v56, %v2215_v4  ;;  %v3908_v5 = vpop.f32.mrb[133].mxu1  ;;  %4088 = vmatprep.mubr.msk.f32.mxu0 %vm4597_vm2, %v4598_v17 }
 0x2f5   :  { %v4528_v45 = vpop.eup %4527  ;;  %v2389_v7 = vmul.f32 %v2216_v10, %v4792_v59 }
 0x2f6   :  { %v2220_v8 = vpop.f32.mrb[134].mxu1  ;;  %4089 = vmatmul.mubr.msk.f32.gmra.mrb[128].mxu0 %vm1055_vm0, %v4528_v45 }
 0x2f7   :  { %4533 = vtanh.f32 %v2389_v7  ;;  %v2221_v9 = vadd.f32 %v5645_v56, %v2220_v8  ;;  %v3911_v11 = vpop.f32.mrb[135].mxu1  ;;  %4091 = vmatprep.mubr.msk.f32.mxu0 %vm4597_vm2, %v4598_v17 }
 0x2f9   :  { %v4530_v12 = vpop.eup %4529  ;;  %v2390_v13 = vmul.f32 %v2221_v9, %v4792_v59 }
 0x2fa   :  { %v2225_v14 = vpop.f32.mrb[136].mxu1  ;;  %4092 = vmatmul.mubr.msk.f32.gmra.mrb[130].mxu0 %vm1055_vm0, %v4530_v12 }
 0x2fb   :  { %4535 = vtanh.f32 %v2390_v13  ;;  %v2226_v15 = vadd.f32 %v5645_v56, %v2225_v14  ;;  %v3914_v55 = vpop.f32.mrb[137].mxu1  ;;  %4094 = vmatprep.mubr.msk.f32.mxu0 %vm4597_vm2, %v4598_v17 }
 0x2fd   :  { %v4532_v16 = vpop.eup %4531  ;;  %v2391_v18 = vmul.f32 %v2226_v15, %v4792_v59 }
 0x2fe   :  { %v2230_v19 = vpop.f32.mrb[138].mxu1  ;;  %4095 = vmatmul.mubr.msk.f32.gmra.mrb[132].mxu0 %vm1055_vm0, %v4532_v16 }
 0x2ff   :  { %4537 = vtanh.f32 %v2391_v18  ;;  %v2231_v20 = vadd.f32 %v5645_v56, %v2230_v19  ;;  %v3917_v21 = vpop.f32.mrb[139].mxu1  ;;  %4097 = vmatprep.mubr.msk.f32.mxu0 %vm4597_vm2, %v4598_v17 }
 0x301   :  { %v4534_v22 = vpop.eup %4533  ;;  %v2392_v23 = vmul.f32 %v2231_v20, %v4792_v59 }
 0x302   :  { %v2235_v24 = vpop.f32.mrb[140].mxu1  ;;  %4098 = vmatmul.mubr.msk.f32.gmra.mrb[134].mxu0 %vm1055_vm0, %v4534_v22 }
 0x303   :  { %4539 = vtanh.f32 %v2392_v23  ;;  %v2236_v25 = vadd.f32 %v5645_v56, %v2235_v24  ;;  %v3920_v47 = vpop.f32.mrb[141].mxu1  ;;  %4100 = vmatprep.mubr.msk.f32.mxu0 %vm4597_vm2, %v4598_v17 }
 0x305   :  { %v4536_v26 = vpop.eup %4535  ;;  %v2393_v27 = vmul.f32 %v2236_v25, %v4792_v59 }
 0x306   :  { %v2240_v28 = vpop.f32.mrb[142].mxu1  ;;  %4101 = vmatmul.mubr.msk.f32.gmra.mrb[136].mxu0 %vm1055_vm0, %v4536_v26 }
 0x307   :  { %4541 = vtanh.f32 %v2393_v27  ;;  %v2241_v29 = vadd.f32 %v5645_v56, %v2240_v28  ;;  %v3923_v30 = vpop.f32.mrb[143].mxu1  ;;  %4103 = vmatprep.mubr.msk.f32.mxu0 %vm4597_vm2, %v4598_v17 }
 0x309   :  { %v4538_v31 = vpop.eup %4537  ;;  %v2394_v32 = vmul.f32 %v2241_v29, %v4792_v59 }
 0x30a   :  { %v2245_v33 = vpop.f32.mrb[144].mxu1  ;;  %4104 = vmatmul.mubr.msk.f32.gmra.mrb[138].mxu0 %vm1055_vm0, %v4538_v31 }
 0x30b   :  { %4543 = vtanh.f32 %v2394_v32  ;;  %v2246_v34 = vadd.f32 %v5645_v56, %v2245_v33  ;;  %v3926_v35 = vpop.f32.mrb[145].mxu1  ;;  %4106 = vmatprep.mubr.msk.f32.mxu0 %vm4597_vm2, %v4598_v17 }
 0x30d   :  { %v4540_v36 = vpop.eup %4539  ;;  %v2395_v37 = vmul.f32 %v2246_v34, %v4792_v59 }
 0x30e   :  { %v2250_v38 = vpop.f32.mrb[146].mxu1  ;;  %4107 = vmatmul.mubr.msk.f32.gmra.mrb[140].mxu0 %vm1055_vm0, %v4540_v36 }
 0x30f   :  { %4545 = vtanh.f32 %v2395_v37  ;;  %v2251_v39 = vadd.f32 %v5645_v56, %v2250_v38  ;;  %v3929_v40 = vpop.f32.mrb[147].mxu1  ;;  %4109 = vmatprep.mubr.msk.f32.mxu0 %vm4597_vm2, %v4598_v17 }
 0x311   :  { %v4542_v41 = vpop.eup %4541  ;;  %v2396_v42 = vmul.f32 %v2251_v39, %v4792_v59 }
 0x312   :  { %v2255_v43 = vpop.f32.mrb[148].mxu1  ;;  %4110 = vmatmul.mubr.msk.f32.gmra.mrb[142].mxu0 %vm1055_vm0, %v4542_v41 }
 0x313   :  { %4547 = vtanh.f32 %v2396_v42  ;;  %v2256_v44 = vadd.f32 %v5645_v56, %v2255_v43  ;;  %v3932_v46 = vpop.f32.mrb[149].mxu1  ;;  %4112 = vmatprep.mubr.msk.f32.mxu0 %vm4597_vm2, %v4598_v17 }
 0x315   :  { %v4544_v48 = vpop.eup %4543  ;;  %v2397_v49 = vmul.f32 %v2256_v44, %v4792_v59 }
 0x316   :  { %v2260_v50 = vpop.f32.mrb[150].mxu1  ;;  %4113 = vmatmul.mubr.msk.f32.gmra.mrb[144].mxu0 %vm1055_vm0, %v4544_v48 }
 0x317   :  { %4549 = vtanh.f32 %v2397_v49  ;;  %v2261_v6 = vadd.f32 %v5645_v56, %v2260_v50  ;;  %v3935_v51 = vpop.f32.mrb[151].mxu1  ;;  %4115 = vmatprep.mubr.msk.f32.mxu0 %vm4597_vm2, %v4598_v17 }
 0x318   :  { %v5964_v51 = vld [vmem:[%s6387_s4 + $0x3] ss:$0 sm:$0xff] }
 0x319   :  { %v4546_v53 = vpop.eup %4545  ;;  %v2398_v54 = vmul.f32 %v2261_v6, %v4792_v59 }
 0x31a   :  { %v2265_v57 = vpop.f32.mrb[152].mxu1  ;;  %4116 = vmatmul.mubr.msk.f32.gmra.mrb[146].mxu0 %vm1055_vm0, %v4546_v53 }
 0x31b   :  { %4551 = vtanh.f32 %v2398_v54  ;;  %v2266_v52 = vadd.f32 %v5645_v56, %v2265_v57  ;;  %v3938_v58 = vpop.f32.mrb[153].mxu1  ;;  %4118 = vmatprep.mubr.msk.f32.mxu0 %vm4597_vm2, %v4598_v17 }
 0x31d   :  { %v4548_v60 = vpop.eup %4547  ;;  %v2399_v61 = vmul.f32 %v2266_v52, %v4792_v59 }
 0x31e   :  { %v2270_v62 = vpop.f32.mrb[154].mxu1  ;;  %4119 = vmatmul.mubr.msk.f32.gmra.mrb[148].mxu0 %vm1055_vm0, %v4548_v60 }
 0x31f   :  { %4553 = vtanh.f32 %v2399_v61  ;;  %v2271_v63 = vadd.f32 %v5645_v56, %v2270_v62  ;;  %v3941_v0 = vpop.f32.mrb[155].mxu1  ;;  %4121 = vmatprep.mubr.msk.f32.mxu0 %vm4597_vm2, %v4598_v17 }
 0x321   :  { %v4550_v1 = vpop.eup %4549  ;;  %v2400_v2 = vmul.f32 %v2271_v63, %v4792_v59 }
 0x322   :  { %v2275_v3 = vpop.f32.mrb[156].mxu1  ;;  %4122 = vmatmul.mubr.msk.f32.gmra.mrb[150].mxu0 %vm1055_vm0, %v4550_v1 }
 0x323   :  { %4555 = vtanh.f32 %v2400_v2  ;;  %v2276_v4 = vadd.f32 %v5645_v56, %v2275_v3  ;;  %v3944_v10 = vpop.f32.mrb[157].mxu1  ;;  %4124 = vmatprep.mubr.msk.f32.mxu0 %vm4597_vm2, %v4598_v17 }
 0x325   :  { %v4552_v5 = vpop.eup %4551  ;;  %v2401_v45 = vmul.f32 %v2276_v4, %v4792_v59 }
 0x326   :  { %v2280_v7 = vpop.f32.mrb[158].mxu1  ;;  %4125 = vmatmul.mubr.msk.f32.gmra.mrb[152].mxu0 %vm1055_vm0, %v4552_v5 }
 0x327   :  { %4557 = vtanh.f32 %v2401_v45  ;;  %v2281_v8 = vadd.f32 %v5645_v56, %v2280_v7  ;;  %v3947_v9 = vpop.f32.mrb[159].mxu1  ;;  %4127 = vmatprep.mubr.msk.f32.mxu0 %vm4597_vm2, %v4598_v17 }
 0x329   :  { %v4554_v11 = vpop.eup %4553  ;;  %v2402_v12 = vmul.f32 %v2281_v8, %v4792_v59 }
 0x32a   :  { %v2285_v13 = vpop.f32.mrb[160].mxu1  ;;  %4128 = vmatmul.mubr.msk.f32.gmra.mrb[154].mxu0 %vm1055_vm0, %v4554_v11 }
 0x32b   :  { %4559 = vtanh.f32 %v2402_v12  ;;  %v2286_v14 = vadd.f32 %v5645_v56, %v2285_v13  ;;  %v3950_v15 = vpop.f32.mrb[161].mxu1  ;;  %4130 = vmatprep.mubr.msk.f32.mxu0 %vm4597_vm2, %v4598_v17 }
 0x32d   :  { %v4556_v55 = vpop.eup %4555  ;;  %v2403_v16 = vmul.f32 %v2286_v14, %v4792_v59 }
 0x32e   :  { %v2290_v18 = vpop.f32.mrb[162].mxu1  ;;  %4131 = vmatmul.mubr.msk.f32.gmra.mrb[156].mxu0 %vm1055_vm0, %v4556_v55 }
 0x32f   :  { %4561 = vtanh.f32 %v2403_v16  ;;  %v2291_v19 = vadd.f32 %v5645_v56, %v2290_v18  ;;  %v3953_v20 = vpop.f32.mrb[163].mxu1  ;;  %4133 = vmatprep.mubr.msk.f32.mxu0 %vm4597_vm2, %v4598_v17 }
 0x331   :  { %v4558_v21 = vpop.eup %4557  ;;  %v2404_v22 = vmul.f32 %v2291_v19, %v4792_v59 }
 0x332   :  { %v2295_v23 = vpop.f32.mrb[164].mxu1  ;;  %4134 = vmatmul.mubr.msk.f32.gmra.mrb[158].mxu0 %vm1055_vm0, %v4558_v21 }
 0x333   :  { %4563 = vtanh.f32 %v2404_v22  ;;  %v2296_v24 = vadd.f32 %v5645_v56, %v2295_v23  ;;  %v3956_v25 = vpop.f32.mrb[165].mxu1  ;;  %4136 = vmatprep.mubr.msk.f32.mxu0 %vm4597_vm2, %v4598_v17 }
 0x335   :  { %v4560_v47 = vpop.eup %4559  ;;  %v2405_v26 = vmul.f32 %v2296_v24, %v4792_v59 }
 0x336   :  { %v2300_v27 = vpop.f32.mrb[166].mxu1  ;;  %4137 = vmatmul.mubr.msk.f32.gmra.mrb[160].mxu0 %vm1055_vm0, %v4560_v47 }
 0x337   :  { %4565 = vtanh.f32 %v2405_v26  ;;  %v2301_v28 = vadd.f32 %v5645_v56, %v2300_v27  ;;  %v3959_v29 = vpop.f32.mrb[167].mxu1  ;;  %4139 = vmatprep.mubr.msk.f32.mxu0 %vm4597_vm2, %v4598_v17 }
 0x339   :  { %v4562_v30 = vpop.eup %4561  ;;  %v2406_v31 = vmul.f32 %v2301_v28, %v4792_v59 }
 0x33a   :  { %v2305_v32 = vpop.f32.mrb[168].mxu1  ;;  %4140 = vmatmul.mubr.msk.f32.gmra.mrb[162].mxu0 %vm1055_vm0, %v4562_v30 }
 0x33b   :  { %4567 = vtanh.f32 %v2406_v31  ;;  %v2306_v33 = vadd.f32 %v5645_v56, %v2305_v32  ;;  %v3962_v34 = vpop.f32.mrb[169].mxu1  ;;  %4142 = vmatprep.mubr.msk.f32.mxu0 %vm4597_vm2, %v4598_v17 }
 0x33d   :  { %v4564_v35 = vpop.eup %4563  ;;  %v2407_v36 = vmul.f32 %v2306_v33, %v4792_v59 }
 0x33e   :  { %v2310_v37 = vpop.f32.mrb[170].mxu1  ;;  %4143 = vmatmul.mubr.msk.f32.gmra.mrb[164].mxu0 %vm1055_vm0, %v4564_v35 }
 0x33f   :  { %4569 = vtanh.f32 %v2407_v36  ;;  %v2311_v38 = vadd.f32 %v5645_v56, %v2310_v37  ;;  %v3965_v39 = vpop.f32.mrb[171].mxu1  ;;  %4145 = vmatprep.mubr.msk.f32.mxu0 %vm4597_vm2, %v4598_v17 }
 0x341   :  { %v4566_v40 = vpop.eup %4565  ;;  %v2408_v41 = vmul.f32 %v2311_v38, %v4792_v59 }
 0x342   :  { %v2315_v42 = vpop.f32.mrb[172].mxu1  ;;  %4146 = vmatmul.mubr.msk.f32.gmra.mrb[166].mxu0 %vm1055_vm0, %v4566_v40 }
 0x343   :  { %4571 = vtanh.f32 %v2408_v41  ;;  %v2316_v43 = vadd.f32 %v5645_v56, %v2315_v42  ;;  %v3968_v44 = vpop.f32.mrb[173].mxu1  ;;  %4148 = vmatprep.mubr.msk.f32.mxu0 %vm4597_vm2, %v4598_v17 }
 0x345   :  { %v4568_v46 = vpop.eup %4567  ;;  %v2409_v48 = vmul.f32 %v2316_v43, %v4792_v59 }
 0x346   :  { %v2320_v49 = vpop.f32.mrb[174].mxu1  ;;  %4149 = vmatmul.mubr.msk.f32.gmra.mrb[168].mxu0 %vm1055_vm0, %v4568_v46 }
 0x347   :  { %4573 = vtanh.f32 %v2409_v48  ;;  %v2321_v50 = vadd.f32 %v5645_v56, %v2320_v49  ;;  %v3971_v6 = vpop.f32.mrb[175].mxu1  ;;  %4151 = vmatprep.mubr.msk.f32.mxu0 %vm4597_vm2, %v4598_v17 }
 0x349   :  { %v4570_v53 = vpop.eup %4569  ;;  %v2410_v54 = vmul.f32 %v2321_v50, %v4792_v59  ;;  %v2744_v57 = vpop.f32.mrb[64].mxu0 }
 0x34a   :  { %v2745_v52 = vadd.f32 %v5964_v51, %v2744_v57  ;;  %v2325_v58 = vpop.f32.mrb[176].mxu1  ;;  %v3994_v60 = vpop.f32.mrb[65].mxu0  ;;  %4152 = vmatmul.mubr.msk.f32.gmra.mrb[170].mxu0 %vm1055_vm0, %v4570_v53 }
 0x34b   :  { %4575 = vtanh.f32 %v2410_v54  ;;  %v2326_v61 = vadd.f32 %v5645_v56, %v2325_v58  ;;  %v3974_v62 = vpop.f32.mrb[177].mxu1  ;;  %4154 = vmatprep.mubr.msk.f32.mxu0 %vm4597_vm2, %v4598_v17  ;;  %v4593_v56 = vld [vmem:[%s6387_s4 + $0x2] ss:$0 sm:$0xff] }
 0x34c   :  { %v3058_v63 = vmul.f32 %v2745_v52, %v4792_v59 }
 0x34d   :  { %v4572_v0 = vpop.eup %4571  ;;  %v2411_v1 = vmul.f32 %v2326_v61, %v4792_v59  ;;  %v2749_v2 = vpop.f32.mrb[66].mxu0 }
 0x34e   :  { %3122 = vst.msk [vmem:[%s6389_s5] sm:$0xff] %vm3121_vm3, %v3058_v63  ;;  %v2750_v3 = vadd.f32 %v5964_v51, %v2749_v2  ;;  %v2330_v4 = vpop.f32.mrb[178].mxu1  ;;  %v3997_v10 = vpop.f32.mrb[67].mxu0  ;;  %4155 = vmatmul.mubr.msk.f32.gmra.mrb[172].mxu0 %vm1055_vm0, %v4572_v0 }
 0x34f   :  { %4577 = vtanh.f32 %v2411_v1  ;;  %v2331_v5 = vadd.f32 %v4593_v56, %v2330_v4  ;;  %v3977_v45 = vpop.f32.mrb[179].mxu1  ;;  %4157 = vmatprep.mubr.msk.f32.mxu0 %vm4597_vm2, %v4598_v17 }
 0x350   :  { %v3059_v7 = vmul.f32 %v2750_v3, %v4792_v59 }
 0x351   :  { %v4574_v8 = vpop.eup %4573  ;;  %v2412_v9 = vmul.f32 %v2331_v5, %v4792_v59  ;;  %v2754_v11 = vpop.f32.mrb[68].mxu0 }
 0x352   :  { %3123 = vst.msk [vmem:[%s6389_s5 + $0x8] sm:$0xff] %vm3121_vm3, %v3059_v7  ;;  %v2755_v12 = vadd.f32 %v5964_v51, %v2754_v11  ;;  %v2335_v13 = vpop.f32.mrb[180].mxu1  ;;  %v4000_v14 = vpop.f32.mrb[69].mxu0  ;;  %4158 = vmatmul.mubr.msk.f32.gmra.mrb[174].mxu0 %vm1055_vm0, %v4574_v8 }
 0x353   :  { %4579 = vtanh.f32 %v2412_v9  ;;  %v2336_v15 = vadd.f32 %v4593_v56, %v2335_v13  ;;  %v3980_v55 = vpop.f32.mrb[181].mxu1  ;;  %4160 = vmatprep.mubr.msk.f32.mxu0 %vm4597_vm2, %v4598_v17 }
 0x354   :  { %v3060_v16 = vmul.f32 %v2755_v12, %v4792_v59 }
 0x355   :  { %v4576_v18 = vpop.eup %4575  ;;  %v2413_v19 = vmul.f32 %v2336_v15, %v4792_v59  ;;  %v2759_v20 = vpop.f32.mrb[70].mxu0 }
 0x356   :  { %3124 = vst.msk [vmem:[%s6389_s5 + $0x10] sm:$0xff] %vm3121_vm3, %v3060_v16  ;;  %v2760_v21 = vadd.f32 %v5964_v51, %v2759_v20  ;;  %v2340_v22 = vpop.f32.mrb[182].mxu1  ;;  %v4003_v23 = vpop.f32.mrb[71].mxu0  ;;  %4161 = vmatmul.mubr.msk.f32.gmra.mrb[176].mxu0 %vm1055_vm0, %v4576_v18 }
 0x357   :  { %4581 = vtanh.f32 %v2413_v19  ;;  %v2341_v24 = vadd.f32 %v4593_v56, %v2340_v22  ;;  %v3983_v25 = vpop.f32.mrb[183].mxu1  ;;  %4163 = vmatprep.mubr.msk.f32.mxu0 %vm4597_vm2, %v4598_v17 }
 0x358   :  { %v3061_v47 = vmul.f32 %v2760_v21, %v4792_v59 }
 0x359   :  { %v4578_v26 = vpop.eup %4577  ;;  %v2414_v27 = vmul.f32 %v2341_v24, %v4792_v59  ;;  %v2764_v28 = vpop.f32.mrb[72].mxu0 }
 0x35a   :  { %3125 = vst.msk [vmem:[%s6389_s5 + $0x18] sm:$0xff] %vm3121_vm3, %v3061_v47  ;;  %v2765_v29 = vadd.f32 %v5964_v51, %v2764_v28  ;;  %v2345_v30 = vpop.f32.mrb[184].mxu1  ;;  %v4006_v31 = vpop.f32.mrb[73].mxu0  ;;  %4164 = vmatmul.mubr.msk.f32.gmra.mrb[178].mxu0 %vm1055_vm0, %v4578_v26 }
 0x35b   :  { %4583 = vtanh.f32 %v2414_v27  ;;  %v2346_v32 = vadd.f32 %v4593_v56, %v2345_v30  ;;  %v3986_v33 = vpop.f32.mrb[185].mxu1  ;;  %4166 = vmatprep.mubr.msk.f32.mxu0 %vm4597_vm2, %v4598_v17 }
 0x35c   :  { %v3062_v34 = vmul.f32 %v2765_v29, %v4792_v59 }
 0x35d   :  { %v4580_v35 = vpop.eup %4579  ;;  %v2415_v36 = vmul.f32 %v2346_v32, %v4792_v59  ;;  %v2769_v37 = vpop.f32.mrb[74].mxu0 }
 0x35e   :  { %3126 = vst.msk [vmem:[%s6389_s5 + $0x20] sm:$0xff] %vm3121_vm3, %v3062_v34  ;;  %v2770_v38 = vadd.f32 %v5964_v51, %v2769_v37  ;;  %v2350_v39 = vpop.f32.mrb[186].mxu1  ;;  %v4009_v40 = vpop.f32.mrb[75].mxu0  ;;  %4167 = vmatmul.mubr.msk.f32.gmra.mrb[180].mxu0 %vm1055_vm0, %v4580_v35 }
 0x35f   :  { %4585 = vtanh.f32 %v2415_v36  ;;  %v2351_v41 = vadd.f32 %v4593_v56, %v2350_v39  ;;  %v3989_v42 = vpop.f32.mrb[187].mxu1  ;;  %4169 = vmatprep.mubr.msk.f32.mxu0 %vm4597_vm2, %v4598_v17 }
 0x360   :  { %v3063_v43 = vmul.f32 %v2770_v38, %v4792_v59 }
 0x361   :  { %v4582_v44 = vpop.eup %4581  ;;  %v2416_v46 = vmul.f32 %v2351_v41, %v4792_v59  ;;  %v2774_v48 = vpop.f32.mrb[76].mxu0 }
 0x362   :  { %3127 = vst.msk [vmem:[%s6389_s5 + $0x28] sm:$0xff] %vm3121_vm3, %v3063_v43  ;;  %v2775_v49 = vadd.f32 %v5964_v51, %v2774_v48  ;;  %v4012_v50 = vpop.f32.mrb[77].mxu0  ;;  %4170 = vmatmul.mubr.msk.f32.gmra.mrb[182].mxu0 %vm1055_vm0, %v4582_v44 }
 0x363   :  { %4587 = vtanh.f32 %v2416_v46  ;;  %4172 = vmatprep.mubr.msk.f32.mxu0 %vm4597_vm2, %v4598_v17 }
 0x364   :  { %v3064_v6 = vmul.f32 %v2775_v49, %v4792_v59 }
 0x365   :  { %v4584_v53 = vpop.eup %4583  ;;  %v2779_v54 = vpop.f32.mrb[78].mxu0 }
 0x366   :  { %3128 = vst.msk [vmem:[%s6389_s5 + $0x30] sm:$0xff] %vm3121_vm3, %v3064_v6  ;;  %v2780_v57 = vadd.f32 %v5964_v51, %v2779_v54  ;;  %v4015_v52 = vpop.f32.mrb[79].mxu0  ;;  %4173 = vmatmul.mubr.msk.f32.gmra.mrb[184].mxu0 %vm1055_vm0, %v4584_v53 }
 0x367   :  { %4175 = vmatprep.mubr.msk.f32.mxu0 %vm4597_vm2, %v4598_v17 }
 0x368   :  { %v3065_v58 = vmul.f32 %v2780_v57, %v4792_v59 }
 0x369   :  { %v4586_v60 = vpop.eup %4585  ;;  %v2784_v61 = vpop.f32.mrb[80].mxu0 }
 0x36a   :  { %3129 = vst.msk [vmem:[%s6389_s5 + $0x38] sm:$0xff] %vm3121_vm3, %v3065_v58  ;;  %v2785_v62 = vadd.f32 %v5964_v51, %v2784_v61  ;;  %v4018_v63 = vpop.f32.mrb[81].mxu0  ;;  %4176 = vmatmul.mubr.msk.f32.gmra.mrb[186].mxu0 %vm1055_vm0, %v4586_v60 }
 0x36b   :  { %4178 = vmatprep.mubr.msk.f32.mxu0 %vm4597_vm2, %v4598_v17 }
 0x36c   :  { %v3066_v0 = vmul.f32 %v2785_v62, %v4792_v59 }
 0x36d   :  { %v4588_v1 = vpop.eup %4587  ;;  %v2789_v2 = vpop.f32.mrb[82].mxu0 }
 0x36e   :  { %3130 = vst.msk [vmem:[%s6389_s5 + $0x40] sm:$0xff] %vm3121_vm3, %v3066_v0  ;;  %v2790_v3 = vadd.f32 %v5964_v51, %v2789_v2  ;;  %v4021_v4 = vpop.f32.mrb[83].mxu0  ;;  %4179 = vmatmul.mubr.msk.f32.gmra.mrb[188].mxu0 %vm1055_vm0, %v4588_v1 }
 0x370   :  { %v3067_v10 = vmul.f32 %v2790_v3, %v4792_v59 }
 0x371   :  { %v2794_v56 = vpop.f32.mrb[84].mxu0 }
 0x372   :  { %3131 = vst.msk [vmem:[%s6389_s5 + $0x48] sm:$0xff] %vm3121_vm3, %v3067_v10  ;;  %v2795_v17 = vadd.f32 %v5964_v51, %v2794_v56  ;;  %v4024_v5 = vpop.f32.mrb[85].mxu0 }
 0x374   :  { %v3068_v45 = vmul.f32 %v2795_v17, %v4792_v59 }
 0x375   :  { %v2799_v7 = vpop.f32.mrb[86].mxu0 }
 0x376   :  { %3132 = vst.msk [vmem:[%s6389_s5 + $0x50] sm:$0xff] %vm3121_vm3, %v3068_v45  ;;  %v2800_v8 = vadd.f32 %v5964_v51, %v2799_v7  ;;  %v4027_v9 = vpop.f32.mrb[87].mxu0 }
 0x378   :  { %v3069_v11 = vmul.f32 %v2800_v8, %v4792_v59 }
 0x379   :  { %v2804_v12 = vpop.f32.mrb[88].mxu0 }
 0x37a   :  { %3133 = vst.msk [vmem:[%s6389_s5 + $0x58] sm:$0xff] %vm3121_vm3, %v3069_v11  ;;  %v2805_v13 = vadd.f32 %v5964_v51, %v2804_v12  ;;  %v4030_v14 = vpop.f32.mrb[89].mxu0 }
 0x37c   :  { %v3070_v15 = vmul.f32 %v2805_v13, %v4792_v59 }
 0x37d   :  { %v2809_v55 = vpop.f32.mrb[90].mxu0 }
 0x37e   :  { %3134 = vst.msk [vmem:[%s6389_s5 + $0x60] sm:$0xff] %vm3121_vm3, %v3070_v15  ;;  %v2810_v16 = vadd.f32 %v5964_v51, %v2809_v55  ;;  %v4033_v18 = vpop.f32.mrb[91].mxu0 }
 0x380   :  { %v3071_v19 = vmul.f32 %v2810_v16, %v4792_v59 }
 0x381   :  { %v2814_v20 = vpop.f32.mrb[92].mxu0 }
 0x382   :  { %3135 = vst.msk [vmem:[%s6389_s5 + $0x68] sm:$0xff] %vm3121_vm3, %v3071_v19  ;;  %v2815_v21 = vadd.f32 %v5964_v51, %v2814_v20  ;;  %v4036_v22 = vpop.f32.mrb[93].mxu0 }
 0x384   :  { %v3072_v23 = vmul.f32 %v2815_v21, %v4792_v59 }
 0x385   :  { %v2819_v24 = vpop.f32.mrb[94].mxu0 }
 0x386   :  { %3136 = vst.msk [vmem:[%s6389_s5 + $0x70] sm:$0xff] %vm3121_vm3, %v3072_v23  ;;  %v2820_v25 = vadd.f32 %v5964_v51, %v2819_v24  ;;  %v4039_v47 = vpop.f32.mrb[95].mxu0 }
 0x388   :  { %v3073_v26 = vmul.f32 %v2820_v25, %v4792_v59 }
 0x389   :  { %v2824_v27 = vpop.f32.mrb[96].mxu0 }
 0x38a   :  { %3137 = vst.msk [vmem:[%s6389_s5 + $0x78] sm:$0xff] %vm3121_vm3, %v3073_v26  ;;  %v2825_v28 = vadd.f32 %v5964_v51, %v2824_v27  ;;  %v4042_v29 = vpop.f32.mrb[97].mxu0 }
 0x38c   :  { %v3074_v30 = vmul.f32 %v2825_v28, %v4792_v59 }
 0x38d   :  { %v2829_v31 = vpop.f32.mrb[98].mxu0 }
 0x38e   :  { %3138 = vst.msk [vmem:[%s6389_s5 + $0x80] sm:$0xff] %vm3121_vm3, %v3074_v30  ;;  %v2830_v32 = vadd.f32 %v5964_v51, %v2829_v31  ;;  %v4045_v33 = vpop.f32.mrb[99].mxu0 }
 0x390   :  { %v3075_v34 = vmul.f32 %v2830_v32, %v4792_v59 }
 0x391   :  { %v2834_v35 = vpop.f32.mrb[100].mxu0 }
 0x392   :  { %3139 = vst.msk [vmem:[%s6389_s5 + $0x88] sm:$0xff] %vm3121_vm3, %v3075_v34  ;;  %v2835_v36 = vadd.f32 %v5964_v51, %v2834_v35  ;;  %v4048_v37 = vpop.f32.mrb[101].mxu0 }
 0x394   :  { %v3076_v38 = vmul.f32 %v2835_v36, %v4792_v59 }
 0x395   :  { %v2839_v39 = vpop.f32.mrb[102].mxu0 }
 0x396   :  { %3140 = vst.msk [vmem:[%s6389_s5 + $0x90] sm:$0xff] %vm3121_vm3, %v3076_v38  ;;  %v2840_v40 = vadd.f32 %v5964_v51, %v2839_v39  ;;  %v4051_v41 = vpop.f32.mrb[103].mxu0 }
 0x398   :  { %v3077_v42 = vmul.f32 %v2840_v40, %v4792_v59 }
 0x399   :  { %v2844_v43 = vpop.f32.mrb[104].mxu0 }
 0x39a   :  { %3141 = vst.msk [vmem:[%s6389_s5 + $0x98] sm:$0xff] %vm3121_vm3, %v3077_v42  ;;  %v2845_v44 = vadd.f32 %v5964_v51, %v2844_v43  ;;  %v4054_v46 = vpop.f32.mrb[105].mxu0 }
 0x39c   :  { %v3078_v48 = vmul.f32 %v2845_v44, %v4792_v59 }
 0x39d   :  { %v2849_v49 = vpop.f32.mrb[106].mxu0 }
 0x39e   :  { %3142 = vst.msk [vmem:[%s6389_s5 + $0xa0] sm:$0xff] %vm3121_vm3, %v3078_v48  ;;  %v2850_v50 = vadd.f32 %v5964_v51, %v2849_v49  ;;  %v4057_v6 = vpop.f32.mrb[107].mxu0 }
 0x3a0   :  { %v3079_v53 = vmul.f32 %v2850_v50, %v4792_v59 }
 0x3a1   :  { %v2854_v54 = vpop.f32.mrb[108].mxu0 }
 0x3a2   :  { %3143 = vst.msk [vmem:[%s6389_s5 + $0xa8] sm:$0xff] %vm3121_vm3, %v3079_v53  ;;  %v2855_v57 = vadd.f32 %v5964_v51, %v2854_v54  ;;  %v4060_v52 = vpop.f32.mrb[109].mxu0 }
 0x3a4   :  { %v3080_v58 = vmul.f32 %v2855_v57, %v4792_v59 }
 0x3a5   :  { %v2859_v60 = vpop.f32.mrb[110].mxu0 }
 0x3a6   :  { %3144 = vst.msk [vmem:[%s6389_s5 + $0xb0] sm:$0xff] %vm3121_vm3, %v3080_v58  ;;  %v2860_v61 = vadd.f32 %v5964_v51, %v2859_v60  ;;  %v4063_v62 = vpop.f32.mrb[111].mxu0 }
 0x3a8   :  { %v3081_v63 = vmul.f32 %v2860_v61, %v4792_v59 }
 0x3a9   :  { %v2864_v0 = vpop.f32.mrb[112].mxu0 }
 0x3aa   :  { %3145 = vst.msk [vmem:[%s6389_s5 + $0xb8] sm:$0xff] %vm3121_vm3, %v3081_v63  ;;  %v2865_v1 = vadd.f32 %v5964_v51, %v2864_v0  ;;  %v4066_v2 = vpop.f32.mrb[113].mxu0 }
 0x3ac   :  { %v3082_v3 = vmul.f32 %v2865_v1, %v4792_v59 }
 0x3ad   :  { %v2869_v4 = vpop.f32.mrb[114].mxu0 }
 0x3ae   :  { %3146 = vst.msk [vmem:[%s6389_s5 + $0xc0] sm:$0xff] %vm3121_vm3, %v3082_v3  ;;  %v2870_v10 = vadd.f32 %v5964_v51, %v2869_v4  ;;  %v4069_v56 = vpop.f32.mrb[115].mxu0 }
 0x3b0   :  { %v3083_v17 = vmul.f32 %v2870_v10, %v4792_v59 }
 0x3b1   :  { %v2874_v5 = vpop.f32.mrb[116].mxu0 }
 0x3b2   :  { %3147 = vst.msk [vmem:[%s6389_s5 + $0xc8] sm:$0xff] %vm3121_vm3, %v3083_v17  ;;  %v2875_v45 = vadd.f32 %v5964_v51, %v2874_v5  ;;  %v4072_v7 = vpop.f32.mrb[117].mxu0 }
 0x3b4   :  { %v3084_v8 = vmul.f32 %v2875_v45, %v4792_v59 }
 0x3b5   :  { %v2879_v9 = vpop.f32.mrb[118].mxu0 }
 0x3b6   :  { %3148 = vst.msk [vmem:[%s6389_s5 + $0xd0] sm:$0xff] %vm3121_vm3, %v3084_v8  ;;  %v2880_v11 = vadd.f32 %v5964_v51, %v2879_v9  ;;  %v4075_v12 = vpop.f32.mrb[119].mxu0 }
 0x3b8   :  { %v3085_v13 = vmul.f32 %v2880_v11, %v4792_v59 }
 0x3b9   :  { %v2884_v14 = vpop.f32.mrb[120].mxu0 }
 0x3ba   :  { %3149 = vst.msk [vmem:[%s6389_s5 + $0xd8] sm:$0xff] %vm3121_vm3, %v3085_v13  ;;  %v2885_v15 = vadd.f32 %v5964_v51, %v2884_v14  ;;  %v4078_v55 = vpop.f32.mrb[121].mxu0 }
 0x3bc   :  { %v3086_v16 = vmul.f32 %v2885_v15, %v4792_v59 }
 0x3bd   :  { %v2889_v18 = vpop.f32.mrb[122].mxu0 }
 0x3be   :  { %3150 = vst.msk [vmem:[%s6389_s5 + $0xe0] sm:$0xff] %vm3121_vm3, %v3086_v16  ;;  %v2890_v19 = vadd.f32 %v5964_v51, %v2889_v18  ;;  %v4081_v20 = vpop.f32.mrb[123].mxu0 }
 0x3c0   :  { %v3087_v21 = vmul.f32 %v2890_v19, %v4792_v59 }
 0x3c1   :  { %v2894_v22 = vpop.f32.mrb[124].mxu0 }
 0x3c2   :  { %3151 = vst.msk [vmem:[%s6389_s5 + $0xe8] sm:$0xff] %vm3121_vm3, %v3087_v21  ;;  %v2895_v23 = vadd.f32 %v5964_v51, %v2894_v22  ;;  %v4084_v24 = vpop.f32.mrb[125].mxu0 }
 0x3c4   :  { %v3088_v25 = vmul.f32 %v2895_v23, %v4792_v59 }
 0x3c5   :  { %v2899_v47 = vpop.f32.mrb[126].mxu0 }
 0x3c6   :  { %3152 = vst.msk [vmem:[%s6389_s5 + $0xf0] sm:$0xff] %vm3121_vm3, %v3088_v25  ;;  %v2900_v26 = vadd.f32 %v5964_v51, %v2899_v47  ;;  %v4087_v27 = vpop.f32.mrb[127].mxu0 }
 0x3c8   :  { %v3089_v28 = vmul.f32 %v2900_v26, %v4792_v59 }
 0x3c9   :  { %v2904_v29 = vpop.f32.mrb[128].mxu0 }
 0x3ca   :  { %3153 = vst.msk [vmem:[%s6389_s5 + $0xf8] sm:$0xff] %vm3121_vm3, %v3089_v28  ;;  %v2905_v30 = vadd.f32 %v5964_v51, %v2904_v29  ;;  %v4090_v31 = vpop.f32.mrb[129].mxu0 }
 0x3cc   :  { %v3090_v32 = vmul.f32 %v2905_v30, %v4792_v59 }
 0x3cd   :  { %v2909_v33 = vpop.f32.mrb[130].mxu0 }
 0x3ce   :  { %3154 = vst.msk [vmem:[%s6389_s5 + $0x100] sm:$0xff] %vm3121_vm3, %v3090_v32  ;;  %v2910_v34 = vadd.f32 %v5964_v51, %v2909_v33  ;;  %v4093_v35 = vpop.f32.mrb[131].mxu0 }
 0x3d0   :  { %v3091_v36 = vmul.f32 %v2910_v34, %v4792_v59 }
 0x3d1   :  { %v2914_v37 = vpop.f32.mrb[132].mxu0 }
 0x3d2   :  { %3155 = vst.msk [vmem:[%s6389_s5 + $0x108] sm:$0xff] %vm3121_vm3, %v3091_v36  ;;  %v2915_v38 = vadd.f32 %v5964_v51, %v2914_v37  ;;  %v4096_v39 = vpop.f32.mrb[133].mxu0 }
 0x3d4   :  { %v3092_v40 = vmul.f32 %v2915_v38, %v4792_v59 }
 0x3d5   :  { %v2919_v41 = vpop.f32.mrb[134].mxu0 }
 0x3d6   :  { %3156 = vst.msk [vmem:[%s6389_s5 + $0x110] sm:$0xff] %vm3121_vm3, %v3092_v40  ;;  %v2920_v42 = vadd.f32 %v5964_v51, %v2919_v41  ;;  %v4099_v43 = vpop.f32.mrb[135].mxu0 }
 0x3d8   :  { %v3093_v44 = vmul.f32 %v2920_v42, %v4792_v59 }
 0x3d9   :  { %v2924_v46 = vpop.f32.mrb[136].mxu0 }
 0x3da   :  { %3157 = vst.msk [vmem:[%s6389_s5 + $0x118] sm:$0xff] %vm3121_vm3, %v3093_v44  ;;  %v2925_v48 = vadd.f32 %v5964_v51, %v2924_v46  ;;  %v4102_v49 = vpop.f32.mrb[137].mxu0 }
 0x3dc   :  { %v3094_v50 = vmul.f32 %v2925_v48, %v4792_v59 }
 0x3dd   :  { %v2929_v6 = vpop.f32.mrb[138].mxu0 }
 0x3de   :  { %3158 = vst.msk [vmem:[%s6389_s5 + $0x120] sm:$0xff] %vm3121_vm3, %v3094_v50  ;;  %v2930_v53 = vadd.f32 %v5964_v51, %v2929_v6  ;;  %v4105_v54 = vpop.f32.mrb[139].mxu0 }
 0x3e0   :  { %v3095_v57 = vmul.f32 %v2930_v53, %v4792_v59 }
 0x3e1   :  { %v2934_v52 = vpop.f32.mrb[140].mxu0 }
 0x3e2   :  { %3159 = vst.msk [vmem:[%s6389_s5 + $0x128] sm:$0xff] %vm3121_vm3, %v3095_v57  ;;  %v2935_v58 = vadd.f32 %v5964_v51, %v2934_v52  ;;  %v4108_v60 = vpop.f32.mrb[141].mxu0 }
 0x3e4   :  { %v3096_v61 = vmul.f32 %v2935_v58, %v4792_v59 }
 0x3e5   :  { %v2939_v62 = vpop.f32.mrb[142].mxu0 }
 0x3e6   :  { %3160 = vst.msk [vmem:[%s6389_s5 + $0x130] sm:$0xff] %vm3121_vm3, %v3096_v61  ;;  %v2940_v63 = vadd.f32 %v5964_v51, %v2939_v62  ;;  %v4111_v0 = vpop.f32.mrb[143].mxu0 }
 0x3e8   :  { %v3097_v1 = vmul.f32 %v2940_v63, %v4792_v59 }
 0x3e9   :  { %v2944_v2 = vpop.f32.mrb[144].mxu0 }
 0x3ea   :  { %3161 = vst.msk [vmem:[%s6389_s5 + $0x138] sm:$0xff] %vm3121_vm3, %v3097_v1  ;;  %v2945_v3 = vadd.f32 %v5964_v51, %v2944_v2  ;;  %v4114_v4 = vpop.f32.mrb[145].mxu0 }
 0x3ec   :  { %v3098_v10 = vmul.f32 %v2945_v3, %v4792_v59 }
 0x3ed   :  { %v2949_v56 = vpop.f32.mrb[146].mxu0 }
 0x3ee   :  { %3162 = vst.msk [vmem:[%s6389_s5 + $0x140] sm:$0xff] %vm3121_vm3, %v3098_v10  ;;  %v2950_v17 = vadd.f32 %v5964_v51, %v2949_v56  ;;  %v4117_v5 = vpop.f32.mrb[147].mxu0 }
 0x3f0   :  { %v3099_v45 = vmul.f32 %v2950_v17, %v4792_v59 }
 0x3f1   :  { %v2954_v7 = vpop.f32.mrb[148].mxu0 }
 0x3f2   :  { %3163 = vst.msk [vmem:[%s6389_s5 + $0x148] sm:$0xff] %vm3121_vm3, %v3099_v45  ;;  %v2955_v8 = vadd.f32 %v5964_v51, %v2954_v7  ;;  %v4120_v9 = vpop.f32.mrb[149].mxu0 }
 0x3f4   :  { %v3100_v11 = vmul.f32 %v2955_v8, %v4792_v59 }
 0x3f5   :  { %v2959_v12 = vpop.f32.mrb[150].mxu0 }
 0x3f6   :  { %3164 = vst.msk [vmem:[%s6389_s5 + $0x150] sm:$0xff] %vm3121_vm3, %v3100_v11  ;;  %v2960_v13 = vadd.f32 %v5964_v51, %v2959_v12  ;;  %v4123_v14 = vpop.f32.mrb[151].mxu0 }
 0x3f8   :  { %v3101_v15 = vmul.f32 %v2960_v13, %v4792_v59 }
 0x3f9   :  { %v2964_v55 = vpop.f32.mrb[152].mxu0 }
 0x3fa   :  { %3165 = vst.msk [vmem:[%s6389_s5 + $0x158] sm:$0xff] %vm3121_vm3, %v3101_v15  ;;  %v2965_v16 = vadd.f32 %v5964_v51, %v2964_v55  ;;  %v4126_v18 = vpop.f32.mrb[153].mxu0 }
 0x3fc   :  { %v3102_v19 = vmul.f32 %v2965_v16, %v4792_v59 }
 0x3fd   :  { %v2969_v20 = vpop.f32.mrb[154].mxu0 }
 0x3fe   :  { %3166 = vst.msk [vmem:[%s6389_s5 + $0x160] sm:$0xff] %vm3121_vm3, %v3102_v19  ;;  %v2970_v21 = vadd.f32 %v5964_v51, %v2969_v20  ;;  %v4129_v22 = vpop.f32.mrb[155].mxu0 }
 0x400   :  { %v3103_v23 = vmul.f32 %v2970_v21, %v4792_v59 }
 0x401   :  { %v2974_v24 = vpop.f32.mrb[156].mxu0 }
 0x402   :  { %3167 = vst.msk [vmem:[%s6389_s5 + $0x168] sm:$0xff] %vm3121_vm3, %v3103_v23  ;;  %v2975_v25 = vadd.f32 %v5964_v51, %v2974_v24  ;;  %v4132_v47 = vpop.f32.mrb[157].mxu0 }
 0x404   :  { %v3104_v26 = vmul.f32 %v2975_v25, %v4792_v59 }
 0x405   :  { %v2979_v27 = vpop.f32.mrb[158].mxu0 }
 0x406   :  { %3168 = vst.msk [vmem:[%s6389_s5 + $0x170] sm:$0xff] %vm3121_vm3, %v3104_v26  ;;  %v2980_v28 = vadd.f32 %v5964_v51, %v2979_v27  ;;  %v4135_v29 = vpop.f32.mrb[159].mxu0 }
 0x408   :  { %v3105_v30 = vmul.f32 %v2980_v28, %v4792_v59 }
 0x409   :  { %v2984_v31 = vpop.f32.mrb[160].mxu0 }
 0x40a   :  { %3169 = vst.msk [vmem:[%s6389_s5 + $0x178] sm:$0xff] %vm3121_vm3, %v3105_v30  ;;  %v2985_v32 = vadd.f32 %v5964_v51, %v2984_v31  ;;  %v4138_v33 = vpop.f32.mrb[161].mxu0 }
 0x40c   :  { %v3106_v34 = vmul.f32 %v2985_v32, %v4792_v59 }
 0x40d   :  { %v2989_v35 = vpop.f32.mrb[162].mxu0 }
 0x40e   :  { %3170 = vst.msk [vmem:[%s6389_s5 + $0x180] sm:$0xff] %vm3121_vm3, %v3106_v34  ;;  %v2990_v36 = vadd.f32 %v5964_v51, %v2989_v35  ;;  %v4141_v37 = vpop.f32.mrb[163].mxu0 }
 0x410   :  { %v3107_v38 = vmul.f32 %v2990_v36, %v4792_v59 }
 0x411   :  { %v2994_v39 = vpop.f32.mrb[164].mxu0 }
 0x412   :  { %3171 = vst.msk [vmem:[%s6389_s5 + $0x188] sm:$0xff] %vm3121_vm3, %v3107_v38  ;;  %v2995_v40 = vadd.f32 %v5964_v51, %v2994_v39  ;;  %v4144_v41 = vpop.f32.mrb[165].mxu0 }
 0x414   :  { %v3108_v42 = vmul.f32 %v2995_v40, %v4792_v59 }
 0x415   :  { %v2999_v43 = vpop.f32.mrb[166].mxu0 }
 0x416   :  { %3172 = vst.msk [vmem:[%s6389_s5 + $0x190] sm:$0xff] %vm3121_vm3, %v3108_v42  ;;  %v3000_v44 = vadd.f32 %v5964_v51, %v2999_v43  ;;  %v4147_v46 = vpop.f32.mrb[167].mxu0 }
 0x418   :  { %v3109_v48 = vmul.f32 %v3000_v44, %v4792_v59 }
 0x419   :  { %v3004_v49 = vpop.f32.mrb[168].mxu0 }
 0x41a   :  { %3173 = vst.msk [vmem:[%s6389_s5 + $0x198] sm:$0xff] %vm3121_vm3, %v3109_v48  ;;  %v3005_v50 = vadd.f32 %v5964_v51, %v3004_v49  ;;  %v4150_v6 = vpop.f32.mrb[169].mxu0 }
 0x41c   :  { %v3110_v53 = vmul.f32 %v3005_v50, %v4792_v59 }
 0x41d   :  { %v3009_v54 = vpop.f32.mrb[170].mxu0 }
 0x41e   :  { %3174 = vst.msk [vmem:[%s6389_s5 + $0x1a0] sm:$0xff] %vm3121_vm3, %v3110_v53  ;;  %v3010_v57 = vadd.f32 %v5964_v51, %v3009_v54  ;;  %v4153_v52 = vpop.f32.mrb[171].mxu0 }
 0x420   :  { %v3111_v58 = vmul.f32 %v3010_v57, %v4792_v59 }
 0x421   :  { %v3014_v60 = vpop.f32.mrb[172].mxu0 }
 0x422   :  { %3175 = vst.msk [vmem:[%s6389_s5 + $0x1a8] sm:$0xff] %vm3121_vm3, %v3111_v58  ;;  %v3015_v61 = vadd.f32 %v5964_v51, %v3014_v60  ;;  %v4156_v62 = vpop.f32.mrb[173].mxu0 }
 0x424   :  { %v3112_v63 = vmul.f32 %v3015_v61, %v4792_v59 }
 0x425   :  { %v3019_v0 = vpop.f32.mrb[174].mxu0 }
 0x426   :  { %3176 = vst.msk [vmem:[%s6389_s5 + $0x1b0] sm:$0xff] %vm3121_vm3, %v3112_v63  ;;  %v3020_v1 = vadd.f32 %v5964_v51, %v3019_v0  ;;  %v4159_v2 = vpop.f32.mrb[175].mxu0 }
 0x428   :  { %v3113_v3 = vmul.f32 %v3020_v1, %v4792_v59 }
 0x429   :  { %v3024_v4 = vpop.f32.mrb[176].mxu0 }
 0x42a   :  { %3177 = vst.msk [vmem:[%s6389_s5 + $0x1b8] sm:$0xff] %vm3121_vm3, %v3113_v3  ;;  %v3025_v10 = vadd.f32 %v5964_v51, %v3024_v4  ;;  %v4162_v56 = vpop.f32.mrb[177].mxu0 }
 0x42c   :  { %v3114_v17 = vmul.f32 %v3025_v10, %v4792_v59 }
 0x42d   :  { %v3029_v5 = vpop.f32.mrb[178].mxu0 }
 0x42e   :  { %3178 = vst.msk [vmem:[%s6389_s5 + $0x1c0] sm:$0xff] %vm3121_vm3, %v3114_v17  ;;  %v3030_v45 = vadd.f32 %v5964_v51, %v3029_v5  ;;  %v4165_v7 = vpop.f32.mrb[179].mxu0 }
 0x430   :  { %v3115_v8 = vmul.f32 %v3030_v45, %v4792_v59 }
 0x431   :  { %v3034_v9 = vpop.f32.mrb[180].mxu0 }
 0x432   :  { %3179 = vst.msk [vmem:[%s6389_s5 + $0x1c8] sm:$0xff] %vm3121_vm3, %v3115_v8  ;;  %v3035_v11 = vadd.f32 %v5964_v51, %v3034_v9  ;;  %v4168_v12 = vpop.f32.mrb[181].mxu0 }
 0x434   :  { %v3116_v13 = vmul.f32 %v3035_v11, %v4792_v59 }
 0x435   :  { %v3039_v14 = vpop.f32.mrb[182].mxu0 }
 0x436   :  { %3180 = vst.msk [vmem:[%s6389_s5 + $0x1d0] sm:$0xff] %vm3121_vm3, %v3116_v13  ;;  %v3040_v15 = vadd.f32 %v5964_v51, %v3039_v14  ;;  %v4171_v55 = vpop.f32.mrb[183].mxu0 }
 0x438   :  { %v3117_v16 = vmul.f32 %v3040_v15, %v4792_v59 }
 0x439   :  { %v3044_v18 = vpop.f32.mrb[184].mxu0 }
 0x43a   :  { %3181 = vst.msk [vmem:[%s6389_s5 + $0x1d8] sm:$0xff] %vm3121_vm3, %v3117_v16  ;;  %v3045_v19 = vadd.f32 %v5964_v51, %v3044_v18  ;;  %v4174_v20 = vpop.f32.mrb[185].mxu0 }
 0x43c   :  { %v3118_v21 = vmul.f32 %v3045_v19, %v4792_v59 }
 0x43d   :  { %v3049_v22 = vpop.f32.mrb[186].mxu0 }
 0x43e   :  { %3182 = vst.msk [vmem:[%s6389_s5 + $0x1e0] sm:$0xff] %vm3121_vm3, %v3118_v21  ;;  %v3050_v23 = vadd.f32 %v5964_v51, %v3049_v22  ;;  %v4177_v24 = vpop.f32.mrb[187].mxu0 }
 0x440   :  { %v3119_v25 = vmul.f32 %v3050_v23, %v4792_v59 }
 0x441   :  { %v3054_v47 = vpop.f32.mrb[188].mxu0 }
 0x442   :  { %3183 = vst.msk [vmem:[%s6389_s5 + $0x1e8] sm:$0xff] %vm3121_vm3, %v3119_v25  ;;  %v3055_v26 = vadd.f32 %v5964_v51, %v3054_v47  ;;  %v4180_v27 = vpop.f32.mrb[189].mxu0 }
 0x444   :  { %v3120_v28 = vmul.f32 %v3055_v26, %v4792_v59 }
 0x446   :  { %3185 = vst.msk [vmem:[%s6389_s5 + $0x1f0] sm:$0xf] %vm3184_vm4, %v3120_v28 }

</bundles_post_ra>
